<compile_context>
chip_gen: v5e
topology: v5e:2x2
jax: 0.10.0
libtpu: 0.0.40
codegen_flags: <defaults>
</compile_context>

<pallas_src>
import jax
import jax.numpy as jnp
from jax import lax
from jax.experimental import pallas as pl
from jax.experimental.pallas import tpu as pltpu

# ---------------- small synthetic CLIP-ViT config ----------------
IN_CH = 3
IMG = 16                      # image_resolution
PATCH = 4                     # conv1 kernel = stride = PATCH, bias=False
GRID = IMG // PATCH
SEQ = GRID * GRID + 1         # +1 class token
WIDTH = 32                    # transformer width
HEADS = 4
HEAD_DIM = WIDTH // HEADS
LAYERS = 2
EMBED_DIM = 16                # CLIP visual projection dim
N_CLASS = 10                  # cls_head output classes
LANE_PAD = 128                # lane-dense padding for the classifier output
LN_EPS = 1e-5
NEG_INF = -1e30               # additive attention-mask value (exp underflows to 0)


# ---------------- fused encoder kernel (whole batch, one grid step) ----------------

def _encoder_kernel(patches_ref, mask_ref, conv_w_ref, tok_bias_ref,
                    ln_pre_g_ref, ln_pre_b_ref,
                    ln1_g_ref, ln1_b_ref, in_w_ref, in_b_ref,
                    out_w_ref, out_b_ref, ln2_g_ref, ln2_b_ref,
                    fc1_w_ref, fc1_b_ref, fc2_w_ref, fc2_b_ref,
                    ln_post_g_ref, ln_post_b_ref, proj_ref,
                    cls_w_ref, cls_b_ref, o_ref):
    f32 = jnp.float32

    def ln(x, g, b):
        mu = jnp.mean(x, axis=-1, keepdims=True)
        var = jnp.mean(jnp.square(x - mu), axis=-1, keepdims=True)
        return (x - mu) * lax.rsqrt(var + LN_EPS) * g + b

    def mm_t(x, w):
        # x @ w.T without materializing a transpose: contract dim 1 with dim 1.
        return lax.dot_general(x, w, (((1,), (1,)), ((), ())),
                               preferred_element_type=f32)

    # ---- patch embedding (conv1 as matmul) + class token + positional emb ----
    patches = patches_ref[...].astype(f32)                  # [B*SEQ, PD]; cls rows are zero
    mask = mask_ref[...]                                    # [B*SEQ, B*SEQ] additive mask
    x = mm_t(patches, conv_w_ref[...].astype(f32))          # [B*SEQ, WIDTH]
    x = x + tok_bias_ref[...]                               # cls token folded into cls rows

    # ---- ln_pre ----
    x = ln(x, ln_pre_g_ref[...], ln_pre_b_ref[...])

    n_tok = x.shape[0]
    scale = 1.0 / (HEAD_DIM ** 0.5)
    for l in range(LAYERS):                                  # static unroll over layers
        # --- multi-head self-attention branch ---
        y = ln(x, ln1_g_ref[l], ln1_b_ref[l])
        qkv = mm_t(y, in_w_ref[l]) + in_b_ref[l]             # [B*SEQ, 3*WIDTH]
        q = qkv[:, 0:WIDTH] * scale
        k = qkv[:, WIDTH:2 * WIDTH]
        v = qkv[:, 2 * WIDTH:3 * WIDTH]
        out_w = out_w_ref[l]                                 # [WIDTH, WIDTH]

        acc = jnp.zeros((n_tok, WIDTH), f32)
        for h in range(HEADS):                               # static per-head loop
            sl = slice(h * HEAD_DIM, (h + 1) * HEAD_DIM)
            qh, kh, vh = q[:, sl], k[:, sl], v[:, sl]
            s = lax.dot_general(qh, kh, (((1,), (1,)), ((), ())),
                                preferred_element_type=f32)  # [B*SEQ, B*SEQ]
            s = s + mask                                     # block-diagonal per-sample
            s = s - jnp.max(s, axis=-1, keepdims=True)
            p = jnp.exp(s)
            p = p * pl.reciprocal(jnp.sum(p, axis=-1, keepdims=True), approx=True)
            oh = jnp.dot(p, vh, preferred_element_type=f32)  # [B*SEQ, HEAD_DIM]
            # fold this head straight into the out_proj: oh @ out_w[:, sl].T
            acc = acc + mm_t(oh, out_w[:, sl])               # [B*SEQ, WIDTH]
        x = x + acc + out_b_ref[l]                           # residual

        # --- MLP branch (QuickGELU) ---
        y = ln(x, ln2_g_ref[l], ln2_b_ref[l])
        h1 = mm_t(y, fc1_w_ref[l]) + fc1_b_ref[l]            # [B*SEQ, 4*WIDTH]
        h1 = h1 * jax.nn.sigmoid(1.702 * h1)                 # QuickGELU
        h2 = mm_t(h1, fc2_w_ref[l]) + fc2_b_ref[l]           # [B*SEQ, WIDTH]
        x = x + h2                                           # residual

    # ---- ln_post, visual projection, cls_head (all tokens; per-row ops, so the
    # class-token rows are exact; extra rows are free under one MXU tile and the
    # wrapper slices them away).  Output is a lane-dense [B*SEQ, 128] store. ----
    xp = ln(x, ln_post_g_ref[...], ln_post_b_ref[...])                  # [B*SEQ, WIDTH]
    feats = jnp.dot(xp, proj_ref[...], preferred_element_type=f32)      # [B*SEQ, EMBED_DIM]
    logits = mm_t(feats, cls_w_ref[...]) + cls_b_ref[...]               # [B*SEQ, LANE_PAD]
    o_ref[...] = logits.astype(o_ref.dtype)


# ---------------- parameters (deterministic, synthetic) ----------------
# Per-layer weights are stacked on a leading layer axis and kept in their
# PyTorch orientation (nn.Linear weight [out, in]); the kernel contracts the
# correct axis, so no transposes are ever needed at forward time.

def init_params(key):
    keys = iter(jax.random.split(key, 32))

    def nrm(shape, scale=0.02):
        return scale * jax.random.normal(next(keys), shape, dtype=jnp.float32)

    L = LAYERS
    return {
        "conv1_w": nrm((WIDTH, IN_CH, PATCH, PATCH)),            # Conv2d, bias=False
        "class_embedding": nrm((WIDTH,)),
        "positional_embedding": nrm((SEQ, WIDTH)),
        "ln_pre_g": jnp.ones((WIDTH,), jnp.float32),
        "ln_pre_b": jnp.zeros((WIDTH,), jnp.float32),
        "ln_post_g": jnp.ones((WIDTH,), jnp.float32),
        "ln_post_b": jnp.zeros((WIDTH,), jnp.float32),
        "proj": nrm((WIDTH, EMBED_DIM)),                         # visual projection
        "cls_head_w": nrm((N_CLASS, EMBED_DIM)),                 # nn.Linear(embed_dim, n_class)
        "cls_head_b": jnp.zeros((N_CLASS,), jnp.float32),
        # stacked per-layer weights
        "ln1_g": jnp.ones((L, 1, WIDTH), jnp.float32),
        "ln1_b": jnp.zeros((L, 1, WIDTH), jnp.float32),
        "in_proj_w": nrm((L, 3 * WIDTH, WIDTH)),                 # MHA in_proj (q,k,v stacked)
        "in_proj_b": jnp.zeros((L, 1, 3 * WIDTH), jnp.float32),
        "out_proj_w": nrm((L, WIDTH, WIDTH)),
        "out_proj_b": jnp.zeros((L, 1, WIDTH), jnp.float32),
        "ln2_g": jnp.ones((L, 1, WIDTH), jnp.float32),
        "ln2_b": jnp.zeros((L, 1, WIDTH), jnp.float32),
        "fc1_w": nrm((L, 4 * WIDTH, WIDTH)),
        "fc1_b": jnp.zeros((L, 1, 4 * WIDTH), jnp.float32),
        "fc2_w": nrm((L, WIDTH, 4 * WIDTH)),
        "fc2_b": jnp.zeros((L, 1, WIDTH), jnp.float32),
    }


# ---------------- forward pass ----------------

def clip_image_encoder_forward(image, params):
    # layout: image NCHW [B, 3, H, W] (same as PyTorch conv input).
    B, C, H, W = image.shape
    PD = C * PATCH * PATCH
    BSEQ = B * SEQ

    # conv1 (kernel=stride=PATCH, no bias) == patch extraction + matmul.  Pure
    # layout plumbing done once in XLA; a zero row is prepended per sample for
    # the class-token slot so the kernel folds "prepend cls + add pos" into one
    # bias add.  Batch is flattened into the token axis.
    p = image.reshape(B, C, GRID, PATCH, GRID, PATCH)
    p = p.transpose(0, 2, 4, 1, 3, 5).reshape(B, GRID * GRID, PD)
    patches = jnp.pad(p, ((0, 0), (1, 0), (0, 0))).reshape(BSEQ, PD)   # [B*SEQ, PD]

    conv_w = params["conv1_w"].reshape(WIDTH, PD)                      # [WIDTH, PD]
    tok_bias = params["positional_embedding"].at[0].add(params["class_embedding"])
    tok_bias = jnp.tile(tok_bias, (B, 1))                              # [B*SEQ, WIDTH]

    # Block-diagonal additive mask: tokens only attend within their own sample.
    seg = jnp.repeat(jnp.arange(B, dtype=jnp.int32), SEQ)
    attn_mask = jnp.where(seg[:, None] == seg[None, :], 0.0, NEG_INF).astype(jnp.float32)

    # classifier padded to 128 lanes (lane-dense store); extra logits are zero.
    cls_w_pad = (jnp.zeros((LANE_PAD, EMBED_DIM), jnp.float32)
                 .at[:N_CLASS].set(params["cls_head_w"]))
    cls_b_pad = (jnp.zeros((1, LANE_PAD), jnp.float32)
                 .at[0, :N_CLASS].set(params["cls_head_b"]))

    weights = (
        conv_w, tok_bias,
        params["ln_pre_g"].reshape(1, WIDTH), params["ln_pre_b"].reshape(1, WIDTH),
        params["ln1_g"], params["ln1_b"],
        params["in_proj_w"], params["in_proj_b"],
        params["out_proj_w"], params["out_proj_b"],
        params["ln2_g"], params["ln2_b"],
        params["fc1_w"], params["fc1_b"],
        params["fc2_w"], params["fc2_b"],
        params["ln_post_g"].reshape(1, WIDTH), params["ln_post_b"].reshape(1, WIDTH),
        params["proj"], cls_w_pad, cls_b_pad,
    )

    def full_spec(a):  # full-array block, constant index (single grid step)
        if a.ndim == 2:
            return pl.BlockSpec(a.shape, lambda i: (0, 0))
        return pl.BlockSpec(a.shape, lambda i: (0, 0, 0))

    out = pl.pallas_call(
        _encoder_kernel,
        out_shape=jax.ShapeDtypeStruct((BSEQ, LANE_PAD), jnp.float32),
        grid=(1,),
        in_specs=[full_spec(patches), full_spec(attn_mask)]
                 + [full_spec(a) for a in weights],
        out_specs=pl.BlockSpec((BSEQ, LANE_PAD), lambda i: (0, 0)),
        compiler_params=pltpu.CompilerParams(dimension_semantics=("arbitrary",)),
    )(patches, attn_mask, *weights)

    # take the class-token row of each sample and drop lane padding.
    return out.reshape(B, SEQ, LANE_PAD)[:, 0, :N_CLASS]               # [B, N_CLASS]


if __name__ == "__main__":
    key = jax.random.PRNGKey(0)
    pkey, ikey = jax.random.split(key)
    params = init_params(pkey)
    image = jax.random.normal(ikey, (2, IN_CH, IMG, IMG), dtype=jnp.float32)

    out = jax.jit(clip_image_encoder_forward)(image, params)
    out = jax.block_until_ready(out)
    assert out.shape == (2, N_CLASS) and out.dtype == jnp.float32
    print("KERNEL_OK")
</pallas_src>

<mosaic_0001>
module attributes {stable_mosaic.version = 11 : i64} {
  func.func @_encoder_kernel(%arg0: i32, %arg1: memref<34x48xf32, #tpu.memory_space<vmem>>, %arg2: memref<34x34xf32, #tpu.memory_space<vmem>>, %arg3: memref<32x48xf32, #tpu.memory_space<vmem>>, %arg4: memref<34x32xf32, #tpu.memory_space<vmem>>, %arg5: memref<1x32xf32, #tpu.memory_space<vmem>>, %arg6: memref<1x32xf32, #tpu.memory_space<vmem>>, %arg7: memref<2x1x32xf32, #tpu.memory_space<vmem>>, %arg8: memref<2x1x32xf32, #tpu.memory_space<vmem>>, %arg9: memref<2x96x32xf32, #tpu.memory_space<vmem>>, %arg10: memref<2x1x96xf32, #tpu.memory_space<vmem>>, %arg11: memref<2x32x32xf32, #tpu.memory_space<vmem>>, %arg12: memref<2x1x32xf32, #tpu.memory_space<vmem>>, %arg13: memref<2x1x32xf32, #tpu.memory_space<vmem>>, %arg14: memref<2x1x32xf32, #tpu.memory_space<vmem>>, %arg15: memref<2x128x32xf32, #tpu.memory_space<vmem>>, %arg16: memref<2x1x128xf32, #tpu.memory_space<vmem>>, %arg17: memref<2x32x128xf32, #tpu.memory_space<vmem>>, %arg18: memref<2x1x32xf32, #tpu.memory_space<vmem>>, %arg19: memref<1x32xf32, #tpu.memory_space<vmem>>, %arg20: memref<1x32xf32, #tpu.memory_space<vmem>>, %arg21: memref<32x16xf32, #tpu.memory_space<vmem>>, %arg22: memref<128x16xf32, #tpu.memory_space<vmem>>, %arg23: memref<1x128xf32, #tpu.memory_space<vmem>>, %arg24: memref<34x128xf32, #tpu.memory_space<vmem>>) attributes {dimension_semantics = [#tpu.dimension_semantics<arbitrary>], iteration_bounds = array<i64: 1>, scalar_prefetch = 0 : i64, scratch_operands = 0 : i64, tpu.core_type = #tpu.core_type<tc>, window_params = [{pipeline_mode = #tpu.pipeline_mode<synchronous>, transform_indices = @transform_0, window_bounds = array<i64: 34, 48>}, {pipeline_mode = #tpu.pipeline_mode<synchronous>, transform_indices = @transform_1, window_bounds = array<i64: 34, 34>}, {pipeline_mode = #tpu.pipeline_mode<synchronous>, transform_indices = @transform_2, window_bounds = array<i64: 32, 48>}, {pipeline_mode = #tpu.pipeline_mode<synchronous>, transform_indices = @transform_3, window_bounds = array<i64: 34, 32>}, {pipeline_mode = #tpu.pipeline_mode<synchronous>, transform_indices = @transform_4, window_bounds = array<i64: 1, 32>}, {pipeline_mode = #tpu.pipeline_mode<synchronous>, transform_indices = @transform_5, window_bounds = array<i64: 1, 32>}, {pipeline_mode = #tpu.pipeline_mode<synchronous>, transform_indices = @transform_6, window_bounds = array<i64: 2, 1, 32>}, {pipeline_mode = #tpu.pipeline_mode<synchronous>, transform_indices = @transform_7, window_bounds = array<i64: 2, 1, 32>}, {pipeline_mode = #tpu.pipeline_mode<synchronous>, transform_indices = @transform_8, window_bounds = array<i64: 2, 96, 32>}, {pipeline_mode = #tpu.pipeline_mode<synchronous>, transform_indices = @transform_9, window_bounds = array<i64: 2, 1, 96>}, {pipeline_mode = #tpu.pipeline_mode<synchronous>, transform_indices = @transform_10, window_bounds = array<i64: 2, 32, 32>}, {pipeline_mode = #tpu.pipeline_mode<synchronous>, transform_indices = @transform_11, window_bounds = array<i64: 2, 1, 32>}, {pipeline_mode = #tpu.pipeline_mode<synchronous>, transform_indices = @transform_12, window_bounds = array<i64: 2, 1, 32>}, {pipeline_mode = #tpu.pipeline_mode<synchronous>, transform_indices = @transform_13, window_bounds = array<i64: 2, 1, 32>}, {pipeline_mode = #tpu.pipeline_mode<synchronous>, transform_indices = @transform_14, window_bounds = array<i64: 2, 128, 32>}, {pipeline_mode = #tpu.pipeline_mode<synchronous>, transform_indices = @transform_15, window_bounds = array<i64: 2, 1, 128>}, {pipeline_mode = #tpu.pipeline_mode<synchronous>, transform_indices = @transform_16, window_bounds = array<i64: 2, 32, 128>}, {pipeline_mode = #tpu.pipeline_mode<synchronous>, transform_indices = @transform_17, window_bounds = array<i64: 2, 1, 32>}, {pipeline_mode = #tpu.pipeline_mode<synchronous>, transform_indices = @transform_18, window_bounds = array<i64: 1, 32>}, {pipeline_mode = #tpu.pipeline_mode<synchronous>, transform_indices = @transform_19, window_bounds = array<i64: 1, 32>}, {pipeline_mode = #tpu.pipeline_mode<synchronous>, transform_indices = @transform_20, window_bounds = array<i64: 32, 16>}, {pipeline_mode = #tpu.pipeline_mode<synchronous>, transform_indices = @transform_21, window_bounds = array<i64: 128, 16>}, {pipeline_mode = #tpu.pipeline_mode<synchronous>, transform_indices = @transform_22, window_bounds = array<i64: 1, 128>}, {pipeline_mode = #tpu.pipeline_mode<synchronous>, transform_indices = @transform_23, window_bounds = array<i64: 34, 128>}]} {
    %c0 = arith.constant 0 : index
    %c0_0 = arith.constant 0 : index
    %0 = vector.load %arg1[%c0, %c0_0] : memref<34x48xf32, #tpu.memory_space<vmem>>, vector<34x48xf32>
    %c0_1 = arith.constant 0 : index
    %c0_2 = arith.constant 0 : index
    %1 = vector.load %arg2[%c0_1, %c0_2] : memref<34x34xf32, #tpu.memory_space<vmem>>, vector<34x34xf32>
    %c0_3 = arith.constant 0 : index
    %c0_4 = arith.constant 0 : index
    %2 = vector.load %arg3[%c0_3, %c0_4] : memref<32x48xf32, #tpu.memory_space<vmem>>, vector<32x48xf32>
    %cst = arith.constant dense<0.000000e+00> : vector<34x32xf32>
    %3 = tpu.matmul %0, %2, %cst {dimension_numbers = #tpu.dot_dimension_numbers<[1], [1], [0], [0], [0, 0, 1, 0], [], []>} : vector<34x48xf32>, vector<32x48xf32>, vector<34x32xf32> -> vector<34x32xf32>
    %c0_5 = arith.constant 0 : index
    %c0_6 = arith.constant 0 : index
    %4 = vector.load %arg4[%c0_5, %c0_6] : memref<34x32xf32, #tpu.memory_space<vmem>>, vector<34x32xf32>
    %5 = arith.addf %3, %4 : vector<34x32xf32>
    %c0_7 = arith.constant 0 : index
    %c0_8 = arith.constant 0 : index
    %6 = vector.load %arg5[%c0_7, %c0_8] : memref<1x32xf32, #tpu.memory_space<vmem>>, vector<1x32xf32>
    %c0_9 = arith.constant 0 : index
    %c0_10 = arith.constant 0 : index
    %7 = vector.load %arg6[%c0_9, %c0_10] : memref<1x32xf32, #tpu.memory_space<vmem>>, vector<1x32xf32>
    %cst_11 = arith.constant dense<0.000000e+00> : vector<34xf32>
    %8 = vector.multi_reduction <add>, %5, %cst_11 [1] : vector<34x32xf32> to vector<34xf32>
    %9 = vector.shape_cast %8 : vector<34xf32> to vector<34x1xf32>
    %cst_12 = arith.constant 3.200000e+01 : f32
    %10 = vector.broadcast %cst_12 : f32 to vector<34x1xf32>
    %11 = arith.divf %9, %10 : vector<34x1xf32>
    %12 = vector.broadcast %11 : vector<34x1xf32> to vector<34x32xf32>
    %13 = arith.subf %5, %12 : vector<34x32xf32>
    %14 = arith.mulf %13, %13 : vector<34x32xf32>
    %cst_13 = arith.constant dense<0.000000e+00> : vector<34xf32>
    %15 = vector.multi_reduction <add>, %14, %cst_13 [1] : vector<34x32xf32> to vector<34xf32>
    %16 = vector.shape_cast %15 : vector<34xf32> to vector<34x1xf32>
    %cst_14 = arith.constant 3.200000e+01 : f32
    %17 = vector.broadcast %cst_14 : f32 to vector<34x1xf32>
    %18 = arith.divf %16, %17 : vector<34x1xf32>
    %19 = vector.broadcast %11 : vector<34x1xf32> to vector<34x32xf32>
    %20 = arith.subf %5, %19 : vector<34x32xf32>
    %cst_15 = arith.constant 9.99999974E-6 : f32
    %21 = vector.broadcast %cst_15 : f32 to vector<34x1xf32>
    %22 = arith.addf %18, %21 : vector<34x1xf32>
    %23 = math.rsqrt %22 : vector<34x1xf32>
    %24 = vector.broadcast %23 : vector<34x1xf32> to vector<34x32xf32>
    %25 = arith.mulf %20, %24 : vector<34x32xf32>
    %26 = vector.broadcast %6 : vector<1x32xf32> to vector<34x32xf32>
    %27 = arith.mulf %25, %26 : vector<34x32xf32>
    %28 = vector.broadcast %7 : vector<1x32xf32> to vector<34x32xf32>
    %29 = arith.addf %27, %28 : vector<34x32xf32>
    %c0_16 = arith.constant 0 : index
    %c0_17 = arith.constant 0 : index
    %c0_18 = arith.constant 0 : index
    %30 = vector.load %arg7[%c0_16, %c0_17, %c0_18] : memref<2x1x32xf32, #tpu.memory_space<vmem>>, vector<1x1x32xf32>
    %31 = vector.shape_cast %30 : vector<1x1x32xf32> to vector<1x32xf32>
    %c0_19 = arith.constant 0 : index
    %c0_20 = arith.constant 0 : index
    %c0_21 = arith.constant 0 : index
    %32 = vector.load %arg8[%c0_19, %c0_20, %c0_21] : memref<2x1x32xf32, #tpu.memory_space<vmem>>, vector<1x1x32xf32>
    %33 = vector.shape_cast %32 : vector<1x1x32xf32> to vector<1x32xf32>
    %cst_22 = arith.constant dense<0.000000e+00> : vector<34xf32>
    %34 = vector.multi_reduction <add>, %29, %cst_22 [1] : vector<34x32xf32> to vector<34xf32>
    %35 = vector.shape_cast %34 : vector<34xf32> to vector<34x1xf32>
    %cst_23 = arith.constant 3.200000e+01 : f32
    %36 = vector.broadcast %cst_23 : f32 to vector<34x1xf32>
    %37 = arith.divf %35, %36 : vector<34x1xf32>
    %38 = vector.broadcast %37 : vector<34x1xf32> to vector<34x32xf32>
    %39 = arith.subf %29, %38 : vector<34x32xf32>
    %40 = arith.mulf %39, %39 : vector<34x32xf32>
    %cst_24 = arith.constant dense<0.000000e+00> : vector<34xf32>
    %41 = vector.multi_reduction <add>, %40, %cst_24 [1] : vector<34x32xf32> to vector<34xf32>
    %42 = vector.shape_cast %41 : vector<34xf32> to vector<34x1xf32>
    %cst_25 = arith.constant 3.200000e+01 : f32
    %43 = vector.broadcast %cst_25 : f32 to vector<34x1xf32>
    %44 = arith.divf %42, %43 : vector<34x1xf32>
    %45 = vector.broadcast %37 : vector<34x1xf32> to vector<34x32xf32>
    %46 = arith.subf %29, %45 : vector<34x32xf32>
    %cst_26 = arith.constant 9.99999974E-6 : f32
    %47 = vector.broadcast %cst_26 : f32 to vector<34x1xf32>
    %48 = arith.addf %44, %47 : vector<34x1xf32>
    %49 = math.rsqrt %48 : vector<34x1xf32>
    %50 = vector.broadcast %49 : vector<34x1xf32> to vector<34x32xf32>
    %51 = arith.mulf %46, %50 : vector<34x32xf32>
    %52 = vector.broadcast %31 : vector<1x32xf32> to vector<34x32xf32>
    %53 = arith.mulf %51, %52 : vector<34x32xf32>
    %54 = vector.broadcast %33 : vector<1x32xf32> to vector<34x32xf32>
    %55 = arith.addf %53, %54 : vector<34x32xf32>
    %c0_27 = arith.constant 0 : index
    %c0_28 = arith.constant 0 : index
    %c0_29 = arith.constant 0 : index
    %56 = vector.load %arg9[%c0_27, %c0_28, %c0_29] : memref<2x96x32xf32, #tpu.memory_space<vmem>>, vector<1x96x32xf32>
    %57 = vector.shape_cast %56 : vector<1x96x32xf32> to vector<96x32xf32>
    %cst_30 = arith.constant dense<0.000000e+00> : vector<34x96xf32>
    %58 = tpu.matmul %55, %57, %cst_30 {dimension_numbers = #tpu.dot_dimension_numbers<[1], [1], [0], [0], [0, 0, 1, 0], [], []>} : vector<34x32xf32>, vector<96x32xf32>, vector<34x96xf32> -> vector<34x96xf32>
    %c0_31 = arith.constant 0 : index
    %c0_32 = arith.constant 0 : index
    %c0_33 = arith.constant 0 : index
    %59 = vector.load %arg10[%c0_31, %c0_32, %c0_33] : memref<2x1x96xf32, #tpu.memory_space<vmem>>, vector<1x1x96xf32>
    %60 = vector.shape_cast %59 : vector<1x1x96xf32> to vector<1x96xf32>
    %61 = vector.broadcast %60 : vector<1x96xf32> to vector<34x96xf32>
    %62 = arith.addf %58, %61 : vector<34x96xf32>
    %63 = vector.extract_strided_slice %62 {offsets = [0, 0], sizes = [34, 32], strides = [1, 1]} : vector<34x96xf32> to vector<34x32xf32>
    %cst_34 = arith.constant 0.353553385 : f32
    %64 = vector.broadcast %cst_34 : f32 to vector<34x32xf32>
    %65 = arith.mulf %63, %64 : vector<34x32xf32>
    %66 = vector.extract_strided_slice %62 {offsets = [0, 32], sizes = [34, 32], strides = [1, 1]} : vector<34x96xf32> to vector<34x32xf32>
    %67 = vector.extract_strided_slice %62 {offsets = [0, 64], sizes = [34, 32], strides = [1, 1]} : vector<34x96xf32> to vector<34x32xf32>
    %c0_35 = arith.constant 0 : index
    %c0_36 = arith.constant 0 : index
    %c0_37 = arith.constant 0 : index
    %68 = vector.load %arg11[%c0_35, %c0_36, %c0_37] : memref<2x32x32xf32, #tpu.memory_space<vmem>>, vector<1x32x32xf32>
    %69 = vector.shape_cast %68 : vector<1x32x32xf32> to vector<32x32xf32>
    %cst_38 = arith.constant 0.000000e+00 : f32
    %70 = vector.broadcast %cst_38 : f32 to vector<34x32xf32>
    %71 = vector.extract_strided_slice %65 {offsets = [0, 0], sizes = [34, 8], strides = [1, 1]} : vector<34x32xf32> to vector<34x8xf32>
    %72 = vector.extract_strided_slice %66 {offsets = [0, 0], sizes = [34, 8], strides = [1, 1]} : vector<34x32xf32> to vector<34x8xf32>
    %73 = vector.extract_strided_slice %67 {offsets = [0, 0], sizes = [34, 8], strides = [1, 1]} : vector<34x32xf32> to vector<34x8xf32>
    %cst_39 = arith.constant dense<0.000000e+00> : vector<34x34xf32>
    %74 = tpu.matmul %71, %72, %cst_39 {dimension_numbers = #tpu.dot_dimension_numbers<[1], [1], [0], [0], [0, 0, 1, 0], [], []>} : vector<34x8xf32>, vector<34x8xf32>, vector<34x34xf32> -> vector<34x34xf32>
    %75 = arith.addf %74, %1 : vector<34x34xf32>
    %cst_40 = arith.constant dense<0xFF800000> : vector<34xf32>
    %76 = vector.multi_reduction <maximumf>, %75, %cst_40 [1] : vector<34x34xf32> to vector<34xf32>
    %77 = vector.shape_cast %76 : vector<34xf32> to vector<34x1xf32>
    %78 = vector.broadcast %77 : vector<34x1xf32> to vector<34x34xf32>
    %79 = arith.subf %75, %78 : vector<34x34xf32>
    %80 = math.exp %79 : vector<34x34xf32>
    %cst_41 = arith.constant dense<0.000000e+00> : vector<34xf32>
    %81 = vector.multi_reduction <add>, %80, %cst_41 [1] : vector<34x34xf32> to vector<34xf32>
    %82 = vector.shape_cast %81 : vector<34xf32> to vector<34x1xf32>
    %83 = tpu.reciprocal %82 {approx = true} : vector<34x1xf32> -> vector<34x1xf32>
    %84 = vector.broadcast %83 : vector<34x1xf32> to vector<34x34xf32>
    %85 = arith.mulf %80, %84 : vector<34x34xf32>
    %cst_42 = arith.constant dense<0.000000e+00> : vector<34x8xf32>
    %86 = tpu.matmul %85, %73, %cst_42 {dimension_numbers = #tpu.dot_dimension_numbers<[1], [0], [0], [1], [0, 0, 1, 1], [], []>} : vector<34x34xf32>, vector<34x8xf32>, vector<34x8xf32> -> vector<34x8xf32>
    %87 = vector.extract_strided_slice %69 {offsets = [0, 0], sizes = [32, 8], strides = [1, 1]} : vector<32x32xf32> to vector<32x8xf32>
    %cst_43 = arith.constant dense<0.000000e+00> : vector<34x32xf32>
    %88 = tpu.matmul %86, %87, %cst_43 {dimension_numbers = #tpu.dot_dimension_numbers<[1], [1], [0], [0], [0, 0, 1, 0], [], []>} : vector<34x8xf32>, vector<32x8xf32>, vector<34x32xf32> -> vector<34x32xf32>
    %89 = arith.addf %70, %88 : vector<34x32xf32>
    %90 = vector.extract_strided_slice %65 {offsets = [0, 8], sizes = [34, 8], strides = [1, 1]} : vector<34x32xf32> to vector<34x8xf32>
    %91 = vector.extract_strided_slice %66 {offsets = [0, 8], sizes = [34, 8], strides = [1, 1]} : vector<34x32xf32> to vector<34x8xf32>
    %92 = vector.extract_strided_slice %67 {offsets = [0, 8], sizes = [34, 8], strides = [1, 1]} : vector<34x32xf32> to vector<34x8xf32>
    %cst_44 = arith.constant dense<0.000000e+00> : vector<34x34xf32>
    %93 = tpu.matmul %90, %91, %cst_44 {dimension_numbers = #tpu.dot_dimension_numbers<[1], [1], [0], [0], [0, 0, 1, 0], [], []>} : vector<34x8xf32>, vector<34x8xf32>, vector<34x34xf32> -> vector<34x34xf32>
    %94 = arith.addf %93, %1 : vector<34x34xf32>
    %cst_45 = arith.constant dense<0xFF800000> : vector<34xf32>
    %95 = vector.multi_reduction <maximumf>, %94, %cst_45 [1] : vector<34x34xf32> to vector<34xf32>
    %96 = vector.shape_cast %95 : vector<34xf32> to vector<34x1xf32>
    %97 = vector.broadcast %96 : vector<34x1xf32> to vector<34x34xf32>
    %98 = arith.subf %94, %97 : vector<34x34xf32>
    %99 = math.exp %98 : vector<34x34xf32>
    %cst_46 = arith.constant dense<0.000000e+00> : vector<34xf32>
    %100 = vector.multi_reduction <add>, %99, %cst_46 [1] : vector<34x34xf32> to vector<34xf32>
    %101 = vector.shape_cast %100 : vector<34xf32> to vector<34x1xf32>
    %102 = tpu.reciprocal %101 {approx = true} : vector<34x1xf32> -> vector<34x1xf32>
    %103 = vector.broadcast %102 : vector<34x1xf32> to vector<34x34xf32>
    %104 = arith.mulf %99, %103 : vector<34x34xf32>
    %cst_47 = arith.constant dense<0.000000e+00> : vector<34x8xf32>
    %105 = tpu.matmul %104, %92, %cst_47 {dimension_numbers = #tpu.dot_dimension_numbers<[1], [0], [0], [1], [0, 0, 1, 1], [], []>} : vector<34x34xf32>, vector<34x8xf32>, vector<34x8xf32> -> vector<34x8xf32>
    %106 = vector.extract_strided_slice %69 {offsets = [0, 8], sizes = [32, 8], strides = [1, 1]} : vector<32x32xf32> to vector<32x8xf32>
    %cst_48 = arith.constant dense<0.000000e+00> : vector<34x32xf32>
    %107 = tpu.matmul %105, %106, %cst_48 {dimension_numbers = #tpu.dot_dimension_numbers<[1], [1], [0], [0], [0, 0, 1, 0], [], []>} : vector<34x8xf32>, vector<32x8xf32>, vector<34x32xf32> -> vector<34x32xf32>
    %108 = arith.addf %89, %107 : vector<34x32xf32>
    %109 = vector.extract_strided_slice %65 {offsets = [0, 16], sizes = [34, 8], strides = [1, 1]} : vector<34x32xf32> to vector<34x8xf32>
    %110 = vector.extract_strided_slice %66 {offsets = [0, 16], sizes = [34, 8], strides = [1, 1]} : vector<34x32xf32> to vector<34x8xf32>
    %111 = vector.extract_strided_slice %67 {offsets = [0, 16], sizes = [34, 8], strides = [1, 1]} : vector<34x32xf32> to vector<34x8xf32>
    %cst_49 = arith.constant dense<0.000000e+00> : vector<34x34xf32>
    %112 = tpu.matmul %109, %110, %cst_49 {dimension_numbers = #tpu.dot_dimension_numbers<[1], [1], [0], [0], [0, 0, 1, 0], [], []>} : vector<34x8xf32>, vector<34x8xf32>, vector<34x34xf32> -> vector<34x34xf32>
    %113 = arith.addf %112, %1 : vector<34x34xf32>
    %cst_50 = arith.constant dense<0xFF800000> : vector<34xf32>
    %114 = vector.multi_reduction <maximumf>, %113, %cst_50 [1] : vector<34x34xf32> to vector<34xf32>
    %115 = vector.shape_cast %114 : vector<34xf32> to vector<34x1xf32>
    %116 = vector.broadcast %115 : vector<34x1xf32> to vector<34x34xf32>
    %117 = arith.subf %113, %116 : vector<34x34xf32>
    %118 = math.exp %117 : vector<34x34xf32>
    %cst_51 = arith.constant dense<0.000000e+00> : vector<34xf32>
    %119 = vector.multi_reduction <add>, %118, %cst_51 [1] : vector<34x34xf32> to vector<34xf32>
    %120 = vector.shape_cast %119 : vector<34xf32> to vector<34x1xf32>
    %121 = tpu.reciprocal %120 {approx = true} : vector<34x1xf32> -> vector<34x1xf32>
    %122 = vector.broadcast %121 : vector<34x1xf32> to vector<34x34xf32>
    %123 = arith.mulf %118, %122 : vector<34x34xf32>
    %cst_52 = arith.constant dense<0.000000e+00> : vector<34x8xf32>
    %124 = tpu.matmul %123, %111, %cst_52 {dimension_numbers = #tpu.dot_dimension_numbers<[1], [0], [0], [1], [0, 0, 1, 1], [], []>} : vector<34x34xf32>, vector<34x8xf32>, vector<34x8xf32> -> vector<34x8xf32>
    %125 = vector.extract_strided_slice %69 {offsets = [0, 16], sizes = [32, 8], strides = [1, 1]} : vector<32x32xf32> to vector<32x8xf32>
    %cst_53 = arith.constant dense<0.000000e+00> : vector<34x32xf32>
    %126 = tpu.matmul %124, %125, %cst_53 {dimension_numbers = #tpu.dot_dimension_numbers<[1], [1], [0], [0], [0, 0, 1, 0], [], []>} : vector<34x8xf32>, vector<32x8xf32>, vector<34x32xf32> -> vector<34x32xf32>
    %127 = arith.addf %108, %126 : vector<34x32xf32>
    %128 = vector.extract_strided_slice %65 {offsets = [0, 24], sizes = [34, 8], strides = [1, 1]} : vector<34x32xf32> to vector<34x8xf32>
    %129 = vector.extract_strided_slice %66 {offsets = [0, 24], sizes = [34, 8], strides = [1, 1]} : vector<34x32xf32> to vector<34x8xf32>
    %130 = vector.extract_strided_slice %67 {offsets = [0, 24], sizes = [34, 8], strides = [1, 1]} : vector<34x32xf32> to vector<34x8xf32>
    %cst_54 = arith.constant dense<0.000000e+00> : vector<34x34xf32>
    %131 = tpu.matmul %128, %129, %cst_54 {dimension_numbers = #tpu.dot_dimension_numbers<[1], [1], [0], [0], [0, 0, 1, 0], [], []>} : vector<34x8xf32>, vector<34x8xf32>, vector<34x34xf32> -> vector<34x34xf32>
    %132 = arith.addf %131, %1 : vector<34x34xf32>
    %cst_55 = arith.constant dense<0xFF800000> : vector<34xf32>
    %133 = vector.multi_reduction <maximumf>, %132, %cst_55 [1] : vector<34x34xf32> to vector<34xf32>
    %134 = vector.shape_cast %133 : vector<34xf32> to vector<34x1xf32>
    %135 = vector.broadcast %134 : vector<34x1xf32> to vector<34x34xf32>
    %136 = arith.subf %132, %135 : vector<34x34xf32>
    %137 = math.exp %136 : vector<34x34xf32>
    %cst_56 = arith.constant dense<0.000000e+00> : vector<34xf32>
    %138 = vector.multi_reduction <add>, %137, %cst_56 [1] : vector<34x34xf32> to vector<34xf32>
    %139 = vector.shape_cast %138 : vector<34xf32> to vector<34x1xf32>
    %140 = tpu.reciprocal %139 {approx = true} : vector<34x1xf32> -> vector<34x1xf32>
    %141 = vector.broadcast %140 : vector<34x1xf32> to vector<34x34xf32>
    %142 = arith.mulf %137, %141 : vector<34x34xf32>
    %cst_57 = arith.constant dense<0.000000e+00> : vector<34x8xf32>
    %143 = tpu.matmul %142, %130, %cst_57 {dimension_numbers = #tpu.dot_dimension_numbers<[1], [0], [0], [1], [0, 0, 1, 1], [], []>} : vector<34x34xf32>, vector<34x8xf32>, vector<34x8xf32> -> vector<34x8xf32>
    %144 = vector.extract_strided_slice %69 {offsets = [0, 24], sizes = [32, 8], strides = [1, 1]} : vector<32x32xf32> to vector<32x8xf32>
    %cst_58 = arith.constant dense<0.000000e+00> : vector<34x32xf32>
    %145 = tpu.matmul %143, %144, %cst_58 {dimension_numbers = #tpu.dot_dimension_numbers<[1], [1], [0], [0], [0, 0, 1, 0], [], []>} : vector<34x8xf32>, vector<32x8xf32>, vector<34x32xf32> -> vector<34x32xf32>
    %146 = arith.addf %127, %145 : vector<34x32xf32>
    %147 = arith.addf %29, %146 : vector<34x32xf32>
    %c0_59 = arith.constant 0 : index
    %c0_60 = arith.constant 0 : index
    %c0_61 = arith.constant 0 : index
    %148 = vector.load %arg12[%c0_59, %c0_60, %c0_61] : memref<2x1x32xf32, #tpu.memory_space<vmem>>, vector<1x1x32xf32>
    %149 = vector.shape_cast %148 : vector<1x1x32xf32> to vector<1x32xf32>
    %150 = vector.broadcast %149 : vector<1x32xf32> to vector<34x32xf32>
    %151 = arith.addf %147, %150 : vector<34x32xf32>
    %c0_62 = arith.constant 0 : index
    %c0_63 = arith.constant 0 : index
    %c0_64 = arith.constant 0 : index
    %152 = vector.load %arg13[%c0_62, %c0_63, %c0_64] : memref<2x1x32xf32, #tpu.memory_space<vmem>>, vector<1x1x32xf32>
    %153 = vector.shape_cast %152 : vector<1x1x32xf32> to vector<1x32xf32>
    %c0_65 = arith.constant 0 : index
    %c0_66 = arith.constant 0 : index
    %c0_67 = arith.constant 0 : index
    %154 = vector.load %arg14[%c0_65, %c0_66, %c0_67] : memref<2x1x32xf32, #tpu.memory_space<vmem>>, vector<1x1x32xf32>
    %155 = vector.shape_cast %154 : vector<1x1x32xf32> to vector<1x32xf32>
    %cst_68 = arith.constant dense<0.000000e+00> : vector<34xf32>
    %156 = vector.multi_reduction <add>, %151, %cst_68 [1] : vector<34x32xf32> to vector<34xf32>
    %157 = vector.shape_cast %156 : vector<34xf32> to vector<34x1xf32>
    %cst_69 = arith.constant 3.200000e+01 : f32
    %158 = vector.broadcast %cst_69 : f32 to vector<34x1xf32>
    %159 = arith.divf %157, %158 : vector<34x1xf32>
    %160 = vector.broadcast %159 : vector<34x1xf32> to vector<34x32xf32>
    %161 = arith.subf %151, %160 : vector<34x32xf32>
    %162 = arith.mulf %161, %161 : vector<34x32xf32>
    %cst_70 = arith.constant dense<0.000000e+00> : vector<34xf32>
    %163 = vector.multi_reduction <add>, %162, %cst_70 [1] : vector<34x32xf32> to vector<34xf32>
    %164 = vector.shape_cast %163 : vector<34xf32> to vector<34x1xf32>
    %cst_71 = arith.constant 3.200000e+01 : f32
    %165 = vector.broadcast %cst_71 : f32 to vector<34x1xf32>
    %166 = arith.divf %164, %165 : vector<34x1xf32>
    %167 = vector.broadcast %159 : vector<34x1xf32> to vector<34x32xf32>
    %168 = arith.subf %151, %167 : vector<34x32xf32>
    %cst_72 = arith.constant 9.99999974E-6 : f32
    %169 = vector.broadcast %cst_72 : f32 to vector<34x1xf32>
    %170 = arith.addf %166, %169 : vector<34x1xf32>
    %171 = math.rsqrt %170 : vector<34x1xf32>
    %172 = vector.broadcast %171 : vector<34x1xf32> to vector<34x32xf32>
    %173 = arith.mulf %168, %172 : vector<34x32xf32>
    %174 = vector.broadcast %153 : vector<1x32xf32> to vector<34x32xf32>
    %175 = arith.mulf %173, %174 : vector<34x32xf32>
    %176 = vector.broadcast %155 : vector<1x32xf32> to vector<34x32xf32>
    %177 = arith.addf %175, %176 : vector<34x32xf32>
    %c0_73 = arith.constant 0 : index
    %c0_74 = arith.constant 0 : index
    %c0_75 = arith.constant 0 : index
    %178 = vector.load %arg15[%c0_73, %c0_74, %c0_75] : memref<2x128x32xf32, #tpu.memory_space<vmem>>, vector<1x128x32xf32>
    %179 = vector.shape_cast %178 : vector<1x128x32xf32> to vector<128x32xf32>
    %cst_76 = arith.constant dense<0.000000e+00> : vector<34x128xf32>
    %180 = tpu.matmul %177, %179, %cst_76 {dimension_numbers = #tpu.dot_dimension_numbers<[1], [1], [0], [0], [0, 0, 1, 0], [], []>} : vector<34x32xf32>, vector<128x32xf32>, vector<34x128xf32> -> vector<34x128xf32>
    %c0_77 = arith.constant 0 : index
    %c0_78 = arith.constant 0 : index
    %c0_79 = arith.constant 0 : index
    %181 = vector.load %arg16[%c0_77, %c0_78, %c0_79] : memref<2x1x128xf32, #tpu.memory_space<vmem>>, vector<1x1x128xf32>
    %182 = vector.shape_cast %181 : vector<1x1x128xf32> to vector<1x128xf32>
    %183 = vector.broadcast %182 : vector<1x128xf32> to vector<34x128xf32>
    %184 = arith.addf %180, %183 : vector<34x128xf32>
    %cst_80 = arith.constant 1.702000e+00 : f32
    %185 = vector.broadcast %cst_80 : f32 to vector<34x128xf32>
    %186 = arith.mulf %185, %184 : vector<34x128xf32>
    %187 = arith.negf %186 : vector<34x128xf32>
    %188 = math.exp %187 : vector<34x128xf32>
    %cst_81 = arith.constant 1.000000e+00 : f32
    %189 = vector.broadcast %cst_81 : f32 to vector<34x128xf32>
    %190 = arith.addf %189, %188 : vector<34x128xf32>
    %191 = arith.divf %189, %190 : vector<34x128xf32>
    %192 = arith.mulf %184, %191 : vector<34x128xf32>
    %c0_82 = arith.constant 0 : index
    %c0_83 = arith.constant 0 : index
    %c0_84 = arith.constant 0 : index
    %193 = vector.load %arg17[%c0_82, %c0_83, %c0_84] : memref<2x32x128xf32, #tpu.memory_space<vmem>>, vector<1x32x128xf32>
    %194 = vector.shape_cast %193 : vector<1x32x128xf32> to vector<32x128xf32>
    %cst_85 = arith.constant dense<0.000000e+00> : vector<34x32xf32>
    %195 = tpu.matmul %192, %194, %cst_85 {dimension_numbers = #tpu.dot_dimension_numbers<[1], [1], [0], [0], [0, 0, 1, 0], [], []>} : vector<34x128xf32>, vector<32x128xf32>, vector<34x32xf32> -> vector<34x32xf32>
    %c0_86 = arith.constant 0 : index
    %c0_87 = arith.constant 0 : index
    %c0_88 = arith.constant 0 : index
    %196 = vector.load %arg18[%c0_86, %c0_87, %c0_88] : memref<2x1x32xf32, #tpu.memory_space<vmem>>, vector<1x1x32xf32>
    %197 = vector.shape_cast %196 : vector<1x1x32xf32> to vector<1x32xf32>
    %198 = vector.broadcast %197 : vector<1x32xf32> to vector<34x32xf32>
    %199 = arith.addf %195, %198 : vector<34x32xf32>
    %200 = arith.addf %151, %199 : vector<34x32xf32>
    %c1 = arith.constant 1 : index
    %c0_89 = arith.constant 0 : index
    %c0_90 = arith.constant 0 : index
    %201 = vector.load %arg7[%c1, %c0_89, %c0_90] : memref<2x1x32xf32, #tpu.memory_space<vmem>>, vector<1x1x32xf32>
    %202 = vector.shape_cast %201 : vector<1x1x32xf32> to vector<1x32xf32>
    %c1_91 = arith.constant 1 : index
    %c0_92 = arith.constant 0 : index
    %c0_93 = arith.constant 0 : index
    %203 = vector.load %arg8[%c1_91, %c0_92, %c0_93] : memref<2x1x32xf32, #tpu.memory_space<vmem>>, vector<1x1x32xf32>
    %204 = vector.shape_cast %203 : vector<1x1x32xf32> to vector<1x32xf32>
    %cst_94 = arith.constant dense<0.000000e+00> : vector<34xf32>
    %205 = vector.multi_reduction <add>, %200, %cst_94 [1] : vector<34x32xf32> to vector<34xf32>
    %206 = vector.shape_cast %205 : vector<34xf32> to vector<34x1xf32>
    %cst_95 = arith.constant 3.200000e+01 : f32
    %207 = vector.broadcast %cst_95 : f32 to vector<34x1xf32>
    %208 = arith.divf %206, %207 : vector<34x1xf32>
    %209 = vector.broadcast %208 : vector<34x1xf32> to vector<34x32xf32>
    %210 = arith.subf %200, %209 : vector<34x32xf32>
    %211 = arith.mulf %210, %210 : vector<34x32xf32>
    %cst_96 = arith.constant dense<0.000000e+00> : vector<34xf32>
    %212 = vector.multi_reduction <add>, %211, %cst_96 [1] : vector<34x32xf32> to vector<34xf32>
    %213 = vector.shape_cast %212 : vector<34xf32> to vector<34x1xf32>
    %cst_97 = arith.constant 3.200000e+01 : f32
    %214 = vector.broadcast %cst_97 : f32 to vector<34x1xf32>
    %215 = arith.divf %213, %214 : vector<34x1xf32>
    %216 = vector.broadcast %208 : vector<34x1xf32> to vector<34x32xf32>
    %217 = arith.subf %200, %216 : vector<34x32xf32>
    %cst_98 = arith.constant 9.99999974E-6 : f32
    %218 = vector.broadcast %cst_98 : f32 to vector<34x1xf32>
    %219 = arith.addf %215, %218 : vector<34x1xf32>
    %220 = math.rsqrt %219 : vector<34x1xf32>
    %221 = vector.broadcast %220 : vector<34x1xf32> to vector<34x32xf32>
    %222 = arith.mulf %217, %221 : vector<34x32xf32>
    %223 = vector.broadcast %202 : vector<1x32xf32> to vector<34x32xf32>
    %224 = arith.mulf %222, %223 : vector<34x32xf32>
    %225 = vector.broadcast %204 : vector<1x32xf32> to vector<34x32xf32>
    %226 = arith.addf %224, %225 : vector<34x32xf32>
    %c1_99 = arith.constant 1 : index
    %c0_100 = arith.constant 0 : index
    %c0_101 = arith.constant 0 : index
    %227 = vector.load %arg9[%c1_99, %c0_100, %c0_101] : memref<2x96x32xf32, #tpu.memory_space<vmem>>, vector<1x96x32xf32>
    %228 = vector.shape_cast %227 : vector<1x96x32xf32> to vector<96x32xf32>
    %cst_102 = arith.constant dense<0.000000e+00> : vector<34x96xf32>
    %229 = tpu.matmul %226, %228, %cst_102 {dimension_numbers = #tpu.dot_dimension_numbers<[1], [1], [0], [0], [0, 0, 1, 0], [], []>} : vector<34x32xf32>, vector<96x32xf32>, vector<34x96xf32> -> vector<34x96xf32>
    %c1_103 = arith.constant 1 : index
    %c0_104 = arith.constant 0 : index
    %c0_105 = arith.constant 0 : index
    %230 = vector.load %arg10[%c1_103, %c0_104, %c0_105] : memref<2x1x96xf32, #tpu.memory_space<vmem>>, vector<1x1x96xf32>
    %231 = vector.shape_cast %230 : vector<1x1x96xf32> to vector<1x96xf32>
    %232 = vector.broadcast %231 : vector<1x96xf32> to vector<34x96xf32>
    %233 = arith.addf %229, %232 : vector<34x96xf32>
    %234 = vector.extract_strided_slice %233 {offsets = [0, 0], sizes = [34, 32], strides = [1, 1]} : vector<34x96xf32> to vector<34x32xf32>
    %cst_106 = arith.constant 0.353553385 : f32
    %235 = vector.broadcast %cst_106 : f32 to vector<34x32xf32>
    %236 = arith.mulf %234, %235 : vector<34x32xf32>
    %237 = vector.extract_strided_slice %233 {offsets = [0, 32], sizes = [34, 32], strides = [1, 1]} : vector<34x96xf32> to vector<34x32xf32>
    %238 = vector.extract_strided_slice %233 {offsets = [0, 64], sizes = [34, 32], strides = [1, 1]} : vector<34x96xf32> to vector<34x32xf32>
    %c1_107 = arith.constant 1 : index
    %c0_108 = arith.constant 0 : index
    %c0_109 = arith.constant 0 : index
    %239 = vector.load %arg11[%c1_107, %c0_108, %c0_109] : memref<2x32x32xf32, #tpu.memory_space<vmem>>, vector<1x32x32xf32>
    %240 = vector.shape_cast %239 : vector<1x32x32xf32> to vector<32x32xf32>
    %cst_110 = arith.constant 0.000000e+00 : f32
    %241 = vector.broadcast %cst_110 : f32 to vector<34x32xf32>
    %242 = vector.extract_strided_slice %236 {offsets = [0, 0], sizes = [34, 8], strides = [1, 1]} : vector<34x32xf32> to vector<34x8xf32>
    %243 = vector.extract_strided_slice %237 {offsets = [0, 0], sizes = [34, 8], strides = [1, 1]} : vector<34x32xf32> to vector<34x8xf32>
    %244 = vector.extract_strided_slice %238 {offsets = [0, 0], sizes = [34, 8], strides = [1, 1]} : vector<34x32xf32> to vector<34x8xf32>
    %cst_111 = arith.constant dense<0.000000e+00> : vector<34x34xf32>
    %245 = tpu.matmul %242, %243, %cst_111 {dimension_numbers = #tpu.dot_dimension_numbers<[1], [1], [0], [0], [0, 0, 1, 0], [], []>} : vector<34x8xf32>, vector<34x8xf32>, vector<34x34xf32> -> vector<34x34xf32>
    %246 = arith.addf %245, %1 : vector<34x34xf32>
    %cst_112 = arith.constant dense<0xFF800000> : vector<34xf32>
    %247 = vector.multi_reduction <maximumf>, %246, %cst_112 [1] : vector<34x34xf32> to vector<34xf32>
    %248 = vector.shape_cast %247 : vector<34xf32> to vector<34x1xf32>
    %249 = vector.broadcast %248 : vector<34x1xf32> to vector<34x34xf32>
    %250 = arith.subf %246, %249 : vector<34x34xf32>
    %251 = math.exp %250 : vector<34x34xf32>
    %cst_113 = arith.constant dense<0.000000e+00> : vector<34xf32>
    %252 = vector.multi_reduction <add>, %251, %cst_113 [1] : vector<34x34xf32> to vector<34xf32>
    %253 = vector.shape_cast %252 : vector<34xf32> to vector<34x1xf32>
    %254 = tpu.reciprocal %253 {approx = true} : vector<34x1xf32> -> vector<34x1xf32>
    %255 = vector.broadcast %254 : vector<34x1xf32> to vector<34x34xf32>
    %256 = arith.mulf %251, %255 : vector<34x34xf32>
    %cst_114 = arith.constant dense<0.000000e+00> : vector<34x8xf32>
    %257 = tpu.matmul %256, %244, %cst_114 {dimension_numbers = #tpu.dot_dimension_numbers<[1], [0], [0], [1], [0, 0, 1, 1], [], []>} : vector<34x34xf32>, vector<34x8xf32>, vector<34x8xf32> -> vector<34x8xf32>
    %258 = vector.extract_strided_slice %240 {offsets = [0, 0], sizes = [32, 8], strides = [1, 1]} : vector<32x32xf32> to vector<32x8xf32>
    %cst_115 = arith.constant dense<0.000000e+00> : vector<34x32xf32>
    %259 = tpu.matmul %257, %258, %cst_115 {dimension_numbers = #tpu.dot_dimension_numbers<[1], [1], [0], [0], [0, 0, 1, 0], [], []>} : vector<34x8xf32>, vector<32x8xf32>, vector<34x32xf32> -> vector<34x32xf32>
    %260 = arith.addf %241, %259 : vector<34x32xf32>
    %261 = vector.extract_strided_slice %236 {offsets = [0, 8], sizes = [34, 8], strides = [1, 1]} : vector<34x32xf32> to vector<34x8xf32>
    %262 = vector.extract_strided_slice %237 {offsets = [0, 8], sizes = [34, 8], strides = [1, 1]} : vector<34x32xf32> to vector<34x8xf32>
    %263 = vector.extract_strided_slice %238 {offsets = [0, 8], sizes = [34, 8], strides = [1, 1]} : vector<34x32xf32> to vector<34x8xf32>
    %cst_116 = arith.constant dense<0.000000e+00> : vector<34x34xf32>
    %264 = tpu.matmul %261, %262, %cst_116 {dimension_numbers = #tpu.dot_dimension_numbers<[1], [1], [0], [0], [0, 0, 1, 0], [], []>} : vector<34x8xf32>, vector<34x8xf32>, vector<34x34xf32> -> vector<34x34xf32>
    %265 = arith.addf %264, %1 : vector<34x34xf32>
    %cst_117 = arith.constant dense<0xFF800000> : vector<34xf32>
    %266 = vector.multi_reduction <maximumf>, %265, %cst_117 [1] : vector<34x34xf32> to vector<34xf32>
    %267 = vector.shape_cast %266 : vector<34xf32> to vector<34x1xf32>
    %268 = vector.broadcast %267 : vector<34x1xf32> to vector<34x34xf32>
    %269 = arith.subf %265, %268 : vector<34x34xf32>
    %270 = math.exp %269 : vector<34x34xf32>
    %cst_118 = arith.constant dense<0.000000e+00> : vector<34xf32>
    %271 = vector.multi_reduction <add>, %270, %cst_118 [1] : vector<34x34xf32> to vector<34xf32>
    %272 = vector.shape_cast %271 : vector<34xf32> to vector<34x1xf32>
    %273 = tpu.reciprocal %272 {approx = true} : vector<34x1xf32> -> vector<34x1xf32>
    %274 = vector.broadcast %273 : vector<34x1xf32> to vector<34x34xf32>
    %275 = arith.mulf %270, %274 : vector<34x34xf32>
    %cst_119 = arith.constant dense<0.000000e+00> : vector<34x8xf32>
    %276 = tpu.matmul %275, %263, %cst_119 {dimension_numbers = #tpu.dot_dimension_numbers<[1], [0], [0], [1], [0, 0, 1, 1], [], []>} : vector<34x34xf32>, vector<34x8xf32>, vector<34x8xf32> -> vector<34x8xf32>
    %277 = vector.extract_strided_slice %240 {offsets = [0, 8], sizes = [32, 8], strides = [1, 1]} : vector<32x32xf32> to vector<32x8xf32>
    %cst_120 = arith.constant dense<0.000000e+00> : vector<34x32xf32>
    %278 = tpu.matmul %276, %277, %cst_120 {dimension_numbers = #tpu.dot_dimension_numbers<[1], [1], [0], [0], [0, 0, 1, 0], [], []>} : vector<34x8xf32>, vector<32x8xf32>, vector<34x32xf32> -> vector<34x32xf32>
    %279 = arith.addf %260, %278 : vector<34x32xf32>
    %280 = vector.extract_strided_slice %236 {offsets = [0, 16], sizes = [34, 8], strides = [1, 1]} : vector<34x32xf32> to vector<34x8xf32>
    %281 = vector.extract_strided_slice %237 {offsets = [0, 16], sizes = [34, 8], strides = [1, 1]} : vector<34x32xf32> to vector<34x8xf32>
    %282 = vector.extract_strided_slice %238 {offsets = [0, 16], sizes = [34, 8], strides = [1, 1]} : vector<34x32xf32> to vector<34x8xf32>
    %cst_121 = arith.constant dense<0.000000e+00> : vector<34x34xf32>
    %283 = tpu.matmul %280, %281, %cst_121 {dimension_numbers = #tpu.dot_dimension_numbers<[1], [1], [0], [0], [0, 0, 1, 0], [], []>} : vector<34x8xf32>, vector<34x8xf32>, vector<34x34xf32> -> vector<34x34xf32>
    %284 = arith.addf %283, %1 : vector<34x34xf32>
    %cst_122 = arith.constant dense<0xFF800000> : vector<34xf32>
    %285 = vector.multi_reduction <maximumf>, %284, %cst_122 [1] : vector<34x34xf32> to vector<34xf32>
    %286 = vector.shape_cast %285 : vector<34xf32> to vector<34x1xf32>
    %287 = vector.broadcast %286 : vector<34x1xf32> to vector<34x34xf32>
    %288 = arith.subf %284, %287 : vector<34x34xf32>
    %289 = math.exp %288 : vector<34x34xf32>
    %cst_123 = arith.constant dense<0.000000e+00> : vector<34xf32>
    %290 = vector.multi_reduction <add>, %289, %cst_123 [1] : vector<34x34xf32> to vector<34xf32>
    %291 = vector.shape_cast %290 : vector<34xf32> to vector<34x1xf32>
    %292 = tpu.reciprocal %291 {approx = true} : vector<34x1xf32> -> vector<34x1xf32>
    %293 = vector.broadcast %292 : vector<34x1xf32> to vector<34x34xf32>
    %294 = arith.mulf %289, %293 : vector<34x34xf32>
    %cst_124 = arith.constant dense<0.000000e+00> : vector<34x8xf32>
    %295 = tpu.matmul %294, %282, %cst_124 {dimension_numbers = #tpu.dot_dimension_numbers<[1], [0], [0], [1], [0, 0, 1, 1], [], []>} : vector<34x34xf32>, vector<34x8xf32>, vector<34x8xf32> -> vector<34x8xf32>
    %296 = vector.extract_strided_slice %240 {offsets = [0, 16], sizes = [32, 8], strides = [1, 1]} : vector<32x32xf32> to vector<32x8xf32>
    %cst_125 = arith.constant dense<0.000000e+00> : vector<34x32xf32>
    %297 = tpu.matmul %295, %296, %cst_125 {dimension_numbers = #tpu.dot_dimension_numbers<[1], [1], [0], [0], [0, 0, 1, 0], [], []>} : vector<34x8xf32>, vector<32x8xf32>, vector<34x32xf32> -> vector<34x32xf32>
    %298 = arith.addf %279, %297 : vector<34x32xf32>
    %299 = vector.extract_strided_slice %236 {offsets = [0, 24], sizes = [34, 8], strides = [1, 1]} : vector<34x32xf32> to vector<34x8xf32>
    %300 = vector.extract_strided_slice %237 {offsets = [0, 24], sizes = [34, 8], strides = [1, 1]} : vector<34x32xf32> to vector<34x8xf32>
    %301 = vector.extract_strided_slice %238 {offsets = [0, 24], sizes = [34, 8], strides = [1, 1]} : vector<34x32xf32> to vector<34x8xf32>
    %cst_126 = arith.constant dense<0.000000e+00> : vector<34x34xf32>
    %302 = tpu.matmul %299, %300, %cst_126 {dimension_numbers = #tpu.dot_dimension_numbers<[1], [1], [0], [0], [0, 0, 1, 0], [], []>} : vector<34x8xf32>, vector<34x8xf32>, vector<34x34xf32> -> vector<34x34xf32>
    %303 = arith.addf %302, %1 : vector<34x34xf32>
    %cst_127 = arith.constant dense<0xFF800000> : vector<34xf32>
    %304 = vector.multi_reduction <maximumf>, %303, %cst_127 [1] : vector<34x34xf32> to vector<34xf32>
    %305 = vector.shape_cast %304 : vector<34xf32> to vector<34x1xf32>
    %306 = vector.broadcast %305 : vector<34x1xf32> to vector<34x34xf32>
    %307 = arith.subf %303, %306 : vector<34x34xf32>
    %308 = math.exp %307 : vector<34x34xf32>
    %cst_128 = arith.constant dense<0.000000e+00> : vector<34xf32>
    %309 = vector.multi_reduction <add>, %308, %cst_128 [1] : vector<34x34xf32> to vector<34xf32>
    %310 = vector.shape_cast %309 : vector<34xf32> to vector<34x1xf32>
    %311 = tpu.reciprocal %310 {approx = true} : vector<34x1xf32> -> vector<34x1xf32>
    %312 = vector.broadcast %311 : vector<34x1xf32> to vector<34x34xf32>
    %313 = arith.mulf %308, %312 : vector<34x34xf32>
    %cst_129 = arith.constant dense<0.000000e+00> : vector<34x8xf32>
    %314 = tpu.matmul %313, %301, %cst_129 {dimension_numbers = #tpu.dot_dimension_numbers<[1], [0], [0], [1], [0, 0, 1, 1], [], []>} : vector<34x34xf32>, vector<34x8xf32>, vector<34x8xf32> -> vector<34x8xf32>
    %315 = vector.extract_strided_slice %240 {offsets = [0, 24], sizes = [32, 8], strides = [1, 1]} : vector<32x32xf32> to vector<32x8xf32>
    %cst_130 = arith.constant dense<0.000000e+00> : vector<34x32xf32>
    %316 = tpu.matmul %314, %315, %cst_130 {dimension_numbers = #tpu.dot_dimension_numbers<[1], [1], [0], [0], [0, 0, 1, 0], [], []>} : vector<34x8xf32>, vector<32x8xf32>, vector<34x32xf32> -> vector<34x32xf32>
    %317 = arith.addf %298, %316 : vector<34x32xf32>
    %318 = arith.addf %200, %317 : vector<34x32xf32>
    %c1_131 = arith.constant 1 : index
    %c0_132 = arith.constant 0 : index
    %c0_133 = arith.constant 0 : index
    %319 = vector.load %arg12[%c1_131, %c0_132, %c0_133] : memref<2x1x32xf32, #tpu.memory_space<vmem>>, vector<1x1x32xf32>
    %320 = vector.shape_cast %319 : vector<1x1x32xf32> to vector<1x32xf32>
    %321 = vector.broadcast %320 : vector<1x32xf32> to vector<34x32xf32>
    %322 = arith.addf %318, %321 : vector<34x32xf32>
    %c1_134 = arith.constant 1 : index
    %c0_135 = arith.constant 0 : index
    %c0_136 = arith.constant 0 : index
    %323 = vector.load %arg13[%c1_134, %c0_135, %c0_136] : memref<2x1x32xf32, #tpu.memory_space<vmem>>, vector<1x1x32xf32>
    %324 = vector.shape_cast %323 : vector<1x1x32xf32> to vector<1x32xf32>
    %c1_137 = arith.constant 1 : index
    %c0_138 = arith.constant 0 : index
    %c0_139 = arith.constant 0 : index
    %325 = vector.load %arg14[%c1_137, %c0_138, %c0_139] : memref<2x1x32xf32, #tpu.memory_space<vmem>>, vector<1x1x32xf32>
    %326 = vector.shape_cast %325 : vector<1x1x32xf32> to vector<1x32xf32>
    %cst_140 = arith.constant dense<0.000000e+00> : vector<34xf32>
    %327 = vector.multi_reduction <add>, %322, %cst_140 [1] : vector<34x32xf32> to vector<34xf32>
    %328 = vector.shape_cast %327 : vector<34xf32> to vector<34x1xf32>
    %cst_141 = arith.constant 3.200000e+01 : f32
    %329 = vector.broadcast %cst_141 : f32 to vector<34x1xf32>
    %330 = arith.divf %328, %329 : vector<34x1xf32>
    %331 = vector.broadcast %330 : vector<34x1xf32> to vector<34x32xf32>
    %332 = arith.subf %322, %331 : vector<34x32xf32>
    %333 = arith.mulf %332, %332 : vector<34x32xf32>
    %cst_142 = arith.constant dense<0.000000e+00> : vector<34xf32>
    %334 = vector.multi_reduction <add>, %333, %cst_142 [1] : vector<34x32xf32> to vector<34xf32>
    %335 = vector.shape_cast %334 : vector<34xf32> to vector<34x1xf32>
    %cst_143 = arith.constant 3.200000e+01 : f32
    %336 = vector.broadcast %cst_143 : f32 to vector<34x1xf32>
    %337 = arith.divf %335, %336 : vector<34x1xf32>
    %338 = vector.broadcast %330 : vector<34x1xf32> to vector<34x32xf32>
    %339 = arith.subf %322, %338 : vector<34x32xf32>
    %cst_144 = arith.constant 9.99999974E-6 : f32
    %340 = vector.broadcast %cst_144 : f32 to vector<34x1xf32>
    %341 = arith.addf %337, %340 : vector<34x1xf32>
    %342 = math.rsqrt %341 : vector<34x1xf32>
    %343 = vector.broadcast %342 : vector<34x1xf32> to vector<34x32xf32>
    %344 = arith.mulf %339, %343 : vector<34x32xf32>
    %345 = vector.broadcast %324 : vector<1x32xf32> to vector<34x32xf32>
    %346 = arith.mulf %344, %345 : vector<34x32xf32>
    %347 = vector.broadcast %326 : vector<1x32xf32> to vector<34x32xf32>
    %348 = arith.addf %346, %347 : vector<34x32xf32>
    %c1_145 = arith.constant 1 : index
    %c0_146 = arith.constant 0 : index
    %c0_147 = arith.constant 0 : index
    %349 = vector.load %arg15[%c1_145, %c0_146, %c0_147] : memref<2x128x32xf32, #tpu.memory_space<vmem>>, vector<1x128x32xf32>
    %350 = vector.shape_cast %349 : vector<1x128x32xf32> to vector<128x32xf32>
    %cst_148 = arith.constant dense<0.000000e+00> : vector<34x128xf32>
    %351 = tpu.matmul %348, %350, %cst_148 {dimension_numbers = #tpu.dot_dimension_numbers<[1], [1], [0], [0], [0, 0, 1, 0], [], []>} : vector<34x32xf32>, vector<128x32xf32>, vector<34x128xf32> -> vector<34x128xf32>
    %c1_149 = arith.constant 1 : index
    %c0_150 = arith.constant 0 : index
    %c0_151 = arith.constant 0 : index
    %352 = vector.load %arg16[%c1_149, %c0_150, %c0_151] : memref<2x1x128xf32, #tpu.memory_space<vmem>>, vector<1x1x128xf32>
    %353 = vector.shape_cast %352 : vector<1x1x128xf32> to vector<1x128xf32>
    %354 = vector.broadcast %353 : vector<1x128xf32> to vector<34x128xf32>
    %355 = arith.addf %351, %354 : vector<34x128xf32>
    %cst_152 = arith.constant 1.702000e+00 : f32
    %356 = vector.broadcast %cst_152 : f32 to vector<34x128xf32>
    %357 = arith.mulf %356, %355 : vector<34x128xf32>
    %358 = arith.negf %357 : vector<34x128xf32>
    %359 = math.exp %358 : vector<34x128xf32>
    %cst_153 = arith.constant 1.000000e+00 : f32
    %360 = vector.broadcast %cst_153 : f32 to vector<34x128xf32>
    %361 = arith.addf %360, %359 : vector<34x128xf32>
    %362 = arith.divf %360, %361 : vector<34x128xf32>
    %363 = arith.mulf %355, %362 : vector<34x128xf32>
    %c1_154 = arith.constant 1 : index
    %c0_155 = arith.constant 0 : index
    %c0_156 = arith.constant 0 : index
    %364 = vector.load %arg17[%c1_154, %c0_155, %c0_156] : memref<2x32x128xf32, #tpu.memory_space<vmem>>, vector<1x32x128xf32>
    %365 = vector.shape_cast %364 : vector<1x32x128xf32> to vector<32x128xf32>
    %cst_157 = arith.constant dense<0.000000e+00> : vector<34x32xf32>
    %366 = tpu.matmul %363, %365, %cst_157 {dimension_numbers = #tpu.dot_dimension_numbers<[1], [1], [0], [0], [0, 0, 1, 0], [], []>} : vector<34x128xf32>, vector<32x128xf32>, vector<34x32xf32> -> vector<34x32xf32>
    %c1_158 = arith.constant 1 : index
    %c0_159 = arith.constant 0 : index
    %c0_160 = arith.constant 0 : index
    %367 = vector.load %arg18[%c1_158, %c0_159, %c0_160] : memref<2x1x32xf32, #tpu.memory_space<vmem>>, vector<1x1x32xf32>
    %368 = vector.shape_cast %367 : vector<1x1x32xf32> to vector<1x32xf32>
    %369 = vector.broadcast %368 : vector<1x32xf32> to vector<34x32xf32>
    %370 = arith.addf %366, %369 : vector<34x32xf32>
    %371 = arith.addf %322, %370 : vector<34x32xf32>
    %c0_161 = arith.constant 0 : index
    %c0_162 = arith.constant 0 : index
    %372 = vector.load %arg19[%c0_161, %c0_162] : memref<1x32xf32, #tpu.memory_space<vmem>>, vector<1x32xf32>
    %c0_163 = arith.constant 0 : index
    %c0_164 = arith.constant 0 : index
    %373 = vector.load %arg20[%c0_163, %c0_164] : memref<1x32xf32, #tpu.memory_space<vmem>>, vector<1x32xf32>
    %cst_165 = arith.constant dense<0.000000e+00> : vector<34xf32>
    %374 = vector.multi_reduction <add>, %371, %cst_165 [1] : vector<34x32xf32> to vector<34xf32>
    %375 = vector.shape_cast %374 : vector<34xf32> to vector<34x1xf32>
    %cst_166 = arith.constant 3.200000e+01 : f32
    %376 = vector.broadcast %cst_166 : f32 to vector<34x1xf32>
    %377 = arith.divf %375, %376 : vector<34x1xf32>
    %378 = vector.broadcast %377 : vector<34x1xf32> to vector<34x32xf32>
    %379 = arith.subf %371, %378 : vector<34x32xf32>
    %380 = arith.mulf %379, %379 : vector<34x32xf32>
    %cst_167 = arith.constant dense<0.000000e+00> : vector<34xf32>
    %381 = vector.multi_reduction <add>, %380, %cst_167 [1] : vector<34x32xf32> to vector<34xf32>
    %382 = vector.shape_cast %381 : vector<34xf32> to vector<34x1xf32>
    %cst_168 = arith.constant 3.200000e+01 : f32
    %383 = vector.broadcast %cst_168 : f32 to vector<34x1xf32>
    %384 = arith.divf %382, %383 : vector<34x1xf32>
    %385 = vector.broadcast %377 : vector<34x1xf32> to vector<34x32xf32>
    %386 = arith.subf %371, %385 : vector<34x32xf32>
    %cst_169 = arith.constant 9.99999974E-6 : f32
    %387 = vector.broadcast %cst_169 : f32 to vector<34x1xf32>
    %388 = arith.addf %384, %387 : vector<34x1xf32>
    %389 = math.rsqrt %388 : vector<34x1xf32>
    %390 = vector.broadcast %389 : vector<34x1xf32> to vector<34x32xf32>
    %391 = arith.mulf %386, %390 : vector<34x32xf32>
    %392 = vector.broadcast %372 : vector<1x32xf32> to vector<34x32xf32>
    %393 = arith.mulf %391, %392 : vector<34x32xf32>
    %394 = vector.broadcast %373 : vector<1x32xf32> to vector<34x32xf32>
    %395 = arith.addf %393, %394 : vector<34x32xf32>
    %c0_170 = arith.constant 0 : index
    %c0_171 = arith.constant 0 : index
    %396 = vector.load %arg21[%c0_170, %c0_171] : memref<32x16xf32, #tpu.memory_space<vmem>>, vector<32x16xf32>
    %cst_172 = arith.constant dense<0.000000e+00> : vector<34x16xf32>
    %397 = tpu.matmul %395, %396, %cst_172 {dimension_numbers = #tpu.dot_dimension_numbers<[1], [0], [0], [1], [0, 0, 1, 1], [], []>} : vector<34x32xf32>, vector<32x16xf32>, vector<34x16xf32> -> vector<34x16xf32>
    %c0_173 = arith.constant 0 : index
    %c0_174 = arith.constant 0 : index
    %398 = vector.load %arg22[%c0_173, %c0_174] : memref<128x16xf32, #tpu.memory_space<vmem>>, vector<128x16xf32>
    %cst_175 = arith.constant dense<0.000000e+00> : vector<34x128xf32>
    %399 = tpu.matmul %397, %398, %cst_175 {dimension_numbers = #tpu.dot_dimension_numbers<[1], [1], [0], [0], [0, 0, 1, 0], [], []>} : vector<34x16xf32>, vector<128x16xf32>, vector<34x128xf32> -> vector<34x128xf32>
    %c0_176 = arith.constant 0 : index
    %c0_177 = arith.constant 0 : index
    %400 = vector.load %arg23[%c0_176, %c0_177] : memref<1x128xf32, #tpu.memory_space<vmem>>, vector<1x128xf32>
    %401 = vector.broadcast %400 : vector<1x128xf32> to vector<34x128xf32>
    %402 = arith.addf %399, %401 : vector<34x128xf32>
    %c0_178 = arith.constant 0 : index
    %c0_179 = arith.constant 0 : index
    %403 = vector.load %arg24[%c0_178, %c0_179] : memref<34x128xf32, #tpu.memory_space<vmem>>, vector<34x128xf32>
    tpu.vector_store %arg24[%c0_178, %c0_179], %402 {strides = array<i32>} : memref<34x128xf32, #tpu.memory_space<vmem>>, vector<34x128xf32>,
    return
  }
  func.func @transform_0(%arg0: i32) -> (i32, i32) {
    %c0_i32 = arith.constant 0 : i32
    %c0_i32_0 = arith.constant 0 : i32
    %c0_i32_1 = arith.constant 0 : i32
    return %c0_i32, %c0_i32_0 : i32, i32
  }
  func.func @transform_1(%arg0: i32) -> (i32, i32) {
    %c0_i32 = arith.constant 0 : i32
    %c0_i32_0 = arith.constant 0 : i32
    %c0_i32_1 = arith.constant 0 : i32
    return %c0_i32, %c0_i32_0 : i32, i32
  }
  func.func @transform_2(%arg0: i32) -> (i32, i32) {
    %c0_i32 = arith.constant 0 : i32
    %c0_i32_0 = arith.constant 0 : i32
    %c0_i32_1 = arith.constant 0 : i32
    return %c0_i32, %c0_i32_0 : i32, i32
  }
  func.func @transform_3(%arg0: i32) -> (i32, i32) {
    %c0_i32 = arith.constant 0 : i32
    %c0_i32_0 = arith.constant 0 : i32
    %c0_i32_1 = arith.constant 0 : i32
    return %c0_i32, %c0_i32_0 : i32, i32
  }
  func.func @transform_4(%arg0: i32) -> (i32, i32) {
    %c0_i32 = arith.constant 0 : i32
    %c0_i32_0 = arith.constant 0 : i32
    %c0_i32_1 = arith.constant 0 : i32
    return %c0_i32, %c0_i32_0 : i32, i32
  }
  func.func @transform_5(%arg0: i32) -> (i32, i32) {
    %c0_i32 = arith.constant 0 : i32
    %c0_i32_0 = arith.constant 0 : i32
    %c0_i32_1 = arith.constant 0 : i32
    return %c0_i32, %c0_i32_0 : i32, i32
  }
  func.func @transform_6(%arg0: i32) -> (i32, i32, i32) {
    %c0_i32 = arith.constant 0 : i32
    %c0_i32_0 = arith.constant 0 : i32
    %c0_i32_1 = arith.constant 0 : i32
    %c0_i32_2 = arith.constant 0 : i32
    return %c0_i32, %c0_i32_0, %c0_i32_1 : i32, i32, i32
  }
  func.func @transform_7(%arg0: i32) -> (i32, i32, i32) {
    %c0_i32 = arith.constant 0 : i32
    %c0_i32_0 = arith.constant 0 : i32
    %c0_i32_1 = arith.constant 0 : i32
    %c0_i32_2 = arith.constant 0 : i32
    return %c0_i32, %c0_i32_0, %c0_i32_1 : i32, i32, i32
  }
  func.func @transform_8(%arg0: i32) -> (i32, i32, i32) {
    %c0_i32 = arith.constant 0 : i32
    %c0_i32_0 = arith.constant 0 : i32
    %c0_i32_1 = arith.constant 0 : i32
    %c0_i32_2 = arith.constant 0 : i32
    return %c0_i32, %c0_i32_0, %c0_i32_1 : i32, i32, i32
  }
  func.func @transform_9(%arg0: i32) -> (i32, i32, i32) {
    %c0_i32 = arith.constant 0 : i32
    %c0_i32_0 = arith.constant 0 : i32
    %c0_i32_1 = arith.constant 0 : i32
    %c0_i32_2 = arith.constant 0 : i32
    return %c0_i32, %c0_i32_0, %c0_i32_1 : i32, i32, i32
  }
  func.func @transform_10(%arg0: i32) -> (i32, i32, i32) {
    %c0_i32 = arith.constant 0 : i32
    %c0_i32_0 = arith.constant 0 : i32
    %c0_i32_1 = arith.constant 0 : i32
    %c0_i32_2 = arith.constant 0 : i32
    return %c0_i32, %c0_i32_0, %c0_i32_1 : i32, i32, i32
  }
  func.func @transform_11(%arg0: i32) -> (i32, i32, i32) {
    %c0_i32 = arith.constant 0 : i32
    %c0_i32_0 = arith.constant 0 : i32
    %c0_i32_1 = arith.constant 0 : i32
    %c0_i32_2 = arith.constant 0 : i32
    return %c0_i32, %c0_i32_0, %c0_i32_1 : i32, i32, i32
  }
  func.func @transform_12(%arg0: i32) -> (i32, i32, i32) {
    %c0_i32 = arith.constant 0 : i32
    %c0_i32_0 = arith.constant 0 : i32
    %c0_i32_1 = arith.constant 0 : i32
    %c0_i32_2 = arith.constant 0 : i32
    return %c0_i32, %c0_i32_0, %c0_i32_1 : i32, i32, i32
  }
  func.func @transform_13(%arg0: i32) -> (i32, i32, i32) {
    %c0_i32 = arith.constant 0 : i32
    %c0_i32_0 = arith.constant 0 : i32
    %c0_i32_1 = arith.constant 0 : i32
    %c0_i32_2 = arith.constant 0 : i32
    return %c0_i32, %c0_i32_0, %c0_i32_1 : i32, i32, i32
  }
  func.func @transform_14(%arg0: i32) -> (i32, i32, i32) {
    %c0_i32 = arith.constant 0 : i32
    %c0_i32_0 = arith.constant 0 : i32
    %c0_i32_1 = arith.constant 0 : i32
    %c0_i32_2 = arith.constant 0 : i32
    return %c0_i32, %c0_i32_0, %c0_i32_1 : i32, i32, i32
  }
  func.func @transform_15(%arg0: i32) -> (i32, i32, i32) {
    %c0_i32 = arith.constant 0 : i32
    %c0_i32_0 = arith.constant 0 : i32
    %c0_i32_1 = arith.constant 0 : i32
    %c0_i32_2 = arith.constant 0 : i32
    return %c0_i32, %c0_i32_0, %c0_i32_1 : i32, i32, i32
  }
  func.func @transform_16(%arg0: i32) -> (i32, i32, i32) {
    %c0_i32 = arith.constant 0 : i32
    %c0_i32_0 = arith.constant 0 : i32
    %c0_i32_1 = arith.constant 0 : i32
    %c0_i32_2 = arith.constant 0 : i32
    return %c0_i32, %c0_i32_0, %c0_i32_1 : i32, i32, i32
  }
  func.func @transform_17(%arg0: i32) -> (i32, i32, i32) {
    %c0_i32 = arith.constant 0 : i32
    %c0_i32_0 = arith.constant 0 : i32
    %c0_i32_1 = arith.constant 0 : i32
    %c0_i32_2 = arith.constant 0 : i32
    return %c0_i32, %c0_i32_0, %c0_i32_1 : i32, i32, i32
  }
  func.func @transform_18(%arg0: i32) -> (i32, i32) {
    %c0_i32 = arith.constant 0 : i32
    %c0_i32_0 = arith.constant 0 : i32
    %c0_i32_1 = arith.constant 0 : i32
    return %c0_i32, %c0_i32_0 : i32, i32
  }
  func.func @transform_19(%arg0: i32) -> (i32, i32) {
    %c0_i32 = arith.constant 0 : i32
    %c0_i32_0 = arith.constant 0 : i32
    %c0_i32_1 = arith.constant 0 : i32
    return %c0_i32, %c0_i32_0 : i32, i32
  }
  func.func @transform_20(%arg0: i32) -> (i32, i32) {
    %c0_i32 = arith.constant 0 : i32
    %c0_i32_0 = arith.constant 0 : i32
    %c0_i32_1 = arith.constant 0 : i32
    return %c0_i32, %c0_i32_0 : i32, i32
  }
  func.func @transform_21(%arg0: i32) -> (i32, i32) {
    %c0_i32 = arith.constant 0 : i32
    %c0_i32_0 = arith.constant 0 : i32
    %c0_i32_1 = arith.constant 0 : i32
    return %c0_i32, %c0_i32_0 : i32, i32
  }
  func.func @transform_22(%arg0: i32) -> (i32, i32) {
    %c0_i32 = arith.constant 0 : i32
    %c0_i32_0 = arith.constant 0 : i32
    %c0_i32_1 = arith.constant 0 : i32
    return %c0_i32, %c0_i32_0 : i32, i32
  }
  func.func @transform_23(%arg0: i32) -> (i32, i32) {
    %c0_i32 = arith.constant 0 : i32
    %c0_i32_0 = arith.constant 0 : i32
    %c0_i32_1 = arith.constant 0 : i32
    return %c0_i32, %c0_i32_0 : i32, i32
  }
}

</mosaic_0001>

<bundles_post_ra>
// kernel: eq.8
= control target key start
LH: loop header
LB: loop body
LE: loop exit
PB: predicated region body
PF: predicated region fallthrough
CT: control target
= control target key end

     0   :  { %vm7_vm0 = vcmask 138240   ;;  %vm13_vm1 = vcmask 277640   ;;  %s39_s0 = inlined_call_operand.vmem [shape: s32[2,17], index: 0, kind: input, shape index: {}]   ;;  %s40_s1 = inlined_call_operand.vmem [shape: s32[34], index: 1, kind: output, shape index: {}]  }
   0x1   :  { %v4_v0 = vld [vmem:[%s39_s0] sm:$0x3]  ;;  %s22_s0 = smov 17  }
   0x2   :  { %5 = vst [vmem:[#allocation1] sm:$0x3] %v4_v0 }
   0x9   :  { %v10_v1 = vld [vmem:[#allocation1 + $0x1] sm:$0x1]   ;;  %v6_v2 = vld [vmem:[#allocation1] sm:$0x1]  }
   0xa   :  { %11 = vrot.lane.b32.xlu0 %v10_v1, %s22_s0  ;;  %8 = vst.msk [vmem:[#allocation0] sm:$0x1] %vm7_vm0, %v6_v2  }
  0x7c   :  { %v12_v3 = vpop.permute.xlu0 %11  }
  0x7d   :  { %14 = vst.msk [vmem:[#allocation0] sm:$0x1] %vm13_vm1, %v12_v3  }
  0x84   :  { %v17_v4 = vld [vmem:[#allocation0] sm:$0x1] }
  0x85   :  { %20 = vst [vmem:[%s40_s1] sm:$0x1] %v17_v4 }

// kernel: tile.9
= control target key start
LH: loop header
LB: loop body
LE: loop exit
PB: predicated region body
PF: predicated region fallthrough
CT: control target
= control target key end

     0   :  { %vm3_vm0 = vcmask 261120   ;;  %s11_s6 = smov 3  ;;  %s74_s0 = inlined_call_operand.vmem [shape: f32[2,17,32], index: 0, kind: input, shape index: {}]   ;;  %s75_s1 = inlined_call_operand.vmem [shape: f32[34,32], index: 1, kind: output, shape index: {}]  }
   0x1   :  { %v2_v0 = vld [vmem:[%s74_s0] sm:$0xff]   ;;  %v26_v1 = vld [vmem:[%s74_s0 + $0x8] sm:$0xff]  }
   0x2   :  { %v28_v2 = vld [vmem:[%s74_s0 + $0x10] ss:$8 sm:%s11_s6]   ;;  %4 = vst.msk [vmem:[%s75_s1] sm:$0xff] %vm3_vm0, %v2_v0  }
   0x3   :  { %v30_v3 = vld [vmem:[%s74_s0 + $0x19] sm:$0xff]   ;;  %27 = vst.msk [vmem:[%s75_s1 + $0x8] sm:$0xff] %vm3_vm0, %v26_v1   ;;  %v32_v4 = vld [vmem:[%s74_s0 + $0x21] sm:$0xff]  }
   0x4   :  { %29 = vst.msk [vmem:[%s75_s1 + $0x10] sm:$0x3] %vm3_vm0, %v28_v2  }
   0x5   :  { %31 = vst.msk [vmem:[%s75_s1 + $0x12] sm:$0xff] %vm3_vm0, %v30_v3  }
   0x6   :  { %33 = vst.msk [vmem:[%s75_s1 + $0x1a] sm:$0xff] %vm3_vm0, %v32_v4  }

// kernel: clip_image_encoder_forward.1
= control target key start
LH: loop header
LB: loop body
LE: loop exit
PB: predicated region body
PF: predicated region fallthrough
CT: control target
= control target key end

     0   :  { %vm93_vm0 = vcmask 392192   ;;  %vm155_vm1 = vcmask 261120   ;;  %vm168_vm2 = vcmask 254976   ;;  %v4687_v29 = vmov 32.0   ;;  %s4688_s29 = smov 96   ;;  %s6798_s30 = smov 80   ;;  %s6766_s2 = inlined_call_operand.vmem [shape: f32[32,48], index: 2, kind: input, shape index: {}]   ;;  %s6767_s0 = inlined_call_operand.vmem [shape: f32[34,48], index: 0, kind: input, shape index: {}]   ;;  %s6768_s3 = inlined_call_operand.vmem [shape: f32[34,32], index: 3, kind: input, shape index: {}]   ;;  %s6769_s4 = inlined_call_operand.vmem [shape: f32[1,32], index: 4, kind: input, shape index: {}]   ;;  %s6770_s5 = inlined_call_operand.vmem [shape: f32[1,32], index: 5, kind: input, shape index: {}]   ;;  %s6771_s8 = inlined_call_operand.vmem [shape: f32[2,96,32], index: 8, kind: input, shape index: {}]   ;;  %s6772_s6 = inlined_call_operand.vmem [shape: f32[2,1,32], index: 6, kind: input, shape index: {}]   ;;  %s6773_s7 = inlined_call_operand.vmem [shape: f32[2,1,32], index: 7, kind: input, shape index: {}]   ;;  %s6774_s9 = inlined_call_operand.vmem [shape: f32[2,1,96], index: 9, kind: input, shape index: {}]   ;;  %s6775_s1 = inlined_call_operand.vmem [shape: f32[34,34], index: 1, kind: input, shape index: {}]   ;;  %s6776_s10 = inlined_call_operand.vmem [shape: f32[2,32,32], index: 10, kind: input, shape index: {}]   ;;  %s6777_s11 = inlined_call_operand.vmem [shape: f32[2,1,32], index: 11, kind: input, shape index: {}]   ;;  %s6778_s12 = inlined_call_operand.vmem [shape: f32[2,1,32], index: 12, kind: input, shape index: {}]   ;;  %s6779_s13 = inlined_call_operand.vmem [shape: f32[2,1,32], index: 13, kind: input, shape index: {}]   ;;  %s6780_s14 = inlined_call_operand.vmem [shape: f32[2,128,32], index: 14, kind: input, shape index: {}]   ;;  %s6781_s15 = inlined_call_operand.vmem [shape: f32[2,1,128], index: 15, kind: input, shape index: {}]   ;;  %s6782_s17 = inlined_call_operand.vmem [shape: f32[2,1,32], index: 17, kind: input, shape index: {}]   ;;  %s6783_s16 = inlined_call_operand.vmem [shape: f32[2,32,128], index: 16, kind: input, shape index: {}]   ;;  %s6784_s18 = inlined_call_operand.vmem [shape: f32[1,32], index: 18, kind: input, shape index: {}]   ;;  %s6785_s19 = inlined_call_operand.vmem [shape: f32[1,32], index: 19, kind: input, shape index: {}]   ;;  %s6786_s20 = inlined_call_operand.vmem [shape: f32[32,16], index: 20, kind: input, shape index: {}]   ;;  %s6787_s21 = inlined_call_operand.vmem [shape: f32[128,16], index: 21, kind: input, shape index: {}]   ;;  %s6788_s22 = inlined_call_operand.vmem [shape: f32[1,128], index: 22, kind: input, shape index: {}]   ;;  %s6789_s23 = inlined_call_operand.vmem [shape: f32[34,128], index: 23, kind: output, shape index: {}]  }
   0x1   :  { %6812 = sst [smem:[#allocation2_spill]] %s6766_s2  ;;  %4420 = vrcp.f32 %v4687_v29  ;;  %s6835_s2 = smov 40  }
   0x2   :  { %6813 = sst [smem:[#allocation3_spill]] %s6767_s0 }
   0x3   :  { %6814 = sst [smem:[#allocation4_spill]] %s6768_s3 }
   0x4   :  { %6815 = sst [smem:[#allocation5_spill]] %s6769_s4  ;;  %s6796_s4 = smov 56  }
   0x5   :  { %6816 = sst [smem:[#allocation6_spill]] %s6770_s5  ;;  %s6806_s5 = smov 112  }
   0x6   :  { %6817 = sst [smem:[#allocation7_spill]] %s6771_s8  ;;  %s4689_s8 = smov 64  }
   0x7   :  { %6818 = sst [smem:[#allocation8_spill]] %s6772_s6  ;;  %v4421_v30 = vpop.eup %4420 }
   0x8   :  { %6819 = sst [smem:[#allocation9_spill]] %s6773_s7  ;;  %v173_v31 = vmul.f32 32.0, %v4421_v30  ;;  %vm177_vm3 = vweird.f32 %v4421_v30  ;;  %s6831_s7 = smov 112  }
   0x9   :  { %s6820_s24 = sld [smem:[#allocation2_spill]] }
   0xa   :  { %s6821_s28 = sld [smem:[#allocation3_spill]]  ;;  %v174_v32 = vsub.f32 1.0, %v173_v31 }
   0xb   :  { %s6822_s3 = sld [smem:[#allocation4_spill]] }
   0xc   :  { %v175_v33 = vmul.f32 %v4421_v30, %v174_v32  ;;  %s6823_s25 = sld [smem:[#allocation5_spill]] }
   0xd   :  { %s6824_s26 = sld [smem:[#allocation6_spill]] }
   0xe   :  { %v176_v34 = vadd.f32 %v4421_v30, %v175_v33  ;;  %s6825_s27 = sld [smem:[#allocation7_spill]] }
   0xf   :  { %v87_v0 = vld [vmem:[%s6820_s24 + $0x18] sm:$0xff]  ;;  %v86_v1 = vld [vmem:[%s6820_s24 + $0x10] sm:$0xff]  ;;  %v85_v2 = vld [vmem:[%s6820_s24 + $0x8] sm:$0xff]  ;;  %s6826_s0 = sld [smem:[#allocation8_spill]] }
  0x10   :  { %3932 = vmatpush.xpose.msk.msra.mxu0 %vm93_vm0, %v87_v0  ;;  %v84_v3 = vld [vmem:[%s6820_s24] sm:$0xff]  ;;  %v75_v5 = vld [vmem:[%s6821_s28 + $0x8] sm:$0xff]  ;;  %v76_v6 = vld [vmem:[%s6821_s28 + $0x10] sm:$0xff]  ;;  %v4875_v35 = vsel %vm177_vm3, %v4421_v30, %v176_v34  ;;  %s6827_s6 = sld [smem:[#allocation9_spill]]  ;;  %s6808_s24 = smov 72  }
  0x11   :  { %v74_v4 = vld [vmem:[%s6821_s28] sm:$0xff]  ;;  %v77_v7 = vld [vmem:[%s6821_s28 + $0x18] sm:$0xff]  ;;  %v89_v13 = vld [vmem:[%s6822_s3 + $0x8] sm:$0xff] }
  0x12   :  { %v78_v8 = vld [vmem:[%s6821_s28 + $0x20] sm:$0x3]  ;;  %v90_v17 = vld [vmem:[%s6822_s3 + $0x10] sm:$0xff]  ;;  %v91_v21 = vld [vmem:[%s6822_s3 + $0x18] sm:$0xff]  ;;  %s6800_s28 = smov 40  }
  0x13   :  { %v88_v9 = vld [vmem:[%s6822_s3] sm:$0xff] }
  0x14   :  { %3933 = vmatpush.xpose.msk.msra.mxu0 %vm93_vm0, %v86_v1  ;;  %v92_v25 = vld [vmem:[%s6822_s3 + $0x20] sm:$0x3]  ;;  %s6810_s3 = smov 120  }
  0x18   :  { %3934 = vmatpush.xpose.msk.msra.mxu0 %vm93_vm0, %v85_v2 }
  0x1c   :  { %3935 = vmatpush.xpose.msk.msra.mxu0 %vm93_vm0, %v84_v3 }
  0x1f   :  { %3936 = vmatmul.msk.f32.vlgmr.msra.gmra.mxu0 %vm93_vm0, %v74_v4 }
  0x27   :  { %3937 = vmatmul.msk.f32.gmra.mxu0 %vm93_vm0, %v75_v5 }
  0x2f   :  { %3938 = vmatmul.msk.f32.gmra.mxu0 %vm93_vm0, %v76_v6 }
  0x37   :  { %3939 = vmatmul.msk.f32.gmra.mxu0 %vm93_vm0, %v77_v7 }
  0x3f   :  { %3940 = vmatmul.msk.f32.gmra.mxu0 %vm93_vm0, %v78_v8 }
  0x9c   :  { %v138_v10 = vpop.f32.mrf.mxu0 }
  0x9d   :  { %v139_v11 = vadd.f32 %v138_v10, %v88_v9 }
  0x9f   :  { %v156_v12 = vsel %vm155_vm1, %v139_v11, 0.0 }
  0xa0   :  { %157 = vadd.xlane.f32.xlu0 %v156_v12 }
  0xa4   :  { %v141_v14 = vpop.f32.mrf.mxu0 }
  0xa5   :  { %v142_v15 = vadd.f32 %v141_v14, %v89_v13  ;;  %v4909_v14 = vld [vmem:[%s6823_s25] ss:$0 sm:$0xff] }
  0xa7   :  { %v159_v16 = vsel %vm155_vm1, %v142_v15, 0.0 }
  0xa8   :  { %160 = vadd.xlane.f32.xlu0 %v159_v16 }
  0xac   :  { %v144_v18 = vpop.f32.mrf.mxu0 }
  0xad   :  { %v145_v19 = vadd.f32 %v144_v18, %v90_v17  ;;  %v4914_v18 = vld [vmem:[%s6824_s26] ss:$0 sm:$0xff]  ;;  %s4690_s26 = smov 88  }
  0xaf   :  { %v162_v20 = vsel %vm155_vm1, %v145_v19, 0.0 }
  0xb0   :  { %163 = vadd.xlane.f32.xlu1 %v162_v20 }
  0xb4   :  { %v147_v22 = vpop.f32.mrf.mxu0 }
  0xb5   :  { %v148_v23 = vadd.f32 %v147_v22, %v91_v21 }
  0xb7   :  { %v165_v24 = vsel %vm155_vm1, %v148_v23, 0.0 }
  0xb8   :  { %166 = vadd.xlane.f32.xlu1 %v165_v24 }
  0xbc   :  { %v150_v26 = vpop.f32.mrf.mxu0 }
  0xbd   :  { %v151_v27 = vadd.f32 %v150_v26, %v92_v25 }
  0xbf   :  { %v169_v28 = vsel %vm168_vm2, %v151_v27, 0.0 }
  0xc0   :  { %170 = vadd.xlane.f32.xlu2 %v169_v28 }
 0x113   :  { %v158_v36 = vpop.xlane.xlu0 %157 }
 0x114   :  { %v179_v37 = vmul.f32 %v4875_v35, %v158_v36 }
 0x116   :  { %v184_v38 = vsub.f32 %v139_v11, %v179_v37 }
 0x118   :  { %v189_v39 = vmul.f32 %v184_v38, %v184_v38 }
 0x11a   :  { %v194_v40 = vsel %vm155_vm1, %v189_v39, 0.0 }
 0x11b   :  { %195 = vadd.xlane.f32.xlu2 %v194_v40  ;;  %v161_v41 = vpop.xlane.xlu0 %160 }
 0x11c   :  { %v180_v42 = vmul.f32 %v4875_v35, %v161_v41 }
 0x11e   :  { %v4880_v43 = vsub.f32 %v142_v15, %v180_v42 }
 0x120   :  { %v190_v44 = vmul.f32 %v4880_v43, %v4880_v43 }
 0x122   :  { %v197_v45 = vsel %vm155_vm1, %v190_v44, 0.0 }
 0x123   :  { %v164_v46 = vpop.xlane.xlu1 %163  ;;  %198 = vadd.xlane.f32.xlu0 %v197_v45 }
 0x124   :  { %v181_v47 = vmul.f32 %v4875_v35, %v164_v46 }
 0x126   :  { %v4886_v48 = vsub.f32 %v145_v19, %v181_v47 }
 0x128   :  { %v191_v49 = vmul.f32 %v4886_v48, %v4886_v48 }
 0x12a   :  { %v200_v50 = vsel %vm155_vm1, %v191_v49, 0.0 }
 0x12b   :  { %201 = vadd.xlane.f32.xlu1 %v200_v50  ;;  %v167_v51 = vpop.xlane.xlu1 %166 }
 0x12c   :  { %v182_v52 = vmul.f32 %v4875_v35, %v167_v51 }
 0x12e   :  { %v4892_v53 = vsub.f32 %v148_v23, %v182_v52 }
 0x130   :  { %v192_v54 = vmul.f32 %v4892_v53, %v4892_v53 }
 0x132   :  { %v203_v55 = vsel %vm155_vm1, %v192_v54, 0.0 }
 0x133   :  { %v171_v56 = vpop.xlane.xlu2 %170  ;;  %204 = vadd.xlane.f32.xlu2 %v203_v55 }
 0x134   :  { %v183_v57 = vmul.f32 %v4875_v35, %v171_v56 }
 0x136   :  { %v4898_v58 = vsub.f32 %v151_v27, %v183_v57 }
 0x138   :  { %v193_v59 = vmul.f32 %v4898_v58, %v4898_v58 }
 0x13a   :  { %v206_v60 = vsel %vm168_vm2, %v193_v59, 0.0 }
 0x13b   :  { %207 = vadd.xlane.f32.xlu0 %v206_v60 }
 0x18e   :  { %v196_v61 = vpop.xlane.xlu2 %195 }
 0x18f   :  { %v209_v62 = vmul.f32 %v196_v61, %v4875_v35 }
 0x191   :  { %v214_v63 = vadd.f32 1e-05, %v209_v62 }
 0x193   :  { %4422 = vrsqrt.f32 %v214_v63  ;;  %vm225_vm5 = vweird.f32 %v214_v63 }
 0x196   :  { %v199_v0 = vpop.xlane.xlu0 %198 }
 0x197   :  { %v210_v1 = vmul.f32 %v199_v0, %v4875_v35 }
 0x199   :  { %v4423_v2 = vpop.eup %4422  ;;  %v215_v3 = vadd.f32 1e-05, %v210_v1 }
 0x19a   :  { %v220_v4 = vmul.f32 %v4423_v2, %v214_v63  ;;  %vm226_vm4 = vweird.f32 %v4423_v2 }
 0x19b   :  { %4424 = vrsqrt.f32 %v215_v3  ;;  %vm227_vm6 = vmor %vm225_vm5, %vm226_vm4  ;;  %vm235_vm8 = vweird.f32 %v215_v3 }
 0x19c   :  { %v221_v5 = vmul.f32 %v4423_v2, %v220_v4 }
 0x19e   :  { %v222_v6 = vmul.f32 0.5, %v221_v5  ;;  %v202_v7 = vpop.xlane.xlu1 %201 }
 0x19f   :  { %v211_v8 = vmul.f32 %v202_v7, %v4875_v35 }
 0x1a0   :  { %v223_v9 = vsub.f32 1.5, %v222_v6 }
 0x1a1   :  { %v4425_v10 = vpop.eup %4424  ;;  %v216_v11 = vadd.f32 1e-05, %v211_v8 }
 0x1a2   :  { %v224_v12 = vmul.f32 %v4423_v2, %v223_v9  ;;  %v230_v13 = vmul.f32 %v4425_v10, %v215_v3  ;;  %vm236_vm7 = vweird.f32 %v4425_v10 }
 0x1a3   :  { %4426 = vrsqrt.f32 %v216_v11  ;;  %vm237_vm9 = vmor %vm235_vm8, %vm236_vm7  ;;  %vm245_vm11 = vweird.f32 %v216_v11 }
 0x1a4   :  { %v231_v15 = vmul.f32 %v4425_v10, %v230_v13  ;;  %v228_v16 = vsel %vm227_vm6, %v4423_v2, %v224_v12  ;;  %v429_v12 = vld [vmem:[%s6825_s27 + $0x58] sm:$0xff] }
 0x1a5   :  { %v269_v17 = vmul.f32 %v228_v16, %v184_v38  ;;  %3941 = vmatpush.xpose.msk.msra.mxu1 %vm155_vm1, %v429_v12 }
 0x1a6   :  { %v232_v19 = vmul.f32 0.5, %v231_v15  ;;  %v205_v20 = vpop.xlane.xlu2 %204 }
 0x1a7   :  { %v212_v21 = vmul.f32 %v205_v20, %v4875_v35  ;;  %v277_v22 = vmul.f32 %v4909_v14, %v269_v17  ;;  %v427_v17 = vld [vmem:[%s6825_s27 + $0x48] sm:$0xff] }
 0x1a8   :  { %v233_v23 = vsub.f32 1.5, %v232_v19 }
 0x1a9   :  { %v4427_v24 = vpop.eup %4426  ;;  %v217_v25 = vadd.f32 1e-05, %v212_v21  ;;  %v4919_v26 = vadd.f32 %v4914_v18, %v277_v22  ;;  %v426_v21 = vld [vmem:[%s6825_s27 + $0x40] sm:$0xff] }
 0x1aa   :  { %v234_v27 = vmul.f32 %v4425_v10, %v233_v23  ;;  %v240_v28 = vmul.f32 %v4427_v24, %v216_v11  ;;  %vm246_vm10 = vweird.f32 %v4427_v24 }
 0x1ab   :  { %4428 = vrsqrt.f32 %v217_v25  ;;  %v292_v29 = vsel %vm155_vm1, %v4919_v26, 0.0  ;;  %vm247_vm12 = vmor %vm245_vm11, %vm246_vm10  ;;  %vm255_vm14 = vweird.f32 %v217_v25 }
 0x1ac   :  { %v241_v30 = vmul.f32 %v4427_v24, %v240_v28  ;;  %293 = vadd.xlane.f32.xlu1 %v292_v29  ;;  %v238_v31 = vsel %vm237_vm9, %v4425_v10, %v234_v27 }
 0x1ad   :  { %v270_v32 = vmul.f32 %v238_v31, %v4880_v43 }
 0x1ae   :  { %v242_v33 = vmul.f32 0.5, %v241_v30  ;;  %v208_v34 = vpop.xlane.xlu0 %207 }
 0x1af   :  { %v213_v36 = vmul.f32 %v208_v34, %v4875_v35  ;;  %v278_v37 = vmul.f32 %v4909_v14, %v270_v32 }
 0x1b0   :  { %v243_v38 = vsub.f32 1.5, %v242_v33 }
 0x1b1   :  { %v4429_v39 = vpop.eup %4428  ;;  %v218_v40 = vadd.f32 1e-05, %v213_v36  ;;  %v4927_v41 = vadd.f32 %v4914_v18, %v278_v37 }
 0x1b2   :  { %v244_v42 = vmul.f32 %v4427_v24, %v243_v38  ;;  %v250_v44 = vmul.f32 %v4429_v39, %v217_v25  ;;  %vm256_vm13 = vweird.f32 %v4429_v39  ;;  %v424_v38 = vld [vmem:[%s6825_s27 + $0x30] sm:$0xff] }
 0x1b3   :  { %4430 = vrsqrt.f32 %v218_v40  ;;  %v295_v43 = vsel %vm155_vm1, %v4927_v41, 0.0  ;;  %vm257_vm15 = vmor %vm255_vm14, %vm256_vm13  ;;  %vm265_vm3 = vweird.f32 %v218_v40 }
 0x1b4   :  { %v251_v45 = vmul.f32 %v4429_v39, %v250_v44  ;;  %296 = vadd.xlane.f32.xlu2 %v295_v43  ;;  %v248_v46 = vsel %vm247_vm12, %v4427_v24, %v244_v42  ;;  %v425_v24 = vld [vmem:[%s6825_s27 + $0x38] sm:$0xff]  ;;  %v420_v44 = vld [vmem:[%s6825_s27 + $0x10] sm:$0xff]  ;;  %v419_v43 = vld [vmem:[%s6825_s27 + $0x8] sm:$0xff] }
 0x1b5   :  { %v271_v47 = vmul.f32 %v248_v46, %v4886_v48  ;;  %v421_v42 = vld [vmem:[%s6825_s27 + $0x18] sm:$0xff] }
 0x1b6   :  { %v252_v49 = vmul.f32 0.5, %v251_v45  ;;  %v418_v45 = vld [vmem:[%s6825_s27] sm:$0xff] }
 0x1b7   :  { %v279_v50 = vmul.f32 %v4909_v14, %v271_v47 }
 0x1b8   :  { %v253_v51 = vsub.f32 1.5, %v252_v49 }
 0x1b9   :  { %v4431_v52 = vpop.eup %4430  ;;  %v4934_v54 = vadd.f32 %v4914_v18, %v279_v50 }
 0x1ba   :  { %v254_v55 = vmul.f32 %v4429_v39, %v253_v51  ;;  %v260_v56 = vmul.f32 %v4431_v52, %v218_v40  ;;  %vm266_vm0 = vweird.f32 %v4431_v52  ;;  %v422_v40 = vld [vmem:[%s6825_s27 + $0x20] sm:$0xff] }
 0x1bb   :  { %v298_v57 = vsel %vm155_vm1, %v4934_v54, 0.0  ;;  %vm267_vm4 = vmor %vm265_vm3, %vm266_vm0 }
 0x1bc   :  { %v261_v59 = vmul.f32 %v4431_v52, %v260_v56  ;;  %299 = vadd.xlane.f32.xlu0 %v298_v57  ;;  %v258_v60 = vsel %vm257_vm15, %v4429_v39, %v254_v55  ;;  %v423_v39 = vld [vmem:[%s6825_s27 + $0x28] sm:$0xff] }
 0x1bd   :  { %v272_v48 = vmul.f32 %v258_v60, %v4892_v53 }
 0x1be   :  { %v262_v61 = vmul.f32 0.5, %v261_v59 }
 0x1bf   :  { %v280_v62 = vmul.f32 %v4909_v14, %v272_v48 }
 0x1c0   :  { %v263_v63 = vsub.f32 1.5, %v262_v61 }
 0x1c1   :  { %v4941_v0 = vadd.f32 %v4914_v18, %v280_v62 }
 0x1c2   :  { %v264_v1 = vmul.f32 %v4431_v52, %v263_v63 }
 0x1c3   :  { %v301_v2 = vsel %vm155_vm1, %v4941_v0, 0.0 }
 0x1c4   :  { %302 = vadd.xlane.f32.xlu1 %v301_v2  ;;  %v268_v3 = vsel %vm267_vm4, %v4431_v52, %v264_v1 }
 0x1c5   :  { %v273_v4 = vmul.f32 %v268_v3, %v4898_v58  ;;  %v5041_v3 = vld [vmem:[%s6826_s0] ss:$0 sm:$0xff] }
 0x1c7   :  { %v281_v53 = vmul.f32 %v4909_v14, %v273_v4  ;;  %v428_v14 = vld [vmem:[%s6825_s27 + $0x50] sm:$0xff] }
 0x1c8   :  { %3942 = vmatpush.xpose.msk.msra.mxu1 %vm155_vm1, %v428_v14 }
 0x1c9   :  { %v4948_v5 = vadd.f32 %v4914_v18, %v281_v53 }
 0x1cb   :  { %v304_v6 = vsel %vm168_vm2, %v4948_v5, 0.0 }
 0x1cc   :  { %305 = vadd.xlane.f32.xlu2 %v304_v6  ;;  %3943 = vmatpush.xpose.msk.msra.mxu1 %vm155_vm1, %v427_v17 }
 0x1d0   :  { %3944 = vmatpush.xpose.msk.msra.mxu1 %vm155_vm1, %v426_v21 }
 0x1d4   :  { %3945 = vmatpush.xpose.msk.msra.mxu1 %vm155_vm1, %v425_v24 }
 0x1d8   :  { %3946 = vmatpush.xpose.msk.msra.mxu1 %vm155_vm1, %v424_v38 }
 0x1dc   :  { %3947 = vmatpush.xpose.msk.msra.mxu1 %vm155_vm1, %v423_v39 }
 0x1e0   :  { %3948 = vmatpush.xpose.msk.msra.mxu1 %vm155_vm1, %v422_v40 }
 0x1e4   :  { %3949 = vmatpush.xpose.msk.msra.mxu1 %vm155_vm1, %v421_v42 }
 0x1e8   :  { %3950 = vmatpush.xpose.msk.msra.mxu1 %vm155_vm1, %v420_v44 }
 0x1ec   :  { %3951 = vmatpush.xpose.msk.msra.mxu1 %vm155_vm1, %v419_v43 }
 0x1f0   :  { %3952 = vmatpush.xpose.msk.msra.mxu1 %vm155_vm1, %v418_v45 }
 0x21f   :  { %v294_v7 = vpop.xlane.xlu1 %293 }
 0x220   :  { %v307_v8 = vmul.f32 %v294_v7, %v4875_v35  ;;  %v5047_v7 = vld [vmem:[%s6827_s6] ss:$0 sm:$0xff] }
 0x222   :  { %v4954_v9 = vsub.f32 %v4919_v26, %v307_v8 }
 0x224   :  { %v317_v10 = vmul.f32 %v4954_v9, %v4954_v9 }
 0x226   :  { %v322_v58 = vsel %vm155_vm1, %v317_v10, 0.0 }
 0x227   :  { %323 = vadd.xlane.f32.xlu0 %v322_v58  ;;  %v297_v11 = vpop.xlane.xlu2 %296 }
 0x228   :  { %v308_v13 = vmul.f32 %v297_v11, %v4875_v35 }
 0x22a   :  { %v4968_v15 = vsub.f32 %v4927_v41, %v308_v13 }
 0x22c   :  { %v318_v16 = vmul.f32 %v4968_v15, %v4968_v15 }
 0x22e   :  { %v325_v18 = vsel %vm155_vm1, %v318_v16, 0.0 }
 0x22f   :  { %326 = vadd.xlane.f32.xlu1 %v325_v18  ;;  %v300_v19 = vpop.xlane.xlu0 %299 }
 0x230   :  { %v309_v20 = vmul.f32 %v300_v19, %v4875_v35 }
 0x232   :  { %v4983_v22 = vsub.f32 %v4934_v54, %v309_v20 }
 0x234   :  { %v319_v23 = vmul.f32 %v4983_v22, %v4983_v22 }
 0x236   :  { %v328_v25 = vsel %vm155_vm1, %v319_v23, 0.0 }
 0x237   :  { %v303_v27 = vpop.xlane.xlu1 %302  ;;  %329 = vadd.xlane.f32.xlu2 %v328_v25 }
 0x238   :  { %v310_v28 = vmul.f32 %v303_v27, %v4875_v35 }
 0x23a   :  { %v4995_v29 = vsub.f32 %v4941_v0, %v310_v28 }
 0x23c   :  { %v320_v30 = vmul.f32 %v4995_v29, %v4995_v29 }
 0x23e   :  { %v331_v31 = vsel %vm155_vm1, %v320_v30, 0.0 }
 0x23f   :  { %332 = vadd.xlane.f32.xlu0 %v331_v31  ;;  %v306_v32 = vpop.xlane.xlu2 %305 }
 0x240   :  { %v311_v33 = vmul.f32 %v306_v32, %v4875_v35 }
 0x242   :  { %v5002_v34 = vsub.f32 %v4948_v5, %v311_v33 }
 0x244   :  { %v321_v36 = vmul.f32 %v5002_v34, %v5002_v34 }
 0x246   :  { %v334_v37 = vsel %vm168_vm2, %v321_v36, 0.0 }
 0x247   :  { %335 = vadd.xlane.f32.xlu1 %v334_v37 }
 0x29a   :  { %v324_v46 = vpop.xlane.xlu0 %323 }
 0x29b   :  { %v337_v47 = vmul.f32 %v324_v46, %v4875_v35 }
 0x29d   :  { %v342_v49 = vadd.f32 1e-05, %v337_v47 }
 0x29f   :  { %4432 = vrsqrt.f32 %v342_v49  ;;  %vm353_vm6 = vweird.f32 %v342_v49 }
 0x2a2   :  { %v327_v50 = vpop.xlane.xlu1 %326 }
 0x2a3   :  { %v338_v51 = vmul.f32 %v327_v50, %v4875_v35 }
 0x2a5   :  { %v4433_v52 = vpop.eup %4432  ;;  %v343_v55 = vadd.f32 1e-05, %v338_v51 }
 0x2a6   :  { %v348_v56 = vmul.f32 %v4433_v52, %v342_v49  ;;  %vm354_vm5 = vweird.f32 %v4433_v52 }
 0x2a7   :  { %4434 = vrsqrt.f32 %v343_v55  ;;  %vm355_vm7 = vmor %vm353_vm6, %vm354_vm5  ;;  %vm363_vm9 = vweird.f32 %v343_v55  ;;  %vm541_vm6 = vcmask 64512  }
 0x2a8   :  { %v349_v57 = vmul.f32 %v4433_v52, %v348_v56 }
 0x2aa   :  { %v350_v59 = vmul.f32 0.5, %v349_v57  ;;  %v330_v60 = vpop.xlane.xlu2 %329 }
 0x2ab   :  { %v339_v48 = vmul.f32 %v330_v60, %v4875_v35 }
 0x2ac   :  { %v351_v61 = vsub.f32 1.5, %v350_v59 }
 0x2ad   :  { %v4435_v62 = vpop.eup %4434  ;;  %v344_v63 = vadd.f32 1e-05, %v339_v48 }
 0x2ae   :  { %v352_v1 = vmul.f32 %v4433_v52, %v351_v61  ;;  %v358_v2 = vmul.f32 %v4435_v62, %v343_v55  ;;  %vm364_vm8 = vweird.f32 %v4435_v62  ;;  %v4405_v61 = vld [vmem:[%s6774_s9] ss:$0 sm:$0xff] }
 0x2af   :  { %4436 = vrsqrt.f32 %v344_v63  ;;  %vm365_vm10 = vmor %vm363_vm9, %vm364_vm8  ;;  %vm373_vm12 = vweird.f32 %v344_v63  ;;  %vm612_vm8 = vcmask 271360   ;;  %vm685_vm9 = vcmask 1041408  }
 0x2b0   :  { %v359_v4 = vmul.f32 %v4435_v62, %v358_v2  ;;  %v356_v53 = vsel %vm355_vm7, %v4433_v52, %v352_v1  ;;  %vm599_vm7 = vcmask 277504  }
 0x2b1   :  { %v397_v6 = vmul.f32 %v356_v53, %v4954_v9 }
 0x2b2   :  { %v360_v8 = vmul.f32 0.5, %v359_v4  ;;  %v333_v10 = vpop.xlane.xlu0 %332 }
 0x2b3   :  { %v340_v58 = vmul.f32 %v333_v10, %v4875_v35  ;;  %v405_v11 = vmul.f32 %v5041_v3, %v397_v6 }
 0x2b4   :  { %v361_v12 = vsub.f32 1.5, %v360_v8 }
 0x2b5   :  { %v4437_v13 = vpop.eup %4436  ;;  %v345_v14 = vadd.f32 1e-05, %v340_v58  ;;  %v413_v16 = vadd.f32 %v5047_v7, %v405_v11 }
 0x2b6   :  { %v362_v17 = vmul.f32 %v4435_v62, %v361_v12  ;;  %v368_v9 = vmul.f32 %v4437_v13, %v344_v63  ;;  %vm374_vm11 = vweird.f32 %v4437_v13 }
 0x2b7   :  { %4438 = vrsqrt.f32 %v345_v14  ;;  %3953 = vmatmul.msk.f32.vlgmr.msra.gmra.mxu1 %vm155_vm1, %v413_v16  ;;  %vm375_vm13 = vmor %vm373_vm12, %vm374_vm11  ;;  %vm383_vm15 = vweird.f32 %v345_v14 }
 0x2b8   :  { %v369_v18 = vmul.f32 %v4437_v13, %v368_v9  ;;  %v366_v19 = vsel %vm365_vm10, %v4435_v62, %v362_v17 }
 0x2b9   :  { %v398_v20 = vmul.f32 %v366_v19, %v4968_v15 }
 0x2ba   :  { %v370_v21 = vmul.f32 0.5, %v369_v18  ;;  %v336_v23 = vpop.xlane.xlu1 %335  ;;  %v5128_v18 = vld [vmem:[%s6775_s1 + $0x10] sm:$0xff] }
 0x2bb   :  { %v341_v24 = vmul.f32 %v336_v23, %v4875_v35  ;;  %v406_v25 = vmul.f32 %v5041_v3, %v398_v20  ;;  %v5135_v23 = vld [vmem:[%s6775_s1 + $0x18] sm:$0xff] }
 0x2bc   :  { %v371_v27 = vsub.f32 1.5, %v370_v21 }
 0x2bd   :  { %v4439_v28 = vpop.eup %4438  ;;  %v346_v30 = vadd.f32 1e-05, %v341_v24  ;;  %v414_v31 = vadd.f32 %v5047_v7, %v406_v25 }
 0x2be   :  { %v372_v32 = vmul.f32 %v4437_v13, %v371_v27  ;;  %v378_v33 = vmul.f32 %v4439_v28, %v345_v14  ;;  %vm384_vm14 = vweird.f32 %v4439_v28 }
 0x2bf   :  { %4440 = vrsqrt.f32 %v346_v30  ;;  %3954 = vmatmul.msk.f32.gmra.mxu1 %vm155_vm1, %v414_v31  ;;  %vm385_vm0 = vmor %vm383_vm15, %vm384_vm14  ;;  %vm393_vm4 = vweird.f32 %v346_v30 }
 0x2c0   :  { %v379_v15 = vmul.f32 %v4439_v28, %v378_v33  ;;  %v376_v36 = vsel %vm375_vm13, %v4437_v13, %v372_v32 }
 0x2c1   :  { %v399_v37 = vmul.f32 %v376_v36, %v4983_v22 }
 0x2c2   :  { %v380_v38 = vmul.f32 0.5, %v379_v15 }
 0x2c3   :  { %v407_v39 = vmul.f32 %v5041_v3, %v399_v37 }
 0x2c4   :  { %v381_v40 = vsub.f32 1.5, %v380_v38 }
 0x2c5   :  { %v4441_v42 = vpop.eup %4440  ;;  %v415_v44 = vadd.f32 %v5047_v7, %v407_v39 }
 0x2c6   :  { %v382_v43 = vmul.f32 %v4439_v28, %v381_v40  ;;  %v388_v45 = vmul.f32 %v4441_v42, %v346_v30  ;;  %vm394_vm3 = vweird.f32 %v4441_v42 }
 0x2c7   :  { %3955 = vmatmul.msk.f32.gmra.mxu1 %vm155_vm1, %v415_v44  ;;  %vm395_vm5 = vmor %vm393_vm4, %vm394_vm3 }
 0x2c8   :  { %v389_v46 = vmul.f32 %v4441_v42, %v388_v45  ;;  %v386_v47 = vsel %vm385_vm0, %v4439_v28, %v382_v43  ;;  %v5142_v28 = vld [vmem:[%s6775_s1 + $0x20] sm:$0x3]  ;;  %v5174_v43 = vld [vmem:[%s6775_s1 + $0x8] sm:$0xff] }
 0x2c9   :  { %v400_v49 = vmul.f32 %v386_v47, %v4995_v29 }
 0x2ca   :  { %v390_v50 = vmul.f32 0.5, %v389_v46 }
 0x2cb   :  { %v408_v22 = vmul.f32 %v5041_v3, %v400_v49 }
 0x2cc   :  { %v391_v51 = vsub.f32 1.5, %v390_v50 }
 0x2cd   :  { %v416_v52 = vadd.f32 %v5047_v7, %v408_v22 }
 0x2ce   :  { %v392_v55 = vmul.f32 %v4441_v42, %v391_v51 }
 0x2cf   :  { %3956 = vmatmul.msk.f32.gmra.mxu1 %vm155_vm1, %v416_v52 }
 0x2d0   :  { %v396_v56 = vsel %vm395_vm5, %v4441_v42, %v392_v55 }
 0x2d1   :  { %v401_v57 = vmul.f32 %v396_v56, %v5002_v34 }
 0x2d3   :  { %v409_v59 = vmul.f32 %v5041_v3, %v401_v57 }
 0x2d5   :  { %v417_v60 = vadd.f32 %v5047_v7, %v409_v59 }
 0x2d7   :  { %3957 = vmatmul.msk.f32.gmra.mxu1 %vm155_vm1, %v417_v60 }
 0x334   :  { %v502_v29 = vpop.f32.mrf.mxu1 }
 0x335   :  { %v5081_v3 = vadd.f32 %v4405_v61, %v502_v29 }
 0x337   :  { %v5099_v11 = vmul.f32 0.35355338, %v5081_v3 }
 0x33c   :  { %v505_v48 = vpop.f32.mrf.mxu1 }
 0x33d   :  { %v5089_v53 = vadd.f32 %v4405_v61, %v505_v48 }
 0x33f   :  { %v5104_v12 = vmul.f32 0.35355338, %v5089_v53  ;;  %v5186_v52 = vpack.i.bf16 %v5081_v3, %v5089_v53 }
 0x344   :  { %v508_v62 = vpop.f32.mrf.mxu1 }
 0x345   :  { %v5073_v63 = vadd.f32 %v4405_v61, %v508_v62 }
 0x347   :  { %535 = vrot.lane.b32.xlu1 %v5073_v63, %s4688_s29  ;;  %v5109_v13 = vmul.f32 0.35355338, %v5073_v63 }
 0x34c   :  { %v511_v34 = vpop.f32.mrf.mxu1 }
 0x34d   :  { %v5077_v1 = vadd.f32 %v4405_v61, %v511_v34 }
 0x34f   :  { %537 = vrot.lane.b32.xlu0 %v5077_v1, %s4688_s29  ;;  %v5114_v14 = vmul.f32 0.35355338, %v5077_v1  ;;  %v5150_v33 = vpack.i.bf16 %v5073_v63, %v5077_v1 }
 0x354   :  { %v514_v2 = vpop.f32.mrf.mxu1 }
 0x355   :  { %v5083_v4 = vadd.f32 %v4405_v61, %v514_v2  ;;  %v5197_v61 = vld [vmem:[%s6775_s1] sm:$0xff] }
 0x357   :  { %539 = vrot.lane.b32.xlu2 %v5083_v4, %s4688_s29  ;;  %531 = vrot.lane.b32.xlu0 %v5081_v3, %s4688_s29  ;;  %v5119_v16 = vmul.f32 0.35355338, %v5083_v4 }
 0x35f   :  { %533 = vrot.lane.b32.xlu2 %v5089_v53, %s4688_s29 }
 0x3b1   :  { %v540_v6 = vpop.permute.xlu2 %539 }
 0x3b2   :  { %3958 = vmatpush.xpose.msk.msra.mxu2 %vm541_vm6, %v540_v6 }
 0x3b9   :  { %v536_v8 = vpop.permute.xlu1 %535  ;;  %v534_v10 = vpop.permute.xlu2 %533 }
 0x3c1   :  { %v538_v7 = vpop.permute.xlu0 %537 }
 0x3c2   :  { %3959 = vmatpush.xpose.msk.msra.mxu2 %vm541_vm6, %v538_v7 }
 0x3c6   :  { %3960 = vmatpush.xpose.msk.msra.mxu2 %vm541_vm6, %v536_v8 }
 0x3c9   :  { %v532_v58 = vpop.permute.xlu0 %531 }
 0x3ca   :  { %3961 = vmatpush.xpose.msk.msra.mxu2 %vm541_vm6, %v534_v10 }
 0x3ce   :  { %3962 = vmatpush.xpose.msk.msra.mxu2 %vm541_vm6, %v532_v58 }
 0x3d1   :  { %3963 = vmatmul.msk.f32.vlgmr.msra.gmra.mxu2 %vm541_vm6, %v5099_v11 }
 0x3d9   :  { %3964 = vmatmul.msk.f32.gmra.mxu2 %vm541_vm6, %v5104_v12 }
 0x3e1   :  { %3965 = vmatmul.msk.f32.gmra.mxu2 %vm541_vm6, %v5109_v13 }
 0x3e9   :  { %3966 = vmatmul.msk.f32.gmra.mxu2 %vm541_vm6, %v5114_v14 }
 0x3f1   :  { %3967 = vmatmul.msk.f32.gmra.mxu2 %vm541_vm6, %v5119_v16 }
 0x454   :  { %v5123_v17 = vpop.f32.mrf.mxu2 }
 0x455   :  { %v585_v34 = vadd.f32 %v5123_v17, %v5197_v61 }
 0x457   :  { %v600_v6 = vsel %vm599_vm7, %v585_v34, -inf }
 0x45c   :  { %v587_v9 = vpop.f32.mrf.mxu2 }
 0x45d   :  { %v588_v46 = vadd.f32 %v587_v9, %v5174_v43 }
 0x45f   :  { %v603_v49 = vsel %vm599_vm7, %v588_v46, -inf }
 0x464   :  { %v590_v19 = vpop.f32.mrf.mxu2 }
 0x465   :  { %v591_v20 = vadd.f32 %v590_v19, %v5128_v18 }
 0x467   :  { %v606_v21 = vsel %vm599_vm7, %v591_v20, -inf }
 0x468   :  { %607 = vmax.xlane.f32.xlu2 %v606_v21 }
 0x46c   :  { %v593_v24 = vpop.f32.mrf.mxu2 }
 0x46d   :  { %v594_v25 = vadd.f32 %v593_v24, %v5135_v23 }
 0x46f   :  { %v609_v27 = vsel %vm599_vm7, %v594_v25, -inf }
 0x470   :  { %610 = vmax.xlane.f32.xlu1 %v609_v27 }
 0x474   :  { %v596_v30 = vpop.f32.mrf.mxu2 }
 0x475   :  { %v597_v31 = vadd.f32 %v596_v30, %v5142_v28 }
 0x477   :  { %v613_v32 = vsel %vm612_vm8, %v597_v31, -inf }
 0x478   :  { %614 = vmax.xlane.f32.xlu0 %v613_v32 }
 0x489   :  { %664 = vrot.lane.b32.xlu1 %v5083_v4, %s4689_s8 }
 0x48c   :  { %4320 = vrot.lane.b32.xlu0 %v5150_v33, %s4689_s8 }
 0x491   :  { %738 = vrot.lane.b32.xlu1 %v5083_v4, %s4690_s26 }
 0x499   :  { %736 = vrot.lane.b32.xlu1 %v5077_v1, %s4690_s26 }
 0x4a1   :  { %734 = vrot.lane.b32.xlu1 %v5073_v63, %s4690_s26 }
 0x4a9   :  { %732 = vrot.lane.b32.xlu1 %v5089_v53, %s4690_s26 }
 0x4b1   :  { %730 = vrot.lane.b32.xlu1 %v5081_v3, %s4690_s26 }
 0x4b9   :  { %722 = vrot.lane.b32.xlu1 %v5104_v12, %s6810_s3 }
 0x4c1   :  { %726 = vrot.lane.b32.xlu1 %v5114_v14, %s6810_s3 }
 0x4c9   :  { %728 = vrot.lane.b32.xlu1 %v5119_v16, %s6810_s3 }
 0x4db   :  { %v608_v15 = vpop.xlane.xlu2 %607 }
 0x4dc   :  { %v618_v36 = vsub.f32 %v591_v20, %v608_v15 }
 0x4de   :  { %v625_v37 = vmul.f32 1.442695, %v618_v36 }
 0x4e0   :  { %4442 = vpow2.f32 %v625_v37 }
 0x4e3   :  { %v611_v38 = vpop.xlane.xlu1 %610 }
 0x4e4   :  { %v619_v39 = vsub.f32 %v594_v25, %v611_v38 }
 0x4e6   :  { %v4443_v40 = vpop.eup %4442  ;;  %v627_v42 = vmul.f32 1.442695, %v619_v39 }
 0x4e7   :  { %v637_v44 = vsel %vm599_vm7, %v4443_v40, 0.0 }
 0x4e8   :  { %4444 = vpow2.f32 %v627_v42  ;;  %638 = vadd.xlane.f32.xlu2 %v637_v44 }
 0x4eb   :  { %v615_v50 = vpop.xlane.xlu0 %614 }
 0x4ec   :  { %v620_v57 = vsub.f32 %v597_v31, %v615_v50 }
 0x4ee   :  { %v5176_v45 = vpop.eup %4444  ;;  %v629_v60 = vmul.f32 1.442695, %v620_v57 }
 0x4ef   :  { %v640_v47 = vsel %vm599_vm7, %v5176_v45, 0.0 }
 0x4f0   :  { %641 = vadd.xlane.f32.xlu0 %v640_v47  ;;  %4446 = vpow2.f32 %v629_v60 }
 0x4f3   :  { %604 = vmax.xlane.f32.xlu1 %v603_v49 }
 0x4f6   :  { %v4447_v48 = vpop.eup %4446 }
 0x4f7   :  { %v643_v62 = vsel %vm612_vm8, %v4447_v48, 0.0 }
 0x4fb   :  { %v665_v22 = vpop.permute.xlu1 %664 }
 0x4fc   :  { %3968 = vmatpush.msk.msrb.mxu2 %vm685_vm9, %v665_v22  ;;  %4297 = vmatpush.msk.msra.mxu3 %vm685_vm9, %v665_v22 }
 0x4fe   :  { %v4321_v51 = vpop.permute.xlu0 %4320 }
 0x4ff   :  { %v4322_v55 = vunpack.i.l.bf16 %v4321_v51  ;;  %v4323_v56 = vunpack.i.h.bf16 %v4321_v51 }
 0x500   :  { %4325 = vrot.lane.b32.xlu2 %v5186_v52, %s4689_s8 }
 0x501   :  { %700 = vmatpush.msrb.mxu2 %v4322_v55  ;;  %4298 = vmatpush.msra.mxu3 %v4322_v55 }
 0x503   :  { %701 = vmatpush.msrb.mxu2 %v4323_v56  ;;  %4299 = vmatpush.msra.mxu3 %v4323_v56  ;;  %v739_v59 = vpop.permute.xlu1 %738 }
 0x504   :  { %720 = vrot.lane.b32.xlu0 %v5099_v11, %s6810_s3 }
 0x50b   :  { %v737_v29 = vpop.permute.xlu1 %736 }
 0x50c   :  { %4335 = vrot.lane.b32.xlu1 %v5186_v52, %s6796_s4 }
 0x513   :  { %v735_v2 = vpop.permute.xlu1 %734 }
 0x51b   :  { %v733_v7 = vpop.permute.xlu1 %732 }
 0x523   :  { %v731_v8 = vpop.permute.xlu1 %730 }
 0x529   :  { %644 = vadd.xlane.f32.xlu2 %v643_v62 }
 0x52b   :  { %v723_v10 = vpop.permute.xlu1 %722 }
 0x52e   :  { %601 = vmax.xlane.f32.xlu0 %v600_v6 }
 0x533   :  { %v727_v58 = vpop.permute.xlu1 %726 }
 0x53b   :  { %v729_v19 = vpop.permute.xlu1 %728 }
 0x541   :  { %724 = vrot.lane.b32.xlu2 %v5109_v13, %s6810_s3 }
 0x55b   :  { %v639_v9 = vpop.xlane.xlu2 %638 }
 0x55c   :  { %4448 = vrcp.f32 %v639_v9 }
 0x562   :  { %v4449_v24 = vpop.eup %4448 }
 0x563   :  { %v4326_v20 = vpop.permute.xlu2 %4325  ;;  %v642_v21 = vpop.xlane.xlu0 %641  ;;  %v653_v31 = vmul.f32 %v4449_v24, %v4443_v40 }
 0x564   :  { %v4327_v25 = vunpack.i.l.bf16 %v4326_v20  ;;  %4450 = vrcp.f32 %v642_v21  ;;  %v4328_v27 = vunpack.i.h.bf16 %v4326_v20 }
 0x566   :  { %702 = vmatpush.msrb.mxu2 %v4327_v25  ;;  %4300 = vmatpush.msra.mxu3 %v4327_v25  ;;  %v605_v17 = vpop.xlane.xlu1 %604 }
 0x567   :  { %v617_v30 = vsub.f32 %v588_v46, %v605_v17 }
 0x568   :  { %703 = vmatpush.msrb.mxu2 %v4328_v27  ;;  %4301 = vmatpush.msra.mxu3 %v4328_v27 }
 0x569   :  { %v623_v32 = vmul.f32 1.442695, %v617_v30  ;;  %3971 = vmatmul.msk.f32.vlgmr.msra.gmra.mxu3 %vm599_vm7, %v653_v31 }
 0x56a   :  { %3974 = vmatpush.xpose.msk.msrb.mxu3 %vm541_vm6, %v739_v59  ;;  %v4451_v15 = vpop.eup %4450 }
 0x56b   :  { %4452 = vpow2.f32 %v623_v32  ;;  %v654_v36 = vmul.f32 %v4451_v15, %v5176_v45 }
 0x56e   :  { %3975 = vmatpush.xpose.msk.msrb.mxu3 %vm541_vm6, %v737_v29 }
 0x571   :  { %v4453_v37 = vpop.eup %4452  ;;  %3972 = vmatmul.msk.f32.gmra.mxu3 %vm599_vm7, %v654_v36 }
 0x572   :  { %3976 = vmatpush.xpose.msk.msrb.mxu3 %vm541_vm6, %v735_v2  ;;  %v634_v38 = vsel %vm599_vm7, %v4453_v37, 0.0 }
 0x573   :  { %635 = vadd.xlane.f32.xlu0 %v634_v38  ;;  %v5272_v38 = vld [vmem:[%s6776_s10 + $0x18] sm:$0xff] }
 0x574   :  { %3999 = vmatpush.xpose.msk.msrb.mxu1 %vm541_vm6, %v5272_v38 }
 0x576   :  { %3977 = vmatpush.xpose.msk.msrb.mxu3 %vm541_vm6, %v733_v7  ;;  %v721_v39 = vpop.permute.xlu0 %720 }
 0x57a   :  { %3978 = vmatpush.xpose.msk.msrb.mxu3 %vm541_vm6, %v731_v8 }
 0x57e   :  { %v4336_v2 = vpop.permute.xlu1 %4335 }
 0x57f   :  { %v4337_v8 = vunpack.i.l.bf16 %v4336_v2 }
 0x587   :  { %855 = vrot.lane.b32.xlu0 %v5083_v4, %s6796_s4 }
 0x59c   :  { %v645_v40 = vpop.xlane.xlu2 %644 }
 0x59d   :  { %4454 = vrcp.f32 %v645_v40 }
 0x5a1   :  { %v602_v42 = vpop.xlane.xlu0 %601 }
 0x5a2   :  { %v616_v44 = vsub.f32 %v585_v34, %v602_v42 }
 0x5a3   :  { %v4455_v45 = vpop.eup %4454 }
 0x5a4   :  { %v621_v46 = vmul.f32 1.442695, %v616_v44  ;;  %v655_v47 = vmul.f32 %v4455_v45, %v4447_v48  ;;  %v725_v22 = vpop.permute.xlu2 %724 }
 0x5a6   :  { %4456 = vpow2.f32 %v621_v46  ;;  %3973 = vmatmul.msk.f32.gmra.mxu3 %vm599_vm7, %v655_v47 }
 0x5ac   :  { %v4457_v49 = vpop.eup %4456 }
 0x5ad   :  { %v631_v50 = vsel %vm599_vm7, %v4457_v49, 0.0 }
 0x5ae   :  { %632 = vadd.xlane.f32.xlu2 %v631_v50  ;;  %3979 = vmatmul.msk.f32.vlgmr.msrb.gmra.mxu3 %vm541_vm6, %v721_v39 }
 0x5b6   :  { %3980 = vmatmul.msk.f32.gmra.mxu3 %vm541_vm6, %v723_v10  ;;  %v4338_v10 = vunpack.i.h.bf16 %v4336_v2 }
 0x5be   :  { %3981 = vmatmul.msk.f32.gmra.mxu3 %vm541_vm6, %v725_v22 }
 0x5c6   :  { %4330 = vrot.lane.b32.xlu2 %v5150_v33, %s6796_s4  ;;  %3982 = vmatmul.msk.f32.gmra.mxu3 %vm541_vm6, %v727_v58  ;;  %s6804_s4 = smov 104  }
 0x5ce   :  { %1050 = vrot.lane.b32.xlu2 %v5083_v4, %s6798_s30  ;;  %3983 = vmatmul.msk.f32.gmra.mxu3 %vm541_vm6, %v729_v19 }
 0x5d6   :  { %1048 = vrot.lane.b32.xlu2 %v5077_v1, %s6798_s30 }
 0x5de   :  { %1046 = vrot.lane.b32.xlu2 %v5073_v63, %s6798_s30 }
 0x5e6   :  { %v636_v51 = vpop.xlane.xlu0 %635 }
 0x5ec   :  { %v5233_v56 = vpop.f32.mrf.mxu3 }
 0x5f4   :  { %v5235_v57 = vpop.f32.mrf.mxu3 }
 0x5f9   :  { %v856_v55 = vpop.permute.xlu0 %855 }
 0x5fa   :  { %3984 = vmatpush.msk.msrb.mxu0 %vm685_vm9, %v856_v55  ;;  %4302 = vmatpush.msk.msra.mxu3 %vm685_vm9, %v856_v55 }
 0x621   :  { %v633_v59 = vpop.xlane.xlu2 %632 }
 0x622   :  { %4458 = vrcp.f32 %v633_v59 }
 0x623   :  { %4460 = vrcp.f32 %v636_v51 }
 0x628   :  { %v4459_v60 = vpop.eup %4458 }
 0x629   :  { %v4331_v29 = vpop.permute.xlu2 %4330  ;;  %v5237_v48 = vpop.f32.mrf.mxu3  ;;  %v651_v62 = vmul.f32 %v4459_v60, %v4457_v49 }
 0x62a   :  { %v4332_v34 = vunpack.i.l.bf16 %v4331_v29  ;;  %v4333_v6 = vunpack.i.h.bf16 %v4331_v29  ;;  %v4461_v7 = vpop.eup %4460 }
 0x62b   :  { %3969 = vmatmul.msk.f32.vlgmr.msrb.gmra.mxu2 %vm599_vm7, %v651_v62  ;;  %v652_v19 = vmul.f32 %v4461_v7, %v4453_v37 }
 0x62c   :  { %890 = vmatpush.msrb.mxu0 %v4332_v34  ;;  %4303 = vmatpush.msra.mxu3 %v4332_v34 }
 0x62e   :  { %891 = vmatpush.msrb.mxu0 %v4333_v6  ;;  %4304 = vmatpush.msra.mxu3 %v4333_v6 }
 0x630   :  { %892 = vmatpush.msrb.mxu0 %v4337_v8  ;;  %4305 = vmatpush.msra.mxu3 %v4337_v8 }
 0x631   :  { %v1051_v58 = vpop.permute.xlu2 %1050  ;;  %v5240_v9 = vpop.f32.mrf.mxu3 }
 0x632   :  { %893 = vmatpush.msrb.mxu0 %v4338_v10  ;;  %4306 = vmatpush.msra.mxu3 %v4338_v10  ;;  %v5316_v22 = vadd.f32 %v5240_v9, %v5197_v61 }
 0x633   :  { %3970 = vmatmul.msk.f32.gmra.mxu2 %vm599_vm7, %v652_v19 }
 0x634   :  { %4008 = vmatpush.xpose.msk.msrb.mxu3 %vm541_vm6, %v1051_v58 }
 0x639   :  { %v1049_v20 = vpop.permute.xlu2 %1048  ;;  %v5244_v21 = vpop.f32.mrf.mxu3 }
 0x63a   :  { %4009 = vmatpush.xpose.msk.msrb.mxu3 %vm541_vm6, %v1049_v20  ;;  %v781_v10 = vadd.f32 %v5244_v21, %v5174_v43 }
 0x63c   :  { %v795_v58 = vsel %vm599_vm7, %v781_v10, -inf }
 0x641   :  { %v1047_v24 = vpop.permute.xlu2 %1046  ;;  %v783_v25 = vpop.f32.mrf.mxu3 }
 0x642   :  { %v784_v17 = vadd.f32 %v783_v25, %v5128_v18  ;;  %4010 = vmatpush.xpose.msk.msrb.mxu3 %vm541_vm6, %v1047_v24 }
 0x644   :  { %v798_v27 = vsel %vm599_vm7, %v784_v17, -inf }
 0x645   :  { %799 = vmax.xlane.f32.xlu1 %v798_v27 }
 0x649   :  { %v786_v30 = vpop.f32.mrf.mxu3 }
 0x64a   :  { %v787_v31 = vadd.f32 %v786_v30, %v5135_v23 }
 0x64c   :  { %v801_v32 = vsel %vm599_vm7, %v787_v31, -inf }
 0x64d   :  { %802 = vmax.xlane.f32.xlu0 %v801_v32 }
 0x651   :  { %v789_v15 = vpop.f32.mrf.mxu3 }
 0x652   :  { %v5253_v36 = vadd.f32 %v789_v15, %v5142_v28 }
 0x654   :  { %v804_v37 = vsel %vm612_vm8, %v5253_v36, -inf }
 0x655   :  { %805 = vmax.xlane.f32.xlu2 %v804_v37 }
 0x65e   :  { %1304 = vrot.lane.b32.xlu1 %v5073_v63, %s6808_s24  ;;  %v5279_v63 = vld [vmem:[%s6776_s10 + $0x10] sm:$0xff] }
 0x65f   :  { %4000 = vmatpush.xpose.msk.msrb.mxu1 %vm541_vm6, %v5279_v63 }
 0x661   :  { %1306 = vrot.lane.b32.xlu0 %v5077_v1, %s6808_s24  ;;  %v5288_v1 = vld [vmem:[%s6776_s10 + $0x8] sm:$0xff] }
 0x663   :  { %4001 = vmatpush.xpose.msk.msrb.mxu1 %vm541_vm6, %v5288_v1 }
 0x669   :  { %1300 = vrot.lane.b32.xlu0 %v5081_v3, %s6808_s24 }
 0x66d   :  { %1308 = vrot.lane.b32.xlu2 %v5083_v4, %s6808_s24 }
 0x675   :  { %1044 = vrot.lane.b32.xlu2 %v5089_v53, %s6798_s30 }
 0x67d   :  { %1042 = vrot.lane.b32.xlu2 %v5081_v3, %s6798_s30  ;;  %v5295_v3 = vld [vmem:[%s6776_s10] sm:$0xff]  ;;  %s6802_s30 = smov 48  }
 0x67e   :  { %4002 = vmatpush.xpose.msk.msrb.mxu1 %vm541_vm6, %v5295_v3 }
 0x685   :  { %1032 = vrot.lane.b32.xlu2 %v5099_v11, %s6806_s5 }
 0x68d   :  { %1302 = vrot.lane.b32.xlu2 %v5089_v53, %s6808_s24 }
 0x695   :  { %1034 = vrot.lane.b32.xlu2 %v5104_v12, %s6806_s5 }
 0x69d   :  { %1292 = vrot.lane.b32.xlu2 %v5104_v12, %s6804_s4 }
 0x6a5   :  { %1040 = vrot.lane.b32.xlu2 %v5119_v16, %s6806_s5 }
 0x6ae   :  { %v705_v39 = vpop.f32.mrf.mxu2 }
 0x6af   :  { %4003 = vmatmul.msk.f32.vlgmr.msrb.gmra.mxu1 %vm541_vm6, %v705_v39 }
 0x6b6   :  { %v708_v40 = vpop.f32.mrf.mxu2 }
 0x6b7   :  { %4004 = vmatmul.msk.f32.gmra.mxu1 %vm541_vm6, %v708_v40 }
 0x6b8   :  { %v800_v42 = vpop.xlane.xlu1 %799 }
 0x6b9   :  { %v809_v44 = vsub.f32 %v784_v17, %v800_v42 }
 0x6bb   :  { %v816_v45 = vmul.f32 1.442695, %v809_v44 }
 0x6bd   :  { %4462 = vpow2.f32 %v816_v45 }
 0x6bf   :  { %4005 = vmatmul.msk.f32.gmra.mxu1 %vm541_vm6, %v5233_v56  ;;  %v792_v56 = vsel %vm599_vm7, %v5316_v22, -inf }
 0x6c0   :  { %v803_v53 = vpop.xlane.xlu0 %802 }
 0x6c1   :  { %v810_v46 = vsub.f32 %v787_v31, %v803_v53 }
 0x6c3   :  { %v4463_v47 = vpop.eup %4462  ;;  %v818_v12 = vmul.f32 1.442695, %v810_v46 }
 0x6c4   :  { %v828_v49 = vsel %vm599_vm7, %v4463_v47, 0.0 }
 0x6c5   :  { %4464 = vpow2.f32 %v818_v12  ;;  %829 = vadd.xlane.f32.xlu1 %v828_v49 }
 0x6c7   :  { %4006 = vmatmul.msk.f32.gmra.mxu1 %vm541_vm6, %v5235_v57 }
 0x6c8   :  { %v806_v50 = vpop.xlane.xlu2 %805 }
 0x6c9   :  { %v811_v6 = vsub.f32 %v5253_v36, %v806_v50 }
 0x6cb   :  { %v4465_v51 = vpop.eup %4464  ;;  %v820_v7 = vmul.f32 1.442695, %v811_v6 }
 0x6cc   :  { %v831_v55 = vsel %vm599_vm7, %v4465_v51, 0.0 }
 0x6cd   :  { %832 = vadd.xlane.f32.xlu0 %v831_v55  ;;  %4466 = vpow2.f32 %v820_v7 }
 0x6ce   :  { %793 = vmax.xlane.f32.xlu2 %v792_v56 }
 0x6cf   :  { %4007 = vmatmul.msk.f32.gmra.mxu1 %vm541_vm6, %v5237_v48 }
 0x6d0   :  { %v1309_v59 = vpop.permute.xlu2 %1308  ;;  %v1305_v60 = vpop.permute.xlu1 %1304 }
 0x6d1   :  { %4033 = vmatpush.xpose.msk.msra.mxu1 %vm541_vm6, %v1309_v59 }
 0x6d3   :  { %v1307_v57 = vpop.permute.xlu0 %1306 }
 0x6d5   :  { %4034 = vmatpush.xpose.msk.msra.mxu1 %vm541_vm6, %v1307_v57 }
 0x6d8   :  { %v1045_v29 = vpop.permute.xlu2 %1044 }
 0x6d9   :  { %4011 = vmatpush.xpose.msk.msrb.mxu3 %vm541_vm6, %v1045_v29  ;;  %4035 = vmatpush.xpose.msk.msra.mxu1 %vm541_vm6, %v1305_v60 }
 0x6db   :  { %v1301_v2 = vpop.permute.xlu0 %1300 }
 0x6de   :  { %1036 = vrot.lane.b32.xlu1 %v5109_v13, %s6806_s5 }
 0x6e0   :  { %v1043_v62 = vpop.permute.xlu2 %1042 }
 0x6e1   :  { %1290 = vrot.lane.b32.xlu0 %v5099_v11, %s6804_s4  ;;  %4012 = vmatpush.xpose.msk.msrb.mxu3 %vm541_vm6, %v1043_v62  ;;  %v4467_v11 = vpop.eup %4466 }
 0x6e2   :  { %v834_v8 = vsel %vm612_vm8, %v4467_v11, 0.0 }
 0x6e8   :  { %v1033_v48 = vpop.permute.xlu2 %1032 }
 0x6e9   :  { %1038 = vrot.lane.b32.xlu0 %v5114_v14, %s6806_s5 }
 0x6f0   :  { %v1303_v34 = vpop.permute.xlu2 %1302 }
 0x6f1   :  { %1296 = vrot.lane.b32.xlu0 %v5114_v14, %s6804_s4  ;;  %4036 = vmatpush.xpose.msk.msra.mxu1 %vm541_vm6, %v1303_v34 }
 0x6f5   :  { %4037 = vmatpush.xpose.msk.msra.mxu1 %vm541_vm6, %v1301_v2 }
 0x6f8   :  { %v1035_v21 = vpop.permute.xlu2 %1034 }
 0x708   :  { %835 = vadd.xlane.f32.xlu1 %v834_v8 }
 0x71b   :  { %796 = vmax.xlane.f32.xlu0 %v795_v58 }
 0x721   :  { %1294 = vrot.lane.b32.xlu1 %v5109_v13, %s6804_s4  ;;  %v1293_v13 = vpop.permute.xlu2 %1292 }
 0x729   :  { %1298 = vrot.lane.b32.xlu1 %v5119_v16, %s6804_s4  ;;  %v1041_v42 = vpop.permute.xlu2 %1040 }
 0x72c   :  { %v5357_v37 = vpop.f32.mrf.mxu1 }
 0x734   :  { %v5361_v40 = vpop.f32.mrf.mxu1 }
 0x738   :  { %v830_v14 = vpop.xlane.xlu1 %829 }
 0x739   :  { %4468 = vrcp.f32 %v830_v14 }
 0x73c   :  { %v5364_v44 = vpop.f32.mrf.mxu1 }
 0x73f   :  { %v4469_v9 = vpop.eup %4468 }
 0x740   :  { %v844_v19 = vmul.f32 %v4469_v9, %v4463_v47  ;;  %v833_v20 = vpop.xlane.xlu0 %832 }
 0x741   :  { %4470 = vrcp.f32 %v833_v20  ;;  %v794_v53 = vpop.xlane.xlu2 %793 }
 0x742   :  { %3987 = vmatmul.msk.f32.vlgmr.msra.gmra.mxu3 %vm599_vm7, %v844_v19  ;;  %v807_v47 = vsub.f32 %v5316_v22, %v794_v53 }
 0x744   :  { %v5366_v45 = vpop.f32.mrf.mxu1  ;;  %v812_v12 = vmul.f32 1.442695, %v807_v47 }
 0x747   :  { %v4471_v24 = vpop.eup %4470 }
 0x748   :  { %v845_v25 = vmul.f32 %v4471_v24, %v4465_v51 }
 0x74a   :  { %3988 = vmatmul.msk.f32.gmra.mxu3 %vm599_vm7, %v845_v25 }
 0x74c   :  { %v5368_v46 = vpop.f32.mrf.mxu1 }
 0x750   :  { %v1037_v16 = vpop.permute.xlu1 %1036 }
 0x753   :  { %v1291_v17 = vpop.permute.xlu0 %1290 }
 0x754   :  { %4038 = vmatmul.msk.f32.vlgmr.msra.gmra.mxu1 %vm541_vm6, %v1291_v17 }
 0x75b   :  { %v1039_v32 = vpop.permute.xlu0 %1038 }
 0x75c   :  { %4039 = vmatmul.msk.f32.gmra.mxu1 %vm541_vm6, %v1293_v13 }
 0x763   :  { %v1297_v36 = vpop.permute.xlu0 %1296 }
 0x77b   :  { %v836_v27 = vpop.xlane.xlu1 %835 }
 0x77c   :  { %4472 = vrcp.f32 %v836_v27 }
 0x77d   :  { %4474 = vpow2.f32 %v812_v12 }
 0x782   :  { %v4473_v30 = vpop.eup %4472 }
 0x783   :  { %v846_v31 = vmul.f32 %v4473_v30, %v4467_v11  ;;  %v4475_v57 = vpop.eup %4474 }
 0x784   :  { %v822_v62 = vsel %vm599_vm7, %v4475_v57, 0.0 }
 0x785   :  { %3989 = vmatmul.msk.f32.gmra.mxu3 %vm599_vm7, %v846_v31 }
 0x78d   :  { %4013 = vmatmul.msk.f32.vlgmr.msrb.gmra.mxu3 %vm541_vm6, %v1033_v48 }
 0x78e   :  { %v797_v49 = vpop.xlane.xlu0 %796 }
 0x78f   :  { %v808_v55 = vsub.f32 %v781_v10, %v797_v49 }
 0x791   :  { %v814_v59 = vmul.f32 1.442695, %v808_v55 }
 0x793   :  { %v1295_v15 = vpop.permute.xlu1 %1294  ;;  %4476 = vpow2.f32 %v814_v59 }
 0x794   :  { %4040 = vmatmul.msk.f32.gmra.mxu1 %vm541_vm6, %v1295_v15 }
 0x795   :  { %4014 = vmatmul.msk.f32.gmra.mxu3 %vm541_vm6, %v1035_v21 }
 0x799   :  { %v4477_v48 = vpop.eup %4476 }
 0x79a   :  { %v825_v34 = vsel %vm599_vm7, %v4477_v48, 0.0 }
 0x79b   :  { %v1299_v39 = vpop.permute.xlu1 %1298 }
 0x79c   :  { %4041 = vmatmul.msk.f32.gmra.mxu1 %vm541_vm6, %v1297_v36 }
 0x79d   :  { %4015 = vmatmul.msk.f32.gmra.mxu3 %vm541_vm6, %v1037_v16 }
 0x7a4   :  { %4042 = vmatmul.msk.f32.gmra.mxu1 %vm541_vm6, %v1299_v39 }
 0x7a5   :  { %4016 = vmatmul.msk.f32.gmra.mxu3 %vm541_vm6, %v1039_v32 }
 0x7ad   :  { %4017 = vmatmul.msk.f32.gmra.mxu3 %vm541_vm6, %v1041_v42 }
 0x7c5   :  { %v5380_v2 = vpop.f32.mrf.mxu3 }
 0x7cd   :  { %v5384_v6 = vpop.f32.mrf.mxu3 }
 0x7d1   :  { %v1347_v50 = vpop.f32.mrf.mxu1 }
 0x7d2   :  { %v1348_v51 = vadd.f32 %v1347_v50, %v5197_v61 }
 0x7d4   :  { %v1362_v56 = vsel %vm599_vm7, %v1348_v51, -inf }
 0x7d5   :  { %1363 = vmax.xlane.f32.xlu2 %v1362_v56 }
 0x7d9   :  { %v1350_v60 = vpop.f32.mrf.mxu1 }
 0x7da   :  { %v5374_v29 = vadd.f32 %v1350_v60, %v5174_v43 }
 0x7dc   :  { %v1365_v22 = vsel %vm599_vm7, %v5374_v29, -inf }
 0x7dd   :  { %1366 = vmax.xlane.f32.xlu1 %v1365_v22  ;;  %823 = vadd.xlane.f32.xlu2 %v822_v62 }
 0x7e5   :  { %826 = vadd.xlane.f32.xlu2 %v825_v34 }
 0x7fd   :  { %1167 = vrot.lane.b32.xlu2 %v5083_v4, %s6802_s30 }
 0x808   :  { %v5386_v7 = vpop.f32.mrf.mxu3 }
 0x810   :  { %v1089_v11 = vpop.f32.mrf.mxu3 }
 0x811   :  { %v1353_v8 = vpop.f32.mrf.mxu1  ;;  %v1090_v53 = vadd.f32 %v1089_v11, %v5197_v61 }
 0x812   :  { %v5389_v10 = vadd.f32 %v1353_v8, %v5128_v18 }
 0x813   :  { %v1104_v12 = vsel %vm599_vm7, %v1090_v53, -inf }
 0x814   :  { %v1368_v58 = vsel %vm599_vm7, %v5389_v10, -inf }
 0x815   :  { %1369 = vmax.xlane.f32.xlu1 %v1368_v58 }
 0x818   :  { %v1092_v14 = vpop.f32.mrf.mxu3 }
 0x819   :  { %v1356_v9 = vpop.f32.mrf.mxu1 }
 0x81a   :  { %v5394_v19 = vadd.f32 %v1356_v9, %v5135_v23 }
 0x81c   :  { %v1371_v20 = vsel %vm599_vm7, %v5394_v19, -inf }
 0x81d   :  { %1372 = vmax.xlane.f32.xlu1 %v1371_v20 }
 0x820   :  { %v1095_v24 = vpop.f32.mrf.mxu3 }
 0x821   :  { %v1359_v25 = vpop.f32.mrf.mxu1  ;;  %v5426_v55 = vadd.f32 %v1095_v24, %v5128_v18 }
 0x822   :  { %v5399_v21 = vadd.f32 %v1359_v25, %v5142_v28 }
 0x823   :  { %v1110_v56 = vsel %vm599_vm7, %v5426_v55, -inf }
 0x824   :  { %v1374_v17 = vsel %vm612_vm8, %v5399_v21, -inf }
 0x825   :  { %1375 = vmax.xlane.f32.xlu0 %v1374_v17 }
 0x828   :  { %v1098_v13 = vpop.f32.mrf.mxu3 }
 0x829   :  { %v1099_v59 = vadd.f32 %v1098_v13, %v5135_v23 }
 0x830   :  { %v1101_v16 = vpop.f32.mrf.mxu3 }
 0x831   :  { %v5404_v27 = vadd.f32 %v1101_v16, %v5142_v28 }
 0x833   :  { %v1116_v30 = vsel %vm612_vm8, %v5404_v27, -inf }
 0x834   :  { %1117 = vmax.xlane.f32.xlu2 %v1116_v30 }
 0x836   :  { %4340 = vrot.lane.b32.xlu1 %v5150_v33, %s6802_s30 }
 0x839   :  { %1425 = vrot.lane.b32.xlu0 %v5083_v4, %s6800_s28 }
 0x848   :  { %v1364_v31 = vpop.xlane.xlu2 %1363 }
 0x849   :  { %v1377_v32 = vsub.f32 %v1348_v51, %v1364_v31  ;;  %v1093_v51 = vadd.f32 %v1092_v14, %v5174_v43 }
 0x84b   :  { %v1382_v28 = vmul.f32 1.442695, %v1377_v32  ;;  %v1107_v61 = vsel %vm599_vm7, %v1093_v51, -inf }
 0x84c   :  { %4345 = vrot.lane.b32.xlu2 %v5150_v33, %s6800_s28 }
 0x850   :  { %v824_v15 = vpop.xlane.xlu2 %823  ;;  %v1367_v60 = vpop.xlane.xlu1 %1366 }
 0x851   :  { %4478 = vrcp.f32 %v824_v15 }
 0x852   :  { %4480 = vpow2.f32 %v1382_v28 }
 0x857   :  { %v4479_v36 = vpop.eup %4478 }
 0x858   :  { %v827_v39 = vpop.xlane.xlu2 %826  ;;  %v842_v42 = vmul.f32 %v4479_v36, %v4475_v57  ;;  %v5416_v47 = vpop.eup %4480  ;;  %v1113_v57 = vsel %vm599_vm7, %v1099_v59, -inf }
 0x859   :  { %4482 = vrcp.f32 %v827_v39  ;;  %v1392_v50 = vsel %vm599_vm7, %v5416_v47, 0.0 }
 0x85a   :  { %3985 = vmatmul.msk.f32.vlgmr.msrb.gmra.mxu0 %vm599_vm7, %v842_v42 }
 0x85f   :  { %v4483_v4 = vpop.eup %4482 }
 0x860   :  { %v1168_v49 = vpop.permute.xlu2 %1167  ;;  %1105 = vmax.xlane.f32.xlu1 %v1104_v12  ;;  %v843_v33 = vmul.f32 %v4483_v4, %v4477_v48  ;;  %v1378_v48 = vsub.f32 %v5374_v29, %v1367_v60 }
 0x861   :  { %4018 = vmatpush.msk.msra.mxu0 %vm685_vm9, %v1168_v49 }
 0x862   :  { %3986 = vmatmul.msk.f32.gmra.mxu0 %vm599_vm7, %v843_v33  ;;  %v1384_v8 = vmul.f32 1.442695, %v1378_v48 }
 0x863   :  { %1393 = vadd.xlane.f32.xlu0 %v1392_v50 }
 0x864   :  { %4484 = vpow2.f32 %v1384_v8 }
 0x86a   :  { %v5438_v24 = vpop.eup %4484 }
 0x86b   :  { %1108 = vmax.xlane.f32.xlu0 %v1107_v61  ;;  %v1395_v29 = vsel %vm599_vm7, %v5438_v24, 0.0 }
 0x873   :  { %1111 = vmax.xlane.f32.xlu0 %v1110_v56 }
 0x87b   :  { %1114 = vmax.xlane.f32.xlu0 %v1113_v57 }
 0x888   :  { %v1370_v43 = vpop.xlane.xlu1 %1369 }
 0x889   :  { %v1379_v28 = vsub.f32 %v5389_v10, %v1370_v43 }
 0x88b   :  { %v1386_v39 = vmul.f32 1.442695, %v1379_v28 }
 0x88f   :  { %4350 = vrot.lane.b32.xlu0 %v5186_v52, %s6802_s30  ;;  %s6834_s30 = smov 48  }
 0x890   :  { %v1373_v22 = vpop.xlane.xlu1 %1372 }
 0x898   :  { %v1376_v62 = vpop.xlane.xlu0 %1375 }
 0x899   :  { %v1381_v10 = vsub.f32 %v5399_v21, %v1376_v62 }
 0x89b   :  { %v1390_v57 = vmul.f32 1.442695, %v1381_v10 }
 0x8a7   :  { %v5435_v18 = vpop.xlane.xlu2 %1117 }
 0x8a8   :  { %v4341_v34 = vpop.permute.xlu1 %4340  ;;  %v1123_v8 = vsub.f32 %v5404_v27, %v5435_v18 }
 0x8a9   :  { %v4342_v11 = vunpack.i.l.bf16 %v4341_v34  ;;  %v4343_v58 = vunpack.i.h.bf16 %v4341_v34 }
 0x8ab   :  { %v1426_v14 = vpop.permute.xlu0 %1425  ;;  %1202 = vmatpush.msra.mxu0 %v4342_v11 }
 0x8ac   :  { %4043 = vmatpush.msk.msra.mxu3 %vm685_vm9, %v1426_v14 }
 0x8ad   :  { %1203 = vmatpush.msra.mxu0 %v4343_v58  ;;  %v1132_v58 = vmul.f32 1.442695, %v1123_v8 }
 0x8af   :  { %v4346_v23 = vpop.permute.xlu2 %4345 }
 0x8b0   :  { %v4347_v9 = vunpack.i.l.bf16 %v4346_v23  ;;  %v4348_v20 = vunpack.i.h.bf16 %v4346_v23 }
 0x8b2   :  { %1460 = vmatpush.msra.mxu3 %v4347_v9 }
 0x8b4   :  { %1461 = vmatpush.msra.mxu3 %v4348_v20 }
 0x8b9   :  { %1396 = vadd.xlane.f32.xlu0 %v1395_v29 }
 0x8d3   :  { %v1106_v25 = vpop.xlane.xlu1 %1105 }
 0x8d4   :  { %v1119_v17 = vsub.f32 %v1090_v53, %v1106_v25  ;;  %v1380_v53 = vsub.f32 %v5394_v19, %v1373_v22 }
 0x8d6   :  { %v1124_v13 = vmul.f32 1.442695, %v1119_v17  ;;  %v5442_v16 = vpop.xlane.xlu0 %1393  ;;  %v1388_v49 = vmul.f32 1.442695, %v1380_v53 }
 0x8d8   :  { %4486 = vpow2.f32 %v1124_v13 }
 0x8de   :  { %v5444_v30 = vpop.eup %4486  ;;  %v1109_v31 = vpop.xlane.xlu0 %1108 }
 0x8df   :  { %v1120_v32 = vsub.f32 %v1093_v51, %v1109_v31  ;;  %v1134_v15 = vsel %vm599_vm7, %v5444_v30, 0.0 }
 0x8e0   :  { %1135 = vadd.xlane.f32.xlu1 %v1134_v15 }
 0x8e1   :  { %v1126_v36 = vmul.f32 1.442695, %v1120_v32 }
 0x8e3   :  { %4488 = vpow2.f32 %v1126_v36 }
 0x8e4   :  { %4490 = vpow2.f32 %v1386_v39 }
 0x8e5   :  { %4492 = vpow2.f32 %v1388_v49 }
 0x8e6   :  { %v1112_v42 = vpop.xlane.xlu0 %1111 }
 0x8e9   :  { %v5449_v4 = vpop.eup %4488 }
 0x8ea   :  { %v1137_v12 = vsel %vm599_vm7, %v5449_v4, 0.0  ;;  %v5454_v50 = vpop.eup %4490 }
 0x8eb   :  { %1138 = vadd.xlane.f32.xlu2 %v1137_v12  ;;  %v1398_v56 = vsel %vm599_vm7, %v5454_v50, 0.0  ;;  %v5459_v19 = vpop.eup %4492 }
 0x8ee   :  { %v1115_v33 = vpop.xlane.xlu0 %1114 }
 0x8ef   :  { %v1122_v51 = vsub.f32 %v1099_v59, %v1115_v33  ;;  %v1401_v59 = vsel %vm599_vm7, %v5459_v19, 0.0 }
 0x8f1   :  { %v1130_v61 = vmul.f32 1.442695, %v1122_v51 }
 0x8f3   :  { %4494 = vpow2.f32 %v1130_v61  ;;  %1399 = vadd.xlane.f32.xlu2 %v1398_v56 }
 0x8f4   :  { %4496 = vpow2.f32 %v1390_v57 }
 0x8f9   :  { %v5461_v60 = vpop.eup %4494  ;;  %4355 = vrot.lane.b32.xlu1 %v5186_v52, %s6800_s28  ;;  %v1121_v52 = vsub.f32 %v5426_v55, %v1112_v42 }
 0x8fa   :  { %v1143_v21 = vsel %vm599_vm7, %v5461_v60, 0.0  ;;  %v5469_v43 = vpop.eup %4496 }
 0x8fb   :  { %1402 = vadd.xlane.f32.xlu2 %v1401_v59  ;;  %1144 = vadd.xlane.f32.xlu0 %v1143_v21  ;;  %v1404_v48 = vsel %vm612_vm8, %v5469_v43, 0.0  ;;  %v1128_v11 = vmul.f32 1.442695, %v1121_v52 }
 0x8fd   :  { %4498 = vpow2.f32 %v1128_v11 }
 0x8fe   :  { %4500 = vpow2.f32 %v1132_v58 }
 0x901   :  { %v4351_v22 = vpop.permute.xlu0 %4350 }
 0x902   :  { %v4352_v62 = vunpack.i.l.bf16 %v4351_v22  ;;  %v4353_v34 = vunpack.i.h.bf16 %v4351_v22 }
 0x903   :  { %1405 = vadd.xlane.f32.xlu0 %v1404_v48  ;;  %v4499_v14 = vpop.eup %4498  ;;  %v895_v48 = vpop.f32.mrf.mxu0 }
 0x904   :  { %1204 = vmatpush.msra.mxu0 %v4352_v62  ;;  %v1140_v55 = vsel %vm599_vm7, %v4499_v14, 0.0  ;;  %v5487_v23 = vpop.eup %4500 }
 0x905   :  { %v1146_v27 = vsel %vm612_vm8, %v5487_v23, 0.0 }
 0x906   :  { %1205 = vmatpush.msra.mxu0 %v4353_v34 }
 0x90b   :  { %v898_v11 = vpop.f32.mrf.mxu0 }
 0x913   :  { %920 = vrot.lane.b32.xlu2 %v5272_v38, %s6810_s3 }
 0x917   :  { %916 = vrot.lane.b32.xlu0 %v5288_v1, %s6810_s3 }
 0x91b   :  { %914 = vrot.lane.b32.xlu2 %v5295_v3, %s6810_s3 }
 0x91f   :  { %1228 = vrot.lane.b32.xlu0 %v5272_v38, %s6806_s5 }
 0x923   :  { %1141 = vadd.xlane.f32.xlu1 %v1140_v55  ;;  %1224 = vrot.lane.b32.xlu2 %v5288_v1, %s6806_s5 }
 0x927   :  { %1486 = vrot.lane.b32.xlu0 %v5272_v38, %s6804_s4 }
 0x92b   :  { %1147 = vadd.xlane.f32.xlu1 %v1146_v27  ;;  %1484 = vrot.lane.b32.xlu2 %v5279_v63, %s6804_s4 }
 0x92c   :  { %v1397_v29 = vpop.xlane.xlu0 %1396 }
 0x92f   :  { %1482 = vrot.lane.b32.xlu0 %v5288_v1, %s6804_s4 }
 0x944   :  { %918 = vrot.lane.b32.xlu1 %v5279_v63, %s6810_s3  ;;  %s6830_s3 = smov 72  }
 0x94c   :  { %1226 = vrot.lane.b32.xlu1 %v5279_v63, %s6806_s5 }
 0x953   :  { %v1136_v18 = vpop.xlane.xlu1 %1135 }
 0x954   :  { %4502 = vrcp.f32 %v1136_v18  ;;  %1222 = vrot.lane.b32.xlu1 %v5295_v3, %s6806_s5 }
 0x95a   :  { %v4503_v38 = vpop.eup %4502 }
 0x95b   :  { %v1154_v9 = vmul.f32 %v4503_v38, %v5444_v30 }
 0x95c   :  { %1480 = vrot.lane.b32.xlu1 %v5295_v3, %s6804_s4 }
 0x95d   :  { %4019 = vmatmul.msk.f32.vlgmr.msra.gmra.mxu0 %vm599_vm7, %v1154_v9 }
 0x95e   :  { %v1139_v1 = vpop.xlane.xlu2 %1138 }
 0x95f   :  { %4504 = vrcp.f32 %v1139_v1 }
 0x960   :  { %4506 = vrcp.f32 %v5442_v16 }
 0x961   :  { %4508 = vrcp.f32 %v1397_v29 }
 0x965   :  { %v4505_v20 = vpop.eup %4504 }
 0x966   :  { %v1155_v63 = vmul.f32 %v4505_v20, %v5449_v4  ;;  %v4507_v17 = vpop.eup %4506  ;;  %v1400_v31 = vpop.xlane.xlu2 %1399 }
 0x967   :  { %v1412_v3 = vmul.f32 %v4507_v17, %v5416_v47  ;;  %v4509_v32 = vpop.eup %4508  ;;  %4510 = vrcp.f32 %v1400_v31 }
 0x968   :  { %4020 = vmatmul.msk.f32.gmra.mxu0 %vm599_vm7, %v1155_v63  ;;  %v1413_v16 = vmul.f32 %v4509_v32, %v5438_v24  ;;  %v4406_v32 = vld [vmem:[%s6777_s11] ss:$0 sm:$0xff] }
 0x96b   :  { %v4356_v25 = vpop.permute.xlu1 %4355 }
 0x96c   :  { %v4357_v13 = vunpack.i.l.bf16 %v4356_v25  ;;  %v4358_v30 = vunpack.i.h.bf16 %v4356_v25 }
 0x96d   :  { %v4511_v36 = vpop.eup %4510 }
 0x96e   :  { %1462 = vmatpush.msra.mxu3 %v4357_v13  ;;  %v1145_v15 = vpop.xlane.xlu0 %1144  ;;  %v1403_v28 = vpop.xlane.xlu2 %1402  ;;  %v1414_v39 = vmul.f32 %v4511_v36, %v5454_v50 }
 0x96f   :  { %4512 = vrcp.f32 %v1403_v28 }
 0x970   :  { %1463 = vmatpush.msra.mxu3 %v4358_v30 }
 0x971   :  { %4044 = vmatmul.msk.f32.vlgmr.msra.gmra.mxu3 %vm599_vm7, %v1412_v3 }
 0x975   :  { %v4513_v47 = vpop.eup %4512 }
 0x976   :  { %v1406_v42 = vpop.xlane.xlu0 %1405  ;;  %v1415_v4 = vmul.f32 %v4513_v47, %v5459_v19  ;;  %v921_v12 = vpop.permute.xlu2 %920 }
 0x977   :  { %4514 = vrcp.f32 %v1406_v42  ;;  %3990 = vmatpush.xpose.msk.msra.mxu2 %vm541_vm6, %v921_v12 }
 0x979   :  { %4045 = vmatmul.msk.f32.gmra.mxu3 %vm599_vm7, %v1413_v16 }
 0x97d   :  { %v4515_v53 = vpop.eup %4514 }
 0x97e   :  { %v1416_v24 = vmul.f32 %v4515_v53, %v5469_v43  ;;  %v915_v59 = vpop.permute.xlu2 %914 }
 0x981   :  { %4046 = vmatmul.msk.f32.gmra.mxu3 %vm599_vm7, %v1414_v39 }
 0x986   :  { %v1225_v22 = vpop.permute.xlu2 %1224 }
 0x989   :  { %4047 = vmatmul.msk.f32.gmra.mxu3 %vm599_vm7, %v1415_v4  ;;  %v917_v19 = vpop.permute.xlu0 %916 }
 0x98e   :  { %v1485_v34 = vpop.permute.xlu2 %1484 }
 0x991   :  { %4048 = vmatmul.msk.f32.gmra.mxu3 %vm599_vm7, %v1416_v24  ;;  %v1229_v43 = vpop.permute.xlu0 %1228 }
 0x996   :  { %v1142_v49 = vpop.xlane.xlu1 %1141 }
 0x997   :  { %4516 = vrcp.f32 %v1142_v49 }
 0x998   :  { %4518 = vrcp.f32 %v1145_v15 }
 0x99d   :  { %v4517_v33 = vpop.eup %4516 }
 0x99e   :  { %v1156_v50 = vmul.f32 %v4517_v33, %v4499_v14  ;;  %v1148_v51 = vpop.xlane.xlu1 %1147  ;;  %v4519_v10 = vpop.eup %4518 }
 0x99f   :  { %4520 = vrcp.f32 %v1148_v51  ;;  %v1157_v61 = vmul.f32 %v4519_v10, %v5461_v60  ;;  %v1487_v60 = vpop.permute.xlu0 %1486 }
 0x9a0   :  { %4021 = vmatmul.msk.f32.gmra.mxu0 %vm599_vm7, %v1156_v50 }
 0x9a1   :  { %4049 = vmatpush.xpose.msk.msrb.mxu0 %vm541_vm6, %v1487_v60 }
 0x9a5   :  { %v4521_v56 = vpop.eup %4520  ;;  %4050 = vmatpush.xpose.msk.msrb.mxu0 %vm541_vm6, %v1485_v34 }
 0x9a6   :  { %v1158_v57 = vmul.f32 %v4521_v56, %v5487_v23 }
 0x9a7   :  { %v1483_v8 = vpop.permute.xlu0 %1482 }
 0x9a8   :  { %4022 = vmatmul.msk.f32.gmra.mxu0 %vm599_vm7, %v1157_v61 }
 0x9a9   :  { %4051 = vmatpush.xpose.msk.msrb.mxu0 %vm541_vm6, %v1483_v8 }
 0x9b0   :  { %4023 = vmatmul.msk.f32.gmra.mxu0 %vm599_vm7, %v1158_v57 }
 0x9b6   :  { %v919_v21 = vpop.permute.xlu1 %918 }
 0x9b7   :  { %3991 = vmatpush.xpose.msk.msra.mxu2 %vm541_vm6, %v919_v21 }
 0x9bb   :  { %3992 = vmatpush.xpose.msk.msra.mxu2 %vm541_vm6, %v917_v19 }
 0x9be   :  { %v1227_v62 = vpop.permute.xlu1 %1226 }
 0x9bf   :  { %3993 = vmatpush.xpose.msk.msra.mxu2 %vm541_vm6, %v915_v59 }
 0x9c2   :  { %3994 = vmatmul.msk.f32.vlgmr.msra.gmra.mxu2 %vm541_vm6, %v895_v48 }
 0x9c3   :  { %4024 = vmatpush.xpose.msk.msrb.mxu2 %vm541_vm6, %v1229_v43 }
 0x9c6   :  { %v1223_v52 = vpop.permute.xlu1 %1222 }
 0x9c7   :  { %4025 = vmatpush.xpose.msk.msrb.mxu2 %vm541_vm6, %v1227_v62 }
 0x9ca   :  { %3995 = vmatmul.msk.f32.gmra.mxu2 %vm541_vm6, %v898_v11 }
 0x9cb   :  { %4026 = vmatpush.xpose.msk.msrb.mxu2 %vm541_vm6, %v1225_v22 }
 0x9ce   :  { %v1481_v58 = vpop.permute.xlu1 %1480 }
 0x9cf   :  { %4027 = vmatpush.xpose.msk.msrb.mxu2 %vm541_vm6, %v1223_v52  ;;  %4052 = vmatpush.xpose.msk.msrb.mxu0 %vm541_vm6, %v1481_v58 }
 0x9d2   :  { %3996 = vmatmul.msk.f32.gmra.mxu2 %vm541_vm6, %v5380_v2 }
 0x9da   :  { %3997 = vmatmul.msk.f32.gmra.mxu2 %vm541_vm6, %v5384_v6  ;;  %v1207_v14 = vpop.f32.mrf.mxu0 }
 0x9e2   :  { %3998 = vmatmul.msk.f32.gmra.mxu2 %vm541_vm6, %v5386_v7 }
 0x9e5   :  { %v1210_v55 = vpop.f32.mrf.mxu0 }
 0x9ea   :  { %4028 = vmatmul.msk.f32.vlgmr.msrb.gmra.mxu2 %vm541_vm6, %v1207_v14 }
 0x9f2   :  { %4029 = vmatmul.msk.f32.gmra.mxu2 %vm541_vm6, %v1210_v55 }
 0x9f4   :  { %v1465_v23 = vpop.f32.mrf.mxu3 }
 0x9f5   :  { %4053 = vmatmul.msk.f32.vlgmr.msrb.gmra.mxu0 %vm541_vm6, %v1465_v23 }
 0x9fc   :  { %v1468_v27 = vpop.f32.mrf.mxu3 }
 0x9fd   :  { %4054 = vmatmul.msk.f32.gmra.mxu0 %vm541_vm6, %v1468_v27  ;;  %v1705_v27 = vld [vmem:[%s6780_s14 + $0x78] sm:$0xff] }
 0x9fe   :  { %4058 = vmatpush.xpose.msk.msra.mxu2 %vm155_vm1, %v1705_v27 }
 0xa04   :  { %v1471_v18 = vpop.f32.mrf.mxu3 }
 0xa05   :  { %4055 = vmatmul.msk.f32.gmra.mxu0 %vm541_vm6, %v1471_v18  ;;  %v1704_v18 = vld [vmem:[%s6780_s14 + $0x70] sm:$0xff] }
 0xa06   :  { %4059 = vmatpush.xpose.msk.msra.mxu2 %vm155_vm1, %v1704_v18 }
 0xa0c   :  { %v1474_v2 = vpop.f32.mrf.mxu3 }
 0xa0d   :  { %4056 = vmatmul.msk.f32.gmra.mxu0 %vm541_vm6, %v1474_v2  ;;  %v1703_v2 = vld [vmem:[%s6780_s14 + $0x68] sm:$0xff] }
 0xa0e   :  { %4060 = vmatpush.xpose.msk.msra.mxu2 %vm155_vm1, %v1703_v2 }
 0xa14   :  { %v1477_v6 = vpop.f32.mrf.mxu3 }
 0xa15   :  { %4057 = vmatmul.msk.f32.gmra.mxu0 %vm541_vm6, %v1477_v6 }
 0xa1d   :  { %v1213_v7 = vpop.f32.mrf.mxu0 }
 0xa1e   :  { %4030 = vmatmul.msk.f32.gmra.mxu2 %vm541_vm6, %v1213_v7 }
 0xa25   :  { %v1216_v38 = vpop.f32.mrf.mxu0 }
 0xa26   :  { %4031 = vmatmul.msk.f32.gmra.mxu2 %vm541_vm6, %v1216_v38  ;;  %v1702_v38 = vld [vmem:[%s6780_s14 + $0x60] sm:$0xff] }
 0xa27   :  { %4061 = vmatpush.xpose.msk.msra.mxu2 %vm155_vm1, %v1702_v38 }
 0xa2d   :  { %v1219_v9 = vpop.f32.mrf.mxu0 }
 0xa2e   :  { %4032 = vmatmul.msk.f32.gmra.mxu2 %vm541_vm6, %v1219_v9 }
 0xa45   :  { %v962_v1 = vpop.f32.mrf.mxu2 }
 0xa46   :  { %v1018_v13 = vadd.f32 %v5357_v37, %v962_v1 }
 0xa4d   :  { %v965_v20 = vpop.f32.mrf.mxu2 }
 0xa4e   :  { %v1021_v28 = vadd.f32 %v5361_v40, %v965_v20  ;;  %v1701_v20 = vld [vmem:[%s6780_s14 + $0x58] sm:$0xff] }
 0xa4f   :  { %4062 = vmatpush.xpose.msk.msra.mxu2 %vm155_vm1, %v1701_v20 }
 0xa55   :  { %v968_v63 = vpop.f32.mrf.mxu2 }
 0xa56   :  { %v1024_v40 = vadd.f32 %v5364_v44, %v968_v63 }
 0xa5d   :  { %v971_v29 = vpop.f32.mrf.mxu2 }
 0xa5e   :  { %v1027_v51 = vadd.f32 %v5366_v45, %v971_v29 }
 0xa65   :  { %v974_v25 = vpop.f32.mrf.mxu2 }
 0xa66   :  { %v1030_v44 = vadd.f32 %v5368_v46, %v974_v25 }
 0xa6d   :  { %v1270_v17 = vpop.f32.mrf.mxu2 }
 0xa6e   :  { %v1285_v30 = vadd.f32 %v1270_v17, %v1018_v13  ;;  %v1700_v17 = vld [vmem:[%s6780_s14 + $0x50] sm:$0xff] }
 0xa6f   :  { %4063 = vmatpush.xpose.msk.msra.mxu2 %vm155_vm1, %v1700_v17 }
 0xa72   :  { %v1528_v3 = vpop.f32.mrf.mxu0 }
 0xa73   :  { %v1543_v31 = vadd.f32 %v1528_v3, %v1285_v30  ;;  %v1699_v3 = vld [vmem:[%s6780_s14 + $0x48] sm:$0xff] }
 0xa74   :  { %4064 = vmatpush.xpose.msk.msra.mxu2 %vm155_vm1, %v1699_v3 }
 0xa75   :  { %v1548_v16 = vadd.f32 %v1543_v31, %v4919_v26  ;;  %v1273_v15 = vpop.f32.mrf.mxu2 }
 0xa76   :  { %v1286_v39 = vadd.f32 %v1273_v15, %v1021_v28  ;;  %v1698_v15 = vld [vmem:[%s6780_s14 + $0x40] sm:$0xff] }
 0xa77   :  { %v5561_v36 = vadd.f32 %v4406_v32, %v1548_v16 }
 0xa78   :  { %4065 = vmatpush.xpose.msk.msra.mxu2 %vm155_vm1, %v1698_v15 }
 0xa79   :  { %v1564_v42 = vsel %vm155_vm1, %v5561_v36, 0.0 }
 0xa7a   :  { %v1531_v47 = vpop.f32.mrf.mxu0  ;;  %1565 = vadd.xlane.f32.xlu2 %v1564_v42  ;;  %v1697_v42 = vld [vmem:[%s6780_s14 + $0x38] sm:$0xff] }
 0xa7b   :  { %v1544_v37 = vadd.f32 %v1531_v47, %v1286_v39 }
 0xa7c   :  { %4066 = vmatpush.xpose.msk.msra.mxu2 %vm155_vm1, %v1697_v42 }
 0xa7d   :  { %v1549_v4 = vadd.f32 %v1544_v37, %v4927_v41  ;;  %v1696_v37 = vld [vmem:[%s6780_s14 + $0x30] sm:$0xff] }
 0xa7f   :  { %v5566_v53 = vadd.f32 %v4406_v32, %v1549_v4  ;;  %v1695_v4 = vld [vmem:[%s6780_s14 + $0x28] sm:$0xff] }
 0xa80   :  { %4067 = vmatpush.xpose.msk.msra.mxu2 %vm155_vm1, %v1696_v37 }
 0xa81   :  { %v1567_v24 = vsel %vm155_vm1, %v5566_v53, 0.0 }
 0xa82   :  { %1568 = vadd.xlane.f32.xlu0 %v1567_v24  ;;  %v1534_v26 = vpop.f32.mrf.mxu0  ;;  %v1694_v24 = vld [vmem:[%s6780_s14 + $0x20] sm:$0xff] }
 0xa84   :  { %4068 = vmatpush.xpose.msk.msra.mxu2 %vm155_vm1, %v1695_v4 }
 0xa88   :  { %4069 = vmatpush.xpose.msk.msra.mxu2 %vm155_vm1, %v1694_v24 }
 0xa8a   :  { %v1537_v61 = vpop.f32.mrf.mxu0 }
 0xa92   :  { %v1540_v22 = vpop.f32.mrf.mxu0 }
 0xaa1   :  { %v1276_v12 = vpop.f32.mrf.mxu2 }
 0xaa2   :  { %v1287_v49 = vadd.f32 %v1276_v12, %v1024_v40  ;;  %v1692_v40 = vld [vmem:[%s6780_s14 + $0x10] sm:$0xff]  ;;  %v1691_v12 = vld [vmem:[%s6780_s14 + $0x8] sm:$0xff] }
 0xaa4   :  { %v1545_v33 = vadd.f32 %v1534_v26, %v1287_v49  ;;  %v1693_v26 = vld [vmem:[%s6780_s14 + $0x18] sm:$0xff]  ;;  %v1690_v49 = vld [vmem:[%s6780_s14] sm:$0xff] }
 0xaa5   :  { %4070 = vmatpush.xpose.msk.msra.mxu2 %vm155_vm1, %v1693_v26 }
 0xaa6   :  { %v1550_v50 = vadd.f32 %v1545_v33, %v4934_v54 }
 0xaa8   :  { %v5573_v10 = vadd.f32 %v4406_v32, %v1550_v50 }
 0xaa9   :  { %v1279_v41 = vpop.f32.mrf.mxu2  ;;  %4071 = vmatpush.xpose.msk.msra.mxu2 %vm155_vm1, %v1692_v40 }
 0xaaa   :  { %v1288_v56 = vadd.f32 %v1279_v41, %v1027_v51  ;;  %v1570_v57 = vsel %vm155_vm1, %v5573_v10, 0.0 }
 0xaab   :  { %1571 = vadd.xlane.f32.xlu1 %v1570_v57 }
 0xaac   :  { %v1546_v19 = vadd.f32 %v1537_v61, %v1288_v56 }
 0xaad   :  { %4072 = vmatpush.xpose.msk.msra.mxu2 %vm155_vm1, %v1691_v12 }
 0xaae   :  { %v1551_v59 = vadd.f32 %v1546_v19, %v4941_v0 }
 0xab0   :  { %v5579_v21 = vadd.f32 %v4406_v32, %v1551_v59 }
 0xab1   :  { %v1282_v43 = vpop.f32.mrf.mxu2  ;;  %4073 = vmatpush.xpose.msk.msra.mxu2 %vm155_vm1, %v1690_v49 }
 0xab2   :  { %v1289_v54 = vadd.f32 %v1282_v43, %v1030_v44  ;;  %v1573_v45 = vsel %vm155_vm1, %v5579_v21, 0.0 }
 0xab3   :  { %1574 = vadd.xlane.f32.xlu2 %v1573_v45 }
 0xab4   :  { %v1547_v62 = vadd.f32 %v1540_v22, %v1289_v54 }
 0xab6   :  { %v1552_v48 = vadd.f32 %v1547_v62, %v4948_v5  ;;  %v5692_v62 = vld [vmem:[%s6778_s12] ss:$0 sm:$0xff] }
 0xab8   :  { %v5584_v60 = vadd.f32 %v4406_v32, %v1552_v48 }
 0xaba   :  { %v1576_v34 = vsel %vm168_vm2, %v5584_v60, 0.0 }
 0xabb   :  { %1577 = vadd.xlane.f32.xlu0 %v1576_v34 }
 0xaed   :  { %v1566_v0 = vpop.xlane.xlu2 %1565 }
 0xaee   :  { %v1579_v46 = vmul.f32 %v1566_v0, %v4875_v35 }
 0xaf0   :  { %v5590_v52 = vsub.f32 %v5561_v36, %v1579_v46  ;;  %v5698_v46 = vld [vmem:[%s6779_s13] ss:$0 sm:$0xff] }
 0xaf2   :  { %v1589_v11 = vmul.f32 %v5590_v52, %v5590_v52 }
 0xaf4   :  { %v1594_v8 = vsel %vm155_vm1, %v1589_v11, 0.0 }
 0xaf5   :  { %v1569_v58 = vpop.xlane.xlu0 %1568  ;;  %1595 = vadd.xlane.f32.xlu1 %v1594_v8 }
 0xaf6   :  { %v1580_v5 = vmul.f32 %v1569_v58, %v4875_v35 }
 0xaf8   :  { %v5597_v14 = vsub.f32 %v5566_v53, %v1580_v5 }
 0xafa   :  { %v1590_v55 = vmul.f32 %v5597_v14, %v5597_v14 }
 0xafc   :  { %v1597_v23 = vsel %vm155_vm1, %v1590_v55, 0.0 }
 0xafd   :  { %1598 = vadd.xlane.f32.xlu2 %v1597_v23 }
 0xb1e   :  { %v1572_v6 = vpop.xlane.xlu1 %1571 }
 0xb1f   :  { %v1581_v7 = vmul.f32 %v1572_v6, %v4875_v35 }
 0xb21   :  { %v5619_v9 = vsub.f32 %v5573_v10, %v1581_v7 }
 0xb23   :  { %v1591_v1 = vmul.f32 %v5619_v9, %v5619_v9 }
 0xb25   :  { %v1600_v63 = vsel %vm155_vm1, %v1591_v1, 0.0 }
 0xb26   :  { %v1575_v29 = vpop.xlane.xlu2 %1574  ;;  %1601 = vadd.xlane.f32.xlu0 %v1600_v63 }
 0xb27   :  { %v1582_v25 = vmul.f32 %v1575_v29, %v4875_v35 }
 0xb29   :  { %v5634_v13 = vsub.f32 %v5579_v21, %v1582_v25 }
 0xb2b   :  { %v1592_v30 = vmul.f32 %v5634_v13, %v5634_v13 }
 0xb2d   :  { %v1603_v31 = vsel %vm155_vm1, %v1592_v30, 0.0 }
 0xb2e   :  { %1604 = vadd.xlane.f32.xlu1 %v1603_v31  ;;  %v1578_v32 = vpop.xlane.xlu0 %1577 }
 0xb2f   :  { %v1583_v16 = vmul.f32 %v1578_v32, %v4875_v35 }
 0xb31   :  { %v5649_v28 = vsub.f32 %v5584_v60, %v1583_v16 }
 0xb33   :  { %v1593_v39 = vmul.f32 %v5649_v28, %v5649_v28 }
 0xb35   :  { %v1606_v47 = vsel %vm168_vm2, %v1593_v39, 0.0 }
 0xb36   :  { %1607 = vadd.xlane.f32.xlu2 %v1606_v47 }
 0xb68   :  { %v1596_v33 = vpop.xlane.xlu1 %1595 }
 0xb69   :  { %v1609_v50 = vmul.f32 %v1596_v33, %v4875_v35 }
 0xb6b   :  { %v1614_v51 = vadd.f32 1e-05, %v1609_v50 }
 0xb6d   :  { %4522 = vrsqrt.f32 %v1614_v51  ;;  %vm1625_vm11 = vweird.f32 %v1614_v51 }
 0xb70   :  { %v1599_v61 = vpop.xlane.xlu2 %1598 }
 0xb71   :  { %v1610_v41 = vmul.f32 %v1599_v61, %v4875_v35 }
 0xb73   :  { %v4523_v56 = vpop.eup %4522  ;;  %v1615_v57 = vadd.f32 1e-05, %v1610_v41 }
 0xb74   :  { %v1620_v19 = vmul.f32 %v4523_v56, %v1614_v51  ;;  %vm1626_vm10 = vweird.f32 %v4523_v56 }
 0xb75   :  { %4524 = vrsqrt.f32 %v1615_v57  ;;  %vm1627_vm12 = vmor %vm1625_vm11, %vm1626_vm10  ;;  %vm1635_vm14 = vweird.f32 %v1615_v57 }
 0xb76   :  { %v1621_v59 = vmul.f32 %v4523_v56, %v1620_v19 }
 0xb78   :  { %v1622_v44 = vmul.f32 0.5, %v1621_v59 }
 0xb7a   :  { %v1623_v43 = vsub.f32 1.5, %v1622_v44 }
 0xb7b   :  { %v4525_v54 = vpop.eup %4524 }
 0xb7c   :  { %v1624_v45 = vmul.f32 %v4523_v56, %v1623_v43  ;;  %v1630_v22 = vmul.f32 %v4525_v54, %v1615_v57  ;;  %vm1636_vm13 = vweird.f32 %v4525_v54 }
 0xb7d   :  { %vm1637_vm15 = vmor %vm1635_vm14, %vm1636_vm13 }
 0xb7e   :  { %v1628_v48 = vsel %vm1627_vm12, %v4523_v56, %v1624_v45  ;;  %v1631_v34 = vmul.f32 %v4525_v54, %v1630_v22  ;;  %v5734_v45 = vld [vmem:[%s6781_s15] ss:$0 sm:$0xff] }
 0xb7f   :  { %v1669_v0 = vmul.f32 %v1628_v48, %v5590_v52 }
 0xb80   :  { %v1632_v11 = vmul.f32 0.5, %v1631_v34 }
 0xb81   :  { %v1677_v8 = vmul.f32 %v5692_v62, %v1669_v0 }
 0xb82   :  { %v1633_v58 = vsub.f32 1.5, %v1632_v11 }
 0xb83   :  { %v1685_v5 = vadd.f32 %v5698_v46, %v1677_v8 }
 0xb84   :  { %v1634_v55 = vmul.f32 %v4525_v54, %v1633_v58 }
 0xb85   :  { %4074 = vmatmul.msk.f32.vlgmr.msra.gmra.mxu2 %vm155_vm1, %v1685_v5 }
 0xb86   :  { %v1638_v23 = vsel %vm1637_vm15, %v4525_v54, %v1634_v55  ;;  %v1912_v54 = vld [vmem:[%s6783_s16 + $0x10] sm:$0xff] }
 0xb87   :  { %v1670_v52 = vmul.f32 %v1638_v23, %v5597_v14 }
 0xb89   :  { %v1678_v27 = vmul.f32 %v5692_v62, %v1670_v52 }
 0xb8b   :  { %v1686_v18 = vadd.f32 %v5698_v46, %v1678_v27 }
 0xb8d   :  { %4075 = vmatmul.msk.f32.gmra.mxu2 %vm155_vm1, %v1686_v18 }
 0xb99   :  { %v1602_v2 = vpop.xlane.xlu0 %1601 }
 0xb9a   :  { %v1611_v6 = vmul.f32 %v1602_v2, %v4875_v35 }
 0xb9c   :  { %v1616_v7 = vadd.f32 1e-05, %v1611_v6 }
 0xb9e   :  { %4526 = vrsqrt.f32 %v1616_v7  ;;  %vm1645_vm3 = vweird.f32 %v1616_v7 }
 0xba1   :  { %v1605_v38 = vpop.xlane.xlu1 %1604 }
 0xba2   :  { %v1612_v1 = vmul.f32 %v1605_v38, %v4875_v35 }
 0xba4   :  { %v4527_v20 = vpop.eup %4526  ;;  %v1617_v63 = vadd.f32 1e-05, %v1612_v1 }
 0xba5   :  { %v1640_v29 = vmul.f32 %v4527_v20, %v1616_v7  ;;  %vm1646_vm0 = vweird.f32 %v4527_v20 }
 0xba6   :  { %4528 = vrsqrt.f32 %v1617_v63  ;;  %vm1647_vm4 = vmor %vm1645_vm3, %vm1646_vm0  ;;  %vm1655_vm10 = vweird.f32 %v1617_v63 }
 0xba7   :  { %v1641_v25 = vmul.f32 %v4527_v20, %v1640_v29 }
 0xba9   :  { %v1642_v14 = vmul.f32 0.5, %v1641_v25  ;;  %v1608_v17 = vpop.xlane.xlu2 %1607 }
 0xbaa   :  { %v1613_v30 = vmul.f32 %v1608_v17, %v4875_v35 }
 0xbab   :  { %v1643_v3 = vsub.f32 1.5, %v1642_v14 }
 0xbac   :  { %v4529_v31 = vpop.eup %4528  ;;  %v1618_v32 = vadd.f32 1e-05, %v1613_v30 }
 0xbad   :  { %v1644_v16 = vmul.f32 %v4527_v20, %v1643_v3  ;;  %v1650_v15 = vmul.f32 %v4529_v31, %v1617_v63  ;;  %vm1656_vm5 = vweird.f32 %v4529_v31 }
 0xbae   :  { %4530 = vrsqrt.f32 %v1618_v32  ;;  %vm1657_vm11 = vmor %vm1655_vm10, %vm1656_vm5  ;;  %vm1665_vm13 = vweird.f32 %v1618_v32 }
 0xbaf   :  { %v1648_v39 = vsel %vm1647_vm4, %v4527_v20, %v1644_v16  ;;  %v1651_v42 = vmul.f32 %v4529_v31, %v1650_v15 }
 0xbb0   :  { %v1671_v47 = vmul.f32 %v1648_v39, %v5619_v9 }
 0xbb1   :  { %v1652_v37 = vmul.f32 0.5, %v1651_v42 }
 0xbb2   :  { %v1679_v4 = vmul.f32 %v5692_v62, %v1671_v47 }
 0xbb3   :  { %v1653_v24 = vsub.f32 1.5, %v1652_v37 }
 0xbb4   :  { %v4531_v26 = vpop.eup %4530  ;;  %v1687_v40 = vadd.f32 %v5698_v46, %v1679_v4 }
 0xbb5   :  { %v1654_v12 = vmul.f32 %v4529_v31, %v1653_v24  ;;  %v1660_v49 = vmul.f32 %v4531_v26, %v1618_v32  ;;  %vm1666_vm12 = vweird.f32 %v4531_v26 }
 0xbb6   :  { %4076 = vmatmul.msk.f32.gmra.mxu2 %vm155_vm1, %v1687_v40  ;;  %vm1667_vm14 = vmor %vm1665_vm13, %vm1666_vm12 }
 0xbb7   :  { %v1658_v33 = vsel %vm1657_vm11, %v4529_v31, %v1654_v12  ;;  %v1661_v50 = vmul.f32 %v4531_v26, %v1660_v49 }
 0xbb8   :  { %v1672_v51 = vmul.f32 %v1658_v33, %v5634_v13  ;;  %v1913_v13 = vld [vmem:[%s6783_s16 + $0x18] sm:$0xff] }
 0xbb9   :  { %v1662_v61 = vmul.f32 0.5, %v1661_v50  ;;  %1930 = vmatpush.xpose.msrb.mxu1 %v1913_v13 }
 0xbba   :  { %v1680_v9 = vmul.f32 %v5692_v62, %v1672_v51 }
 0xbbb   :  { %v1663_v41 = vsub.f32 1.5, %v1662_v61 }
 0xbbc   :  { %v1688_v56 = vadd.f32 %v5698_v46, %v1680_v9 }
 0xbbd   :  { %v1664_v57 = vmul.f32 %v4531_v26, %v1663_v41  ;;  %1931 = vmatpush.xpose.msrb.mxu1 %v1912_v54 }
 0xbbe   :  { %4077 = vmatmul.msk.f32.gmra.mxu2 %vm155_vm1, %v1688_v56 }
 0xbbf   :  { %v1668_v19 = vsel %vm1667_vm14, %v4531_v26, %v1664_v57 }
 0xbc0   :  { %v1673_v59 = vmul.f32 %v1668_v19, %v5649_v28  ;;  %v1911_v28 = vld [vmem:[%s6783_s16 + $0x8] sm:$0xff] }
 0xbc1   :  { %1932 = vmatpush.xpose.msrb.mxu1 %v1911_v28 }
 0xbc2   :  { %v1681_v44 = vmul.f32 %v5692_v62, %v1673_v59  ;;  %v1910_v62 = vld [vmem:[%s6783_s16] sm:$0xff] }
 0xbc4   :  { %v1689_v43 = vadd.f32 %v5698_v46, %v1681_v44 }
 0xbc5   :  { %1933 = vmatpush.xpose.msrb.mxu1 %v1910_v62 }
 0xbc6   :  { %4078 = vmatmul.msk.f32.gmra.mxu2 %vm155_vm1, %v1689_v43 }
 0xc08   :  { %v1790_v22 = vpop.f32.mrf.mxu2 }
 0xc09   :  { %v1791_v48 = vadd.f32 %v5734_v45, %v1790_v22 }
 0xc0b   :  { %v4079_v34 = vmul.f32 -1.702, %v1791_v48 }
 0xc0d   :  { %v1815_v0 = vmul.f32 1.442695, %v4079_v34 }
 0xc0f   :  { %4532 = vpow2.f32 %v1815_v0 }
 0xc10   :  { %v1793_v46 = vpop.f32.mrf.mxu2 }
 0xc11   :  { %v1794_v11 = vadd.f32 %v5734_v45, %v1793_v46 }
 0xc13   :  { %v4080_v8 = vmul.f32 -1.702, %v1794_v11 }
 0xc15   :  { %v4533_v58 = vpop.eup %4532  ;;  %v1817_v5 = vmul.f32 1.442695, %v4080_v8 }
 0xc16   :  { %v1825_v55 = vadd.f32 1.0, %v4533_v58 }
 0xc17   :  { %4534 = vpow2.f32 %v1817_v5 }
 0xc18   :  { %4536 = vrcp.f32 %v1825_v55  ;;  %v1841_v6 = vand.u32 2147483648, %v1825_v55  ;;  %v1839_v38 = vand.u32 2147483647, %v1825_v55  ;;  %vm1835_vm0 = vweird.f32 %v1825_v55 }
 0xc1a   :  { %v1842_v63 = vor.u32 1.1754944e-38, %v1841_v6  ;;  %vm1840_vm4 = vcmp.eq.f32.partialorder %v1839_v38, 8.507059e+37 }
 0xc1d   :  { %v4535_v23 = vpop.eup %4534 }
 0xc1e   :  { %v4537_v52 = vpop.eup %4536  ;;  %v1826_v27 = vadd.f32 1.0, %v4535_v23 }
 0xc1f   :  { %v1831_v18 = vmul.f32 %v4537_v52, %v1825_v55  ;;  %vm1836_vm15 = vweird.f32 %v4537_v52 }
 0xc20   :  { %4538 = vrcp.f32 %v1826_v27  ;;  %vm1837_vm3 = vmor %vm1835_vm0, %vm1836_vm15  ;;  %v1856_v3 = vand.u32 2147483648, %v1826_v27  ;;  %v1854_v32 = vand.u32 2147483647, %v1826_v27  ;;  %vm1850_vm10 = vweird.f32 %v1826_v27 }
 0xc21   :  { %v1832_v2 = vsub.f32 1.0, %v1831_v18 }
 0xc22   :  { %v1857_v15 = vor.u32 1.1754944e-38, %v1856_v3  ;;  %vm1855_vm12 = vcmp.eq.f32.partialorder %v1854_v32, 8.507059e+37 }
 0xc23   :  { %v1833_v7 = vmul.f32 %v4537_v52, %v1832_v2 }
 0xc25   :  { %v1834_v1 = vadd.f32 %v4537_v52, %v1833_v7 }
 0xc26   :  { %v4539_v20 = vpop.eup %4538 }
 0xc27   :  { %v1838_v29 = vsel %vm1837_vm3, %v4537_v52, %v1834_v1  ;;  %v1846_v25 = vmul.f32 %v4539_v20, %v1826_v27  ;;  %vm1851_vm5 = vweird.f32 %v4539_v20 }
 0xc28   :  { %v1843_v14 = vsel %vm1840_vm4, %v1842_v63, %v1838_v29  ;;  %vm1852_vm11 = vmor %vm1850_vm10, %vm1851_vm5 }
 0xc29   :  { %v1905_v17 = vmul.f32 %v1843_v14, %v1791_v48  ;;  %v1847_v30 = vsub.f32 1.0, %v1846_v25 }
 0xc2b   :  { %1934 = vmatmul.f32.vlgmr.msrb.gmra.mxu1 %v1905_v17  ;;  %v1848_v31 = vmul.f32 %v4539_v20, %v1847_v30 }
 0xc2d   :  { %v1849_v16 = vadd.f32 %v4539_v20, %v1848_v31  ;;  %v4410_v31 = vld [vmem:[%s6782_s17] ss:$0 sm:$0xff] }
 0xc2f   :  { %v1853_v39 = vsel %vm1852_vm11, %v4539_v20, %v1849_v16 }
 0xc30   :  { %v1858_v42 = vsel %vm1855_vm12, %v1857_v15, %v1853_v39 }
 0xc31   :  { %v1906_v47 = vmul.f32 %v1858_v42, %v1794_v11 }
 0xc33   :  { %1937 = vmatmul.f32.gmra.mxu1 %v1906_v47 }
 0xc39   :  { %v1796_v37 = vpop.f32.mrf.mxu2 }
 0xc3a   :  { %v1797_v4 = vadd.f32 %v5734_v45, %v1796_v37 }
 0xc3c   :  { %v4081_v24 = vmul.f32 -1.702, %v1797_v4 }
 0xc3e   :  { %v1819_v26 = vmul.f32 1.442695, %v4081_v24 }
 0xc40   :  { %4540 = vpow2.f32 %v1819_v26 }
 0xc41   :  { %v1799_v40 = vpop.f32.mrf.mxu2 }
 0xc42   :  { %v1800_v12 = vadd.f32 %v5734_v45, %v1799_v40 }
 0xc44   :  { %v4082_v49 = vmul.f32 -1.702, %v1800_v12 }
 0xc46   :  { %v4541_v33 = vpop.eup %4540  ;;  %v1821_v50 = vmul.f32 1.442695, %v4082_v49 }
 0xc47   :  { %v1827_v51 = vadd.f32 1.0, %v4541_v33 }
 0xc48   :  { %4542 = vpow2.f32 %v1821_v50 }
 0xc49   :  { %4544 = vrcp.f32 %v1827_v51  ;;  %v1802_v61 = vpop.f32.mrf.mxu2  ;;  %v1871_v13 = vand.u32 2147483648, %v1827_v51  ;;  %v1869_v28 = vand.u32 2147483647, %v1827_v51  ;;  %vm1865_vm14 = vweird.f32 %v1827_v51 }
 0xc4a   :  { %v1803_v9 = vadd.f32 %v5734_v45, %v1802_v61 }
 0xc4b   :  { %v1872_v45 = vor.u32 1.1754944e-38, %v1871_v13  ;;  %vm1870_vm0 = vcmp.eq.f32.partialorder %v1869_v28, 8.507059e+37  ;;  %v4097_v13 = vld [vmem:[%s6825_s27 + $0xb8] sm:$0xff]  ;;  %v4095_v28 = vld [vmem:[%s6825_s27 + $0xa8] sm:$0xff] }
 0xc4c   :  { %v4083_v41 = vmul.f32 -1.702, %v1803_v9  ;;  %4099 = vmatpush.xpose.msk.msrb.mxu3 %vm155_vm1, %v4097_v13 }
 0xc4e   :  { %v4543_v56 = vpop.eup %4542  ;;  %v1823_v57 = vmul.f32 1.442695, %v4083_v41 }
 0xc4f   :  { %v4545_v19 = vpop.eup %4544  ;;  %v1828_v59 = vadd.f32 1.0, %v4543_v56 }
 0xc50   :  { %4546 = vpow2.f32 %v1823_v57  ;;  %v1861_v44 = vmul.f32 %v4545_v19, %v1827_v51  ;;  %vm1866_vm13 = vweird.f32 %v4545_v19 }
 0xc51   :  { %4548 = vrcp.f32 %v1828_v59  ;;  %vm1867_vm15 = vmor %vm1865_vm14, %vm1866_vm13  ;;  %v1886_v5 = vand.u32 2147483648, %v1828_v59  ;;  %v1884_v23 = vand.u32 2147483647, %v1828_v59  ;;  %vm1880_vm4 = vweird.f32 %v1828_v59 }
 0xc52   :  { %v1862_v43 = vsub.f32 1.0, %v1861_v44 }
 0xc53   :  { %v1887_v18 = vor.u32 1.1754944e-38, %v1886_v5  ;;  %vm1885_vm10 = vcmp.eq.f32.partialorder %v1884_v23, 8.507059e+37 }
 0xc54   :  { %v1863_v54 = vmul.f32 %v4545_v19, %v1862_v43 }
 0xc56   :  { %v4547_v22 = vpop.eup %4546  ;;  %v1864_v62 = vadd.f32 %v4545_v19, %v1863_v54  ;;  %v4096_v54 = vld [vmem:[%s6825_s27 + $0xb0] sm:$0xff] }
 0xc57   :  { %v4549_v48 = vpop.eup %4548  ;;  %v1829_v34 = vadd.f32 1.0, %v4547_v22  ;;  %4100 = vmatpush.xpose.msk.msrb.mxu3 %vm155_vm1, %v4096_v54 }
 0xc58   :  { %v1868_v0 = vsel %vm1867_vm15, %v4545_v19, %v1864_v62  ;;  %v1876_v46 = vmul.f32 %v4549_v48, %v1828_v59  ;;  %vm1881_vm3 = vweird.f32 %v4549_v48 }
 0xc59   :  { %4550 = vrcp.f32 %v1829_v34  ;;  %v1873_v11 = vsel %vm1870_vm0, %v1872_v45, %v1868_v0  ;;  %vm1882_vm5 = vmor %vm1880_vm4, %vm1881_vm3  ;;  %v1901_v20 = vand.u32 2147483648, %v1829_v34  ;;  %v1899_v29 = vand.u32 2147483647, %v1829_v34  ;;  %v4093_v0 = vld [vmem:[%s6825_s27 + $0x98] sm:$0xff] }
 0xc5a   :  { %v1907_v8 = vmul.f32 %v1873_v11, %v1797_v4  ;;  %v1877_v58 = vsub.f32 1.0, %v1876_v46  ;;  %vm1895_vm12 = vweird.f32 %v1829_v34 }
 0xc5b   :  { %v1902_v14 = vor.u32 1.1754944e-38, %v1901_v20  ;;  %vm1900_vm14 = vcmp.eq.f32.partialorder %v1899_v29, 8.507059e+37  ;;  %4101 = vmatpush.xpose.msk.msrb.mxu3 %vm155_vm1, %v4095_v28  ;;  %v4088_v20 = vld [vmem:[%s6825_s27 + $0x70] sm:$0xff]  ;;  %v4086_v29 = vld [vmem:[%s6825_s27 + $0x60] sm:$0xff] }
 0xc5c   :  { %1940 = vmatmul.f32.gmra.mxu1 %v1907_v8  ;;  %v1878_v55 = vmul.f32 %v4549_v48, %v1877_v58 }
 0xc5e   :  { %v1879_v52 = vadd.f32 %v4549_v48, %v1878_v55 }
 0xc5f   :  { %v4551_v27 = vpop.eup %4550 }
 0xc60   :  { %v1883_v2 = vsel %vm1882_vm5, %v4549_v48, %v1879_v52  ;;  %v1891_v6 = vmul.f32 %v4551_v27, %v1829_v34  ;;  %vm1896_vm11 = vweird.f32 %v4551_v27  ;;  %v4094_v48 = vld [vmem:[%s6825_s27 + $0xa0] sm:$0xff] }
 0xc61   :  { %v1888_v7 = vsel %vm1885_vm10, %v1887_v18, %v1883_v2  ;;  %vm1897_vm13 = vmor %vm1895_vm12, %vm1896_vm11  ;;  %4102 = vmatpush.xpose.msk.msrb.mxu3 %vm155_vm1, %v4094_v48 }
 0xc62   :  { %v1908_v38 = vmul.f32 %v1888_v7, %v1800_v12  ;;  %v1892_v1 = vsub.f32 1.0, %v1891_v6  ;;  %v4092_v6 = vld [vmem:[%s6825_s27 + $0x90] sm:$0xff]  ;;  %v4091_v7 = vld [vmem:[%s6825_s27 + $0x88] sm:$0xff] }
 0xc64   :  { %1943 = vmatmul.f32.gmra.mxu1 %v1908_v38  ;;  %v1893_v63 = vmul.f32 %v4551_v27, %v1892_v1  ;;  %v4090_v38 = vld [vmem:[%s6825_s27 + $0x80] sm:$0xff]  ;;  %v4089_v1 = vld [vmem:[%s6825_s27 + $0x78] sm:$0xff] }
 0xc65   :  { %4103 = vmatpush.xpose.msk.msrb.mxu3 %vm155_vm1, %v4093_v0 }
 0xc66   :  { %v1894_v25 = vadd.f32 %v4551_v27, %v1893_v63  ;;  %v4087_v63 = vld [vmem:[%s6825_s27 + $0x68] sm:$0xff] }
 0xc68   :  { %v1898_v17 = vsel %vm1897_vm13, %v4551_v27, %v1894_v25 }
 0xc69   :  { %v1903_v30 = vsel %vm1900_vm14, %v1902_v14, %v1898_v17  ;;  %4104 = vmatpush.xpose.msk.msrb.mxu3 %vm155_vm1, %v4092_v6 }
 0xc6a   :  { %v1909_v3 = vmul.f32 %v1903_v30, %v1803_v9 }
 0xc6c   :  { %1946 = vmatmul.f32.gmra.mxu1 %v1909_v3 }
 0xc6d   :  { %4105 = vmatpush.xpose.msk.msrb.mxu3 %vm155_vm1, %v4091_v7 }
 0xc71   :  { %4106 = vmatpush.xpose.msk.msrb.mxu3 %vm155_vm1, %v4090_v38 }
 0xc75   :  { %4107 = vmatpush.xpose.msk.msrb.mxu3 %vm155_vm1, %v4089_v1 }
 0xc79   :  { %4108 = vmatpush.xpose.msk.msrb.mxu3 %vm155_vm1, %v4088_v20 }
 0xc7d   :  { %4109 = vmatpush.xpose.msk.msrb.mxu3 %vm155_vm1, %v4087_v63 }
 0xc81   :  { %4110 = vmatpush.xpose.msk.msrb.mxu3 %vm155_vm1, %v4086_v29 }
 0xca8   :  { %v1935_v32 = vpop.f32.mrf.mxu1 }
 0xca9   :  { %v1936_v16 = vadd.f32 %v4410_v31, %v1935_v32 }
 0xcab   :  { %v5748_v15 = vadd.f32 %v1936_v16, %v5561_v36 }
 0xcad   :  { %v1959_v39 = vsel %vm155_vm1, %v5748_v15, 0.0 }
 0xcae   :  { %1960 = vadd.xlane.f32.xlu0 %v1959_v39 }
 0xcb0   :  { %v1938_v42 = vpop.f32.mrf.mxu1 }
 0xcb1   :  { %v1939_v47 = vadd.f32 %v4410_v31, %v1938_v42 }
 0xcb3   :  { %v5753_v37 = vadd.f32 %v1939_v47, %v5566_v53 }
 0xcb5   :  { %v1962_v4 = vsel %vm155_vm1, %v5753_v37, 0.0 }
 0xcb6   :  { %1963 = vadd.xlane.f32.xlu1 %v1962_v4 }
 0xcd9   :  { %v1941_v24 = vpop.f32.mrf.mxu1 }
 0xcda   :  { %v1942_v26 = vadd.f32 %v4410_v31, %v1941_v24 }
 0xcdc   :  { %v5758_v40 = vadd.f32 %v1942_v26, %v5573_v10 }
 0xcde   :  { %v1965_v36 = vsel %vm155_vm1, %v5758_v40, 0.0 }
 0xcdf   :  { %1966 = vadd.xlane.f32.xlu2 %v1965_v36  ;;  %v5860_v36 = vld [vmem:[%s6826_s0 + $0x1] ss:$0 sm:$0xff]  ;;  %s6832_s0 = smov 104  }
 0xce1   :  { %v1944_v12 = vpop.f32.mrf.mxu1 }
 0xce2   :  { %v1945_v49 = vadd.f32 %v4410_v31, %v1944_v12 }
 0xce4   :  { %v5763_v33 = vadd.f32 %v1945_v49, %v5579_v21 }
 0xce6   :  { %v1968_v53 = vsel %vm155_vm1, %v5763_v33, 0.0 }
 0xce7   :  { %1969 = vadd.xlane.f32.xlu0 %v1968_v53  ;;  %v5865_v53 = vld [vmem:[%s6827_s6 + $0x1] ss:$0 sm:$0xff] }
 0xce9   :  { %v1947_v50 = vpop.f32.mrf.mxu1 }
 0xcea   :  { %v1948_v51 = vadd.f32 %v4410_v31, %v1947_v50 }
 0xcec   :  { %v5768_v61 = vadd.f32 %v1948_v51, %v5584_v60 }
 0xcee   :  { %v1971_v10 = vsel %vm168_vm2, %v5768_v61, 0.0 }
 0xcef   :  { %1972 = vadd.xlane.f32.xlu1 %v1971_v10 }
 0xd21   :  { %v1961_v9 = vpop.xlane.xlu0 %1960 }
 0xd22   :  { %v1974_v41 = vmul.f32 %v1961_v9, %v4875_v35 }
 0xd24   :  { %v5774_v56 = vsub.f32 %v5748_v15, %v1974_v41 }
 0xd26   :  { %v1984_v21 = vmul.f32 %v5774_v56, %v5774_v56 }
 0xd28   :  { %v1989_v57 = vsel %vm155_vm1, %v1984_v21, 0.0 }
 0xd29   :  { %v1964_v19 = vpop.xlane.xlu1 %1963  ;;  %1990 = vadd.xlane.f32.xlu2 %v1989_v57 }
 0xd2a   :  { %v1975_v60 = vmul.f32 %v1964_v19, %v4875_v35 }
 0xd2c   :  { %v5781_v59 = vsub.f32 %v5753_v37, %v1975_v60 }
 0xd2e   :  { %v1985_v44 = vmul.f32 %v5781_v59, %v5781_v59 }
 0xd30   :  { %v1992_v43 = vsel %vm155_vm1, %v1985_v44, 0.0 }
 0xd31   :  { %1993 = vadd.xlane.f32.xlu0 %v1992_v43 }
 0xd52   :  { %v1967_v22 = vpop.xlane.xlu2 %1966 }
 0xd53   :  { %v1976_v62 = vmul.f32 %v1967_v22, %v4875_v35 }
 0xd55   :  { %v5803_v34 = vsub.f32 %v5758_v40, %v1976_v62 }
 0xd57   :  { %v1986_v45 = vmul.f32 %v5803_v34, %v5803_v34 }
 0xd59   :  { %v1995_v46 = vsel %vm155_vm1, %v1986_v45, 0.0 }
 0xd5a   :  { %1996 = vadd.xlane.f32.xlu1 %v1995_v46  ;;  %v1970_v11 = vpop.xlane.xlu0 %1969 }
 0xd5b   :  { %v1977_v8 = vmul.f32 %v1970_v11, %v4875_v35 }
 0xd5d   :  { %v5815_v58 = vsub.f32 %v5763_v33, %v1977_v8 }
 0xd5f   :  { %v1987_v5 = vmul.f32 %v5815_v58, %v5815_v58 }
 0xd61   :  { %v1998_v55 = vsel %vm155_vm1, %v1987_v5, 0.0 }
 0xd62   :  { %v1973_v23 = vpop.xlane.xlu1 %1972  ;;  %1999 = vadd.xlane.f32.xlu2 %v1998_v55 }
 0xd63   :  { %v1978_v52 = vmul.f32 %v1973_v23, %v4875_v35 }
 0xd65   :  { %v5822_v27 = vsub.f32 %v5768_v61, %v1978_v52 }
 0xd67   :  { %v1988_v18 = vmul.f32 %v5822_v27, %v5822_v27 }
 0xd69   :  { %v2001_v2 = vsel %vm168_vm2, %v1988_v18, 0.0 }
 0xd6a   :  { %2002 = vadd.xlane.f32.xlu0 %v2001_v2 }
 0xd9c   :  { %v1991_v25 = vpop.xlane.xlu2 %1990 }
 0xd9d   :  { %v2004_v14 = vmul.f32 %v1991_v25, %v4875_v35 }
 0xd9f   :  { %v2009_v17 = vadd.f32 1e-05, %v2004_v14 }
 0xda1   :  { %4552 = vrsqrt.f32 %v2009_v17  ;;  %vm2020_vm0 = vweird.f32 %v2009_v17 }
 0xda4   :  { %v1994_v30 = vpop.xlane.xlu0 %1993 }
 0xda5   :  { %v2005_v3 = vmul.f32 %v1994_v30, %v4875_v35 }
 0xda7   :  { %v4553_v31 = vpop.eup %4552  ;;  %v2010_v32 = vadd.f32 1e-05, %v2005_v3 }
 0xda8   :  { %v2015_v16 = vmul.f32 %v4553_v31, %v2009_v17  ;;  %vm2021_vm15 = vweird.f32 %v4553_v31 }
 0xda9   :  { %4554 = vrsqrt.f32 %v2010_v32  ;;  %vm2022_vm3 = vmor %vm2020_vm0, %vm2021_vm15  ;;  %vm2030_vm5 = vweird.f32 %v2010_v32 }
 0xdaa   :  { %v2016_v39 = vmul.f32 %v4553_v31, %v2015_v16 }
 0xdac   :  { %v2017_v42 = vmul.f32 0.5, %v2016_v39 }
 0xdae   :  { %v2018_v47 = vsub.f32 1.5, %v2017_v42 }
 0xdaf   :  { %v4555_v4 = vpop.eup %4554 }
 0xdb0   :  { %v2019_v24 = vmul.f32 %v4553_v31, %v2018_v47  ;;  %v2025_v26 = vmul.f32 %v4555_v4, %v2010_v32  ;;  %vm2031_vm4 = vweird.f32 %v4555_v4 }
 0xdb1   :  { %vm2032_vm10 = vmor %vm2030_vm5, %vm2031_vm4 }
 0xdb2   :  { %v2023_v12 = vsel %vm2022_vm3, %v4553_v31, %v2019_v24  ;;  %v2026_v49 = vmul.f32 %v4555_v4, %v2025_v26  ;;  %v4411_v24 = vld [vmem:[%s6774_s9 + $0x1] ss:$0 sm:$0xff] }
 0xdb3   :  { %v2064_v50 = vmul.f32 %v2023_v12, %v5774_v56 }
 0xdb4   :  { %v2027_v51 = vmul.f32 0.5, %v2026_v49 }
 0xdb5   :  { %v2072_v10 = vmul.f32 %v5860_v36, %v2064_v50 }
 0xdb6   :  { %v2028_v9 = vsub.f32 1.5, %v2027_v51 }
 0xdb7   :  { %v2080_v41 = vadd.f32 %v5865_v53, %v2072_v10 }
 0xdb8   :  { %v2029_v21 = vmul.f32 %v4555_v4, %v2028_v9 }
 0xdb9   :  { %4111 = vmatmul.msk.f32.vlgmr.msrb.gmra.mxu3 %vm155_vm1, %v2080_v41 }
 0xdba   :  { %v2033_v57 = vsel %vm2032_vm10, %v4555_v4, %v2029_v21 }
 0xdbb   :  { %v2065_v19 = vmul.f32 %v2033_v57, %v5781_v59 }
 0xdbd   :  { %v2073_v60 = vmul.f32 %v5860_v36, %v2065_v19 }
 0xdbf   :  { %v2081_v44 = vadd.f32 %v5865_v53, %v2073_v60 }
 0xdc1   :  { %4112 = vmatmul.msk.f32.gmra.mxu3 %vm155_vm1, %v2081_v44 }
 0xdcd   :  { %v1997_v56 = vpop.xlane.xlu1 %1996 }
 0xdce   :  { %v2006_v43 = vmul.f32 %v1997_v56, %v4875_v35 }
 0xdd0   :  { %v2011_v13 = vadd.f32 1e-05, %v2006_v43 }
 0xdd2   :  { %4556 = vrsqrt.f32 %v2011_v13  ;;  %vm2040_vm12 = vweird.f32 %v2011_v13 }
 0xdd5   :  { %v2000_v54 = vpop.xlane.xlu2 %1999 }
 0xdd6   :  { %v2007_v28 = vmul.f32 %v2000_v54, %v4875_v35  ;;  %v5946_v54 = vld [vmem:[%s6775_s1] sm:$0xff] }
 0xdd8   :  { %v4557_v22 = vpop.eup %4556  ;;  %v2012_v62 = vadd.f32 1e-05, %v2007_v28 }
 0xdd9   :  { %v2035_v48 = vmul.f32 %v4557_v22, %v2011_v13  ;;  %vm2041_vm11 = vweird.f32 %v4557_v22 }
 0xdda   :  { %4558 = vrsqrt.f32 %v2012_v62  ;;  %vm2042_vm13 = vmor %vm2040_vm12, %vm2041_vm11  ;;  %vm2050_vm15 = vweird.f32 %v2012_v62 }
 0xddb   :  { %v2036_v45 = vmul.f32 %v4557_v22, %v2035_v48  ;;  %v5953_v48 = vld [vmem:[%s6775_s1 + $0x8] sm:$0xff] }
 0xddd   :  { %v2037_v59 = vmul.f32 0.5, %v2036_v45  ;;  %v2003_v0 = vpop.xlane.xlu0 %2002 }
 0xdde   :  { %v2008_v46 = vmul.f32 %v2003_v0, %v4875_v35 }
 0xddf   :  { %v2038_v11 = vsub.f32 1.5, %v2037_v59 }
 0xde0   :  { %v4559_v8 = vpop.eup %4558  ;;  %v2013_v5 = vadd.f32 1e-05, %v2008_v46  ;;  %v5960_v46 = vld [vmem:[%s6775_s1 + $0x10] sm:$0xff] }
 0xde1   :  { %v2039_v55 = vmul.f32 %v4557_v22, %v2038_v11  ;;  %v2045_v23 = vmul.f32 %v4559_v8, %v2012_v62  ;;  %vm2051_vm14 = vweird.f32 %v4559_v8 }
 0xde2   :  { %4560 = vrsqrt.f32 %v2013_v5  ;;  %vm2052_vm0 = vmor %vm2050_vm15, %vm2051_vm14  ;;  %vm2060_vm4 = vweird.f32 %v2013_v5 }
 0xde3   :  { %v2043_v52 = vsel %vm2042_vm13, %v4557_v22, %v2039_v55  ;;  %v2046_v18 = vmul.f32 %v4559_v8, %v2045_v23  ;;  %v5967_v55 = vld [vmem:[%s6775_s1 + $0x18] sm:$0xff] }
 0xde4   :  { %v2066_v2 = vmul.f32 %v2043_v52, %v5803_v34 }
 0xde5   :  { %v2047_v6 = vmul.f32 0.5, %v2046_v18 }
 0xde6   :  { %v2074_v7 = vmul.f32 %v5860_v36, %v2066_v2  ;;  %v5974_v2 = vld [vmem:[%s6775_s1 + $0x20] sm:$0x3]  ;;  %s6828_s1 = smov 120  }
 0xde7   :  { %v2048_v38 = vsub.f32 1.5, %v2047_v6 }
 0xde8   :  { %v4561_v1 = vpop.eup %4560  ;;  %v2082_v20 = vadd.f32 %v5865_v53, %v2074_v7 }
 0xde9   :  { %v2049_v63 = vmul.f32 %v4559_v8, %v2048_v38  ;;  %v2055_v29 = vmul.f32 %v4561_v1, %v2013_v5  ;;  %vm2061_vm3 = vweird.f32 %v4561_v1 }
 0xdea   :  { %4113 = vmatmul.msk.f32.gmra.mxu3 %vm155_vm1, %v2082_v20  ;;  %vm2062_vm5 = vmor %vm2060_vm4, %vm2061_vm3 }
 0xdeb   :  { %v2053_v25 = vsel %vm2052_vm0, %v4559_v8, %v2049_v63  ;;  %v2056_v14 = vmul.f32 %v4561_v1, %v2055_v29 }
 0xdec   :  { %v2067_v17 = vmul.f32 %v2053_v25, %v5815_v58 }
 0xded   :  { %v2057_v30 = vmul.f32 0.5, %v2056_v14 }
 0xdee   :  { %v2075_v34 = vmul.f32 %v5860_v36, %v2067_v17 }
 0xdef   :  { %v2058_v3 = vsub.f32 1.5, %v2057_v30 }
 0xdf0   :  { %v2083_v31 = vadd.f32 %v5865_v53, %v2075_v34 }
 0xdf1   :  { %v2059_v32 = vmul.f32 %v4561_v1, %v2058_v3 }
 0xdf2   :  { %4114 = vmatmul.msk.f32.gmra.mxu3 %vm155_vm1, %v2083_v31 }
 0xdf3   :  { %v2063_v16 = vsel %vm2062_vm5, %v4561_v1, %v2059_v32 }
 0xdf4   :  { %v2068_v39 = vmul.f32 %v2063_v16, %v5822_v27 }
 0xdf6   :  { %v2076_v42 = vmul.f32 %v5860_v36, %v2068_v39 }
 0xdf8   :  { %v2084_v47 = vadd.f32 %v5865_v53, %v2076_v42 }
 0xdfa   :  { %4115 = vmatmul.msk.f32.gmra.mxu3 %vm155_vm1, %v2084_v47 }
 0xe3c   :  { %v2171_v58 = vpop.f32.mrf.mxu3 }
 0xe3d   :  { %v5897_v27 = vadd.f32 %v4411_v24, %v2171_v58 }
 0xe3f   :  { %v5919_v19 = vmul.f32 0.35355338, %v5897_v27 }
 0xe44   :  { %v2174_v4 = vpop.f32.mrf.mxu3 }
 0xe45   :  { %v5909_v51 = vadd.f32 %v4411_v24, %v2174_v4 }
 0xe47   :  { %v5924_v60 = vmul.f32 0.35355338, %v5909_v51 }
 0xe6d   :  { %v2177_v26 = vpop.f32.mrf.mxu3 }
 0xe6e   :  { %v5893_v12 = vadd.f32 %v4411_v24, %v2177_v26  ;;  %v6000_v26 = vpack.i.bf16 %v5897_v27, %v5909_v51 }
 0xe70   :  { %2205 = vrot.lane.b32.xlu0 %v5893_v12, %s4688_s29  ;;  %v5929_v44 = vmul.f32 0.35355338, %v5893_v12 }
 0xe75   :  { %v2180_v49 = vpop.f32.mrf.mxu3 }
 0xe76   :  { %v5899_v36 = vadd.f32 %v4411_v24, %v2180_v49 }
 0xe78   :  { %2207 = vrot.lane.b32.xlu2 %v5899_v36, %s4688_s29  ;;  %2201 = vrot.lane.b32.xlu0 %v5897_v27, %s4688_s29  ;;  %v5934_v56 = vmul.f32 0.35355338, %v5899_v36  ;;  %v5982_v38 = vpack.i.bf16 %v5893_v12, %v5899_v36 }
 0xe7d   :  { %v2183_v53 = vpop.f32.mrf.mxu3 }
 0xe7e   :  { %v5905_v50 = vadd.f32 %v4411_v24, %v2183_v53 }
 0xe80   :  { %2209 = vrot.lane.b32.xlu1 %v5905_v50, %s4688_s29  ;;  %v5939_v43 = vmul.f32 0.35355338, %v5905_v50 }
 0xe88   :  { %2203 = vrot.lane.b32.xlu1 %v5909_v51, %s4688_s29 }
 0xed2   :  { %v2208_v9 = vpop.permute.xlu2 %2207 }
 0xee2   :  { %v2206_v41 = vpop.permute.xlu0 %2205 }
 0xeea   :  { %v2202_v57 = vpop.permute.xlu0 %2201 }
 0xef2   :  { %v2210_v10 = vpop.permute.xlu1 %2209 }
 0xef3   :  { %4120 = vmatpush.xpose.msk.msra.mxu0 %vm541_vm6, %v2210_v10 }
 0xef7   :  { %4121 = vmatpush.xpose.msk.msra.mxu0 %vm541_vm6, %v2208_v9 }
 0xefa   :  { %v2204_v21 = vpop.permute.xlu1 %2203 }
 0xefb   :  { %4122 = vmatpush.xpose.msk.msra.mxu0 %vm541_vm6, %v2206_v41 }
 0xeff   :  { %4123 = vmatpush.xpose.msk.msra.mxu0 %vm541_vm6, %v2204_v21 }
 0xf03   :  { %4124 = vmatpush.xpose.msk.msra.mxu0 %vm541_vm6, %v2202_v57 }
 0xf06   :  { %4125 = vmatmul.msk.f32.vlgmr.msra.gmra.mxu0 %vm541_vm6, %v5919_v19 }
 0xf0e   :  { %4126 = vmatmul.msk.f32.gmra.mxu0 %vm541_vm6, %v5924_v60 }
 0xf16   :  { %4127 = vmatmul.msk.f32.gmra.mxu0 %vm541_vm6, %v5929_v44 }
 0xf1e   :  { %4128 = vmatmul.msk.f32.gmra.mxu0 %vm541_vm6, %v5934_v56 }
 0xf26   :  { %4129 = vmatmul.msk.f32.gmra.mxu0 %vm541_vm6, %v5939_v43 }
 0xf83   :  { %v2253_v13 = vpop.f32.mrf.mxu0 }
 0xf84   :  { %v2254_v28 = vadd.f32 %v5946_v54, %v2253_v13 }
 0xf86   :  { %v2268_v22 = vsel %vm599_vm7, %v2254_v28, -inf }
 0xf87   :  { %2269 = vmax.xlane.f32.xlu2 %v2268_v22 }
 0xf8b   :  { %v2256_v62 = vpop.f32.mrf.mxu0 }
 0xf8c   :  { %v2257_v45 = vadd.f32 %v5953_v48, %v2256_v62 }
 0xf8e   :  { %v2271_v59 = vsel %vm599_vm7, %v2257_v45, -inf }
 0xf8f   :  { %2272 = vmax.xlane.f32.xlu1 %v2271_v59 }
 0xf93   :  { %v2259_v0 = vpop.f32.mrf.mxu0 }
 0xf94   :  { %v2260_v11 = vadd.f32 %v5960_v46, %v2259_v0 }
 0xf96   :  { %v2274_v8 = vsel %vm599_vm7, %v2260_v11, -inf }
 0xf97   :  { %2275 = vmax.xlane.f32.xlu0 %v2274_v8 }
 0xf9b   :  { %v2262_v5 = vpop.f32.mrf.mxu0 }
 0xf9c   :  { %v2263_v23 = vadd.f32 %v5967_v55, %v2262_v5 }
 0xf9e   :  { %v2277_v52 = vsel %vm599_vm7, %v2263_v23, -inf }
 0xf9f   :  { %2278 = vmax.xlane.f32.xlu2 %v2277_v52  ;;  %v6092_v52 = vld [vmem:[%s6776_s10 + $0x28] sm:$0xff] }
 0xfa3   :  { %v2265_v18 = vpop.f32.mrf.mxu0 }
 0xfa4   :  { %v2266_v6 = vadd.f32 %v5974_v2, %v2265_v18 }
 0xfa6   :  { %v2280_v7 = vsel %vm612_vm8, %v2266_v6, -inf }
 0xfa7   :  { %2281 = vmax.xlane.f32.xlu1 %v2280_v7 }
 0xfab   :  { %2331 = vrot.lane.b32.xlu0 %v5905_v50, %s4689_s8 }
 0xfc0   :  { %4360 = vrot.lane.b32.xlu1 %v5982_v38, %s4689_s8 }
 0xffa   :  { %v2270_v1 = vpop.xlane.xlu2 %2269 }
 0xffb   :  { %v2283_v20 = vsub.f32 %v2254_v28, %v2270_v1 }
 0xffd   :  { %v2288_v63 = vmul.f32 1.442695, %v2283_v20 }
 0xfff   :  { %4562 = vpow2.f32 %v2288_v63 }
0x1002   :  { %v2273_v29 = vpop.xlane.xlu1 %2272 }
0x1003   :  { %v2284_v25 = vsub.f32 %v2257_v45, %v2273_v29 }
0x1005   :  { %v5986_v14 = vpop.eup %4562  ;;  %v2290_v17 = vmul.f32 1.442695, %v2284_v25 }
0x1006   :  { %v2298_v30 = vsel %vm599_vm7, %v5986_v14, 0.0 }
0x1007   :  { %4564 = vpow2.f32 %v2290_v17  ;;  %2299 = vadd.xlane.f32.xlu2 %v2298_v30 }
0x100a   :  { %v2276_v34 = vpop.xlane.xlu0 %2275 }
0x100b   :  { %v2285_v3 = vsub.f32 %v2260_v11, %v2276_v34 }
0x100d   :  { %v5990_v31 = vpop.eup %4564  ;;  %v2292_v32 = vmul.f32 1.442695, %v2285_v3 }
0x100e   :  { %v2301_v16 = vsel %vm599_vm7, %v5990_v31, 0.0 }
0x100f   :  { %4566 = vpow2.f32 %v2292_v32  ;;  %2302 = vadd.xlane.f32.xlu0 %v2301_v16 }
0x1012   :  { %v2279_v9 = vpop.xlane.xlu2 %2278 }
0x1013   :  { %v2286_v57 = vsub.f32 %v2263_v23, %v2279_v9  ;;  %v6074_v23 = vld [vmem:[%s6776_s10 + $0x38] sm:$0xff] }
0x1015   :  { %v5994_v39 = vpop.eup %4566  ;;  %v2294_v13 = vmul.f32 1.442695, %v2286_v57 }
0x1016   :  { %v2304_v42 = vsel %vm599_vm7, %v5994_v39, 0.0 }
0x1017   :  { %2305 = vadd.xlane.f32.xlu1 %v2304_v42 }
0x101a   :  { %v2282_v47 = vpop.xlane.xlu1 %2281 }
0x101b   :  { %v2287_v58 = vsub.f32 %v2266_v6, %v2282_v47  ;;  %v6101_v6 = vld [vmem:[%s6776_s10 + $0x20] sm:$0xff] }
0x101d   :  { %v2296_v4 = vmul.f32 1.442695, %v2287_v58  ;;  %v2332_v24 = vpop.permute.xlu0 %2331 }
0x101e   :  { %4130 = vmatpush.msk.msrb.mxu2 %vm685_vm9, %v2332_v24 }
0x101f   :  { %4568 = vpow2.f32 %v2296_v4  ;;  %4365 = vrot.lane.b32.xlu2 %v6000_v26, %s4689_s8  ;;  %s6829_s8 = smov 80  }
0x1020   :  { %4570 = vpow2.f32 %v2294_v13 }
0x1025   :  { %v6005_v49 = vpop.eup %4568 }
0x1026   :  { %v2310_v53 = vsel %vm612_vm8, %v6005_v49, 0.0  ;;  %v6019_v28 = vpop.eup %4570 }
0x1027   :  { %2311 = vadd.xlane.f32.xlu0 %v2310_v53  ;;  %v2307_v22 = vsel %vm599_vm7, %v6019_v28, 0.0 }
0x1030   :  { %2402 = vrot.lane.b32.xlu1 %v5899_v36, %s4690_s26 }
0x1032   :  { %v4361_v10 = vpop.permute.xlu1 %4360 }
0x1033   :  { %v4362_v41 = vunpack.i.l.bf16 %v4361_v10  ;;  %v4363_v21 = vunpack.i.h.bf16 %v4361_v10 }
0x1035   :  { %2366 = vmatpush.msrb.mxu2 %v4362_v41 }
0x1037   :  { %2367 = vmatpush.msrb.mxu2 %v4363_v21 }
0x1038   :  { %2386 = vrot.lane.b32.xlu1 %v5919_v19, %s6828_s1 }
0x103b   :  { %2404 = vrot.lane.b32.xlu0 %v5905_v50, %s4690_s26 }
0x1040   :  { %2716 = vrot.lane.b32.xlu1 %v5905_v50, %s6829_s8 }
0x1043   :  { %2398 = vrot.lane.b32.xlu0 %v5909_v51, %s4690_s26 }
0x1048   :  { %2714 = vrot.lane.b32.xlu1 %v5899_v36, %s6829_s8  ;;  %2308 = vadd.xlane.f32.xlu2 %v2307_v22 }
0x104b   :  { %2388 = vrot.lane.b32.xlu0 %v5924_v60, %s6828_s1 }
0x1050   :  { %2970 = vrot.lane.b32.xlu1 %v5893_v12, %s6830_s3 }
0x1053   :  { %2974 = vrot.lane.b32.xlu0 %v5905_v50, %s6830_s3 }
0x1058   :  { %2968 = vrot.lane.b32.xlu1 %v5909_v51, %s6830_s3 }
0x105b   :  { %2972 = vrot.lane.b32.xlu0 %v5899_v36, %s6830_s3 }
0x1060   :  { %2698 = vrot.lane.b32.xlu1 %v5919_v19, %s6831_s7  ;;  %2400 = vrot.lane.b32.xlu2 %v5893_v12, %s4690_s26 }
0x1063   :  { %2394 = vrot.lane.b32.xlu0 %v5939_v43, %s6828_s1 }
0x1068   :  { %2958 = vrot.lane.b32.xlu1 %v5924_v60, %s6832_s0  ;;  %2396 = vrot.lane.b32.xlu2 %v5897_v27, %s4690_s26 }
0x106b   :  { %2708 = vrot.lane.b32.xlu0 %v5897_v27, %s6829_s8 }
0x1070   :  { %2704 = vrot.lane.b32.xlu1 %v5934_v56, %s6831_s7  ;;  %2390 = vrot.lane.b32.xlu2 %v5929_v44, %s6828_s1 }
0x1073   :  { %2956 = vrot.lane.b32.xlu0 %v5919_v19, %s6832_s0 }
0x1078   :  { %2964 = vrot.lane.b32.xlu1 %v5939_v43, %s6832_s0  ;;  %2392 = vrot.lane.b32.xlu2 %v5934_v56, %s6828_s1 }
0x107a   :  { %v2300_v36 = vpop.xlane.xlu2 %2299 }
0x107b   :  { %2702 = vrot.lane.b32.xlu0 %v5929_v44, %s6831_s7  ;;  %4572 = vrcp.f32 %v2300_v36 }
0x1080   :  { %2712 = vrot.lane.b32.xlu2 %v5893_v12, %s6829_s8 }
0x1081   :  { %v4573_v59 = vpop.eup %4572 }
0x1082   :  { %v2303_v62 = vpop.xlane.xlu0 %2302  ;;  %v4366_v45 = vpop.permute.xlu2 %4365  ;;  %v2318_v11 = vmul.f32 %v4573_v59, %v5986_v14 }
0x1083   :  { %v4367_v0 = vunpack.i.l.bf16 %v4366_v45  ;;  %2962 = vrot.lane.b32.xlu0 %v5934_v56, %s6832_s0  ;;  %4574 = vrcp.f32 %v2303_v62  ;;  %v4368_v19 = vunpack.i.h.bf16 %v4366_v45 }
0x1085   :  { %2368 = vmatpush.msrb.mxu2 %v4367_v0 }
0x1087   :  { %2369 = vmatpush.msrb.mxu2 %v4368_v19 }
0x1088   :  { %2710 = vrot.lane.b32.xlu2 %v5909_v51, %s6829_s8  ;;  %4131 = vmatmul.msk.f32.vlgmr.msrb.gmra.mxu2 %vm599_vm7, %v2318_v11 }
0x1089   :  { %v4575_v12 = vpop.eup %4574  ;;  %4161 = vmatpush.xpose.msk.msra.mxu2 %vm541_vm6, %v6074_v23 }
0x108a   :  { %v2306_v8 = vpop.xlane.xlu1 %2305  ;;  %v2319_v5 = vmul.f32 %v4575_v12, %v5990_v31 }
0x108b   :  { %4576 = vrcp.f32 %v2306_v8 }
0x1090   :  { %2966 = vrot.lane.b32.xlu2 %v5897_v27, %s6830_s3  ;;  %4132 = vmatmul.msk.f32.gmra.mxu2 %vm599_vm7, %v2319_v5  ;;  %v6085_v27 = vld [vmem:[%s6776_s10 + $0x30] sm:$0xff]  ;;  %s6833_s10 = smov 56  }
0x1091   :  { %v4577_v56 = vpop.eup %4576  ;;  %4162 = vmatpush.xpose.msk.msra.mxu2 %vm541_vm6, %v6085_v27 }
0x1092   :  { %v2320_v51 = vmul.f32 %v4577_v56, %v5994_v39 }
0x1095   :  { %4163 = vmatpush.xpose.msk.msra.mxu2 %vm541_vm6, %v6092_v52 }
0x1098   :  { %2700 = vrot.lane.b32.xlu2 %v5924_v60, %s6831_s7  ;;  %4133 = vmatmul.msk.f32.gmra.mxu2 %vm599_vm7, %v2320_v51 }
0x1099   :  { %4164 = vmatpush.xpose.msk.msra.mxu2 %vm541_vm6, %v6101_v6 }
0x109a   :  { %v2312_v18 = vpop.xlane.xlu0 %2311 }
0x10a0   :  { %2960 = vrot.lane.b32.xlu2 %v5929_v44, %s6832_s0 }
0x10a2   :  { %v2403_v60 = vpop.permute.xlu1 %2402 }
0x10a8   :  { %2706 = vrot.lane.b32.xlu2 %v5939_v43, %s6831_s7 }
0x10aa   :  { %v2387_v7 = vpop.permute.xlu1 %2386 }
0x10ad   :  { %v2405_v1 = vpop.permute.xlu0 %2404 }
0x10ae   :  { %4136 = vmatpush.xpose.msk.msra.mxu1 %vm541_vm6, %v2405_v1 }
0x10b2   :  { %4137 = vmatpush.xpose.msk.msra.mxu1 %vm541_vm6, %v2403_v60  ;;  %v2717_v20 = vpop.permute.xlu1 %2716 }
0x10b5   :  { %v2399_v44 = vpop.permute.xlu0 %2398 }
0x10ba   :  { %v2715_v25 = vpop.permute.xlu1 %2714 }
0x10bb   :  { %v2309_v63 = vpop.xlane.xlu2 %2308 }
0x10bc   :  { %4578 = vrcp.f32 %v2309_v63 }
0x10bd   :  { %v2389_v29 = vpop.permute.xlu0 %2388  ;;  %4580 = vrcp.f32 %v2312_v18 }
0x10c2   :  { %v4579_v14 = vpop.eup %4578  ;;  %v2971_v3 = vpop.permute.xlu1 %2970 }
0x10c3   :  { %v2401_v17 = vpop.permute.xlu2 %2400  ;;  %v2321_v30 = vmul.f32 %v4579_v14, %v6019_v28  ;;  %v4581_v34 = vpop.eup %4580 }
0x10c4   :  { %4138 = vmatpush.xpose.msk.msra.mxu1 %vm541_vm6, %v2401_v17  ;;  %v2322_v32 = vmul.f32 %v4581_v34, %v6005_v49 }
0x10c5   :  { %v2975_v43 = vpop.permute.xlu0 %2974  ;;  %4134 = vmatmul.msk.f32.gmra.mxu2 %vm599_vm7, %v2321_v30 }
0x10c6   :  { %4195 = vmatpush.xpose.msk.msrb.mxu2 %vm541_vm6, %v2975_v43 }
0x10c8   :  { %4139 = vmatpush.xpose.msk.msra.mxu1 %vm541_vm6, %v2399_v44 }
0x10ca   :  { %v2969_v42 = vpop.permute.xlu1 %2968 }
0x10cb   :  { %v2397_v31 = vpop.permute.xlu2 %2396 }
0x10cc   :  { %4140 = vmatpush.xpose.msk.msra.mxu1 %vm541_vm6, %v2397_v31 }
0x10cd   :  { %v2973_v16 = vpop.permute.xlu0 %2972  ;;  %4135 = vmatmul.msk.f32.gmra.mxu2 %vm599_vm7, %v2322_v32 }
0x10ce   :  { %4196 = vmatpush.xpose.msk.msrb.mxu2 %vm541_vm6, %v2973_v16 }
0x10cf   :  { %4141 = vmatmul.msk.f32.vlgmr.msra.gmra.mxu1 %vm541_vm6, %v2387_v7 }
0x10d0   :  { %4170 = vmatpush.xpose.msk.msrb.mxu1 %vm541_vm6, %v2717_v20 }
0x10d2   :  { %4197 = vmatpush.xpose.msk.msrb.mxu2 %vm541_vm6, %v2971_v3  ;;  %v2699_v10 = vpop.permute.xlu1 %2698 }
0x10d3   :  { %v2391_v39 = vpop.permute.xlu2 %2390 }
0x10d4   :  { %4171 = vmatpush.xpose.msk.msrb.mxu1 %vm541_vm6, %v2715_v25 }
0x10d5   :  { %v2395_v4 = vpop.permute.xlu0 %2394 }
0x10d6   :  { %4198 = vmatpush.xpose.msk.msrb.mxu2 %vm541_vm6, %v2969_v42 }
0x10d7   :  { %4142 = vmatmul.msk.f32.gmra.mxu1 %vm541_vm6, %v2389_v29 }
0x10da   :  { %v2959_v21 = vpop.permute.xlu1 %2958 }
0x10db   :  { %v2393_v47 = vpop.permute.xlu2 %2392 }
0x10dd   :  { %v2709_v49 = vpop.permute.xlu0 %2708 }
0x10df   :  { %4143 = vmatmul.msk.f32.gmra.mxu1 %vm541_vm6, %v2391_v39 }
0x10e2   :  { %v2705_v22 = vpop.permute.xlu1 %2704 }
0x10e3   :  { %v2713_v58 = vpop.permute.xlu2 %2712 }
0x10e4   :  { %4172 = vmatpush.xpose.msk.msrb.mxu1 %vm541_vm6, %v2713_v58 }
0x10e5   :  { %v2957_v9 = vpop.permute.xlu0 %2956 }
0x10e7   :  { %4144 = vmatmul.msk.f32.gmra.mxu1 %vm541_vm6, %v2393_v47 }
0x10ea   :  { %v2965_v43 = vpop.permute.xlu1 %2964 }
0x10eb   :  { %v2711_v24 = vpop.permute.xlu2 %2710 }
0x10ec   :  { %4173 = vmatpush.xpose.msk.msrb.mxu1 %vm541_vm6, %v2711_v24 }
0x10ed   :  { %v2703_v57 = vpop.permute.xlu0 %2702 }
0x10ef   :  { %4145 = vmatmul.msk.f32.gmra.mxu1 %vm541_vm6, %v2395_v4 }
0x10f0   :  { %4174 = vmatpush.xpose.msk.msrb.mxu1 %vm541_vm6, %v2709_v49 }
0x10f3   :  { %v2967_v53 = vpop.permute.xlu2 %2966 }
0x10f4   :  { %4199 = vmatpush.xpose.msk.msrb.mxu2 %vm541_vm6, %v2967_v53 }
0x10f5   :  { %v2963_v25 = vpop.permute.xlu0 %2962 }
0x10f7   :  { %4175 = vmatmul.msk.f32.vlgmr.msrb.gmra.mxu1 %vm541_vm6, %v2699_v10 }
0x10fb   :  { %v2701_v41 = vpop.permute.xlu2 %2700 }
0x10ff   :  { %4176 = vmatmul.msk.f32.gmra.mxu1 %vm541_vm6, %v2701_v41 }
0x1103   :  { %v2961_v28 = vpop.permute.xlu2 %2960 }
0x1107   :  { %4177 = vmatmul.msk.f32.gmra.mxu1 %vm541_vm6, %v2703_v57 }
0x110b   :  { %v2371_v13 = vpop.f32.mrf.mxu2  ;;  %v2707_v62 = vpop.permute.xlu2 %2706 }
0x110c   :  { %4165 = vmatmul.msk.f32.vlgmr.msra.gmra.mxu2 %vm541_vm6, %v2371_v13 }
0x110f   :  { %4178 = vmatmul.msk.f32.gmra.mxu1 %vm541_vm6, %v2705_v22 }
0x1113   :  { %v2374_v36 = vpop.f32.mrf.mxu2 }
0x1114   :  { %4166 = vmatmul.msk.f32.gmra.mxu2 %vm541_vm6, %v2374_v36 }
0x1117   :  { %4179 = vmatmul.msk.f32.gmra.mxu1 %vm541_vm6, %v2707_v62 }
0x111b   :  { %v2377_v45 = vpop.f32.mrf.mxu2 }
0x111c   :  { %4167 = vmatmul.msk.f32.gmra.mxu2 %vm541_vm6, %v2377_v45 }
0x1148   :  { %v2380_v59 = vpop.f32.mrf.mxu2 }
0x1149   :  { %4168 = vmatmul.msk.f32.gmra.mxu2 %vm541_vm6, %v2380_v59 }
0x114c   :  { %v2443_v0 = vpop.f32.mrf.mxu1 }
0x114d   :  { %v2444_v19 = vadd.f32 %v5946_v54, %v2443_v0 }
0x114f   :  { %v2458_v11 = vsel %vm599_vm7, %v2444_v19, -inf }
0x1150   :  { %2459 = vmax.xlane.f32.xlu0 %v2458_v11  ;;  %v2383_v8 = vpop.f32.mrf.mxu2 }
0x1151   :  { %4169 = vmatmul.msk.f32.gmra.mxu2 %vm541_vm6, %v2383_v8 }
0x1154   :  { %v2446_v12 = vpop.f32.mrf.mxu1 }
0x1155   :  { %v2447_v5 = vadd.f32 %v5953_v48, %v2446_v12 }
0x1157   :  { %v2461_v56 = vsel %vm599_vm7, %v2447_v5, -inf }
0x1158   :  { %2462 = vmax.xlane.f32.xlu2 %v2461_v56 }
0x1159   :  { %4200 = vmatmul.msk.f32.vlgmr.msrb.gmra.mxu2 %vm541_vm6, %v2957_v9 }
0x115c   :  { %v2449_v51 = vpop.f32.mrf.mxu1 }
0x115d   :  { %v2450_v60 = vadd.f32 %v5960_v46, %v2449_v51 }
0x115f   :  { %v2464_v18 = vsel %vm599_vm7, %v2450_v60, -inf }
0x1160   :  { %2465 = vmax.xlane.f32.xlu1 %v2464_v18 }
0x1161   :  { %4201 = vmatmul.msk.f32.gmra.mxu2 %vm541_vm6, %v2959_v21 }
0x1164   :  { %v2452_v7 = vpop.f32.mrf.mxu1 }
0x1165   :  { %v6150_v1 = vadd.f32 %v5967_v55, %v2452_v7 }
0x1167   :  { %v2467_v44 = vsel %vm599_vm7, %v6150_v1, -inf }
0x1168   :  { %2468 = vmax.xlane.f32.xlu0 %v2467_v44 }
0x1169   :  { %4202 = vmatmul.msk.f32.gmra.mxu2 %vm541_vm6, %v2961_v28 }
0x116c   :  { %v2455_v20 = vpop.f32.mrf.mxu1 }
0x116d   :  { %v2456_v63 = vadd.f32 %v5974_v2, %v2455_v20 }
0x116f   :  { %v2470_v29 = vsel %vm612_vm8, %v2456_v63, -inf }
0x1170   :  { %2471 = vmax.xlane.f32.xlu2 %v2470_v29 }
0x1171   :  { %4203 = vmatmul.msk.f32.gmra.mxu2 %vm541_vm6, %v2963_v25 }
0x1174   :  { %v2755_v14 = vpop.f32.mrf.mxu1 }
0x1175   :  { %v2756_v17 = vadd.f32 %v5946_v54, %v2755_v14 }
0x1177   :  { %v2770_v30 = vsel %vm599_vm7, %v2756_v17, -inf }
0x1178   :  { %2771 = vmax.xlane.f32.xlu1 %v2770_v30 }
0x1179   :  { %4204 = vmatmul.msk.f32.gmra.mxu2 %vm541_vm6, %v2965_v43 }
0x117c   :  { %v2758_v34 = vpop.f32.mrf.mxu1 }
0x117d   :  { %v6162_v3 = vadd.f32 %v5953_v48, %v2758_v34 }
0x117f   :  { %v2773_v31 = vsel %vm599_vm7, %v6162_v3, -inf }
0x1180   :  { %2774 = vmax.xlane.f32.xlu0 %v2773_v31 }
0x1184   :  { %v2761_v16 = vpop.f32.mrf.mxu1 }
0x1185   :  { %v6190_v28 = vadd.f32 %v5960_v46, %v2761_v16 }
0x1187   :  { %v2776_v45 = vsel %vm599_vm7, %v6190_v28, -inf }
0x1188   :  { %4370 = vrot.lane.b32.xlu2 %v5982_v38, %s6833_s10 }
0x118c   :  { %v2764_v42 = vpop.f32.mrf.mxu1 }
0x118d   :  { %v6177_v47 = vadd.f32 %v5967_v55, %v2764_v42 }
0x118f   :  { %v6172_v32 = vpop.f32.mrf.mxu2  ;;  %v2779_v49 = vsel %vm599_vm7, %v6177_v47, -inf }
0x1194   :  { %2521 = vrot.lane.b32.xlu0 %v5905_v50, %s6833_s10  ;;  %v2767_v7 = vpop.f32.mrf.mxu1 }
0x1195   :  { %v6206_v29 = vadd.f32 %v5974_v2, %v2767_v7 }
0x1197   :  { %v6174_v39 = vpop.f32.mrf.mxu2 }
0x119c   :  { %4375 = vrot.lane.b32.xlu0 %v6000_v26, %s6833_s10 }
0x119f   :  { %v6179_v4 = vpop.f32.mrf.mxu2 }
0x11c3   :  { %v2460_v58 = vpop.xlane.xlu0 %2459 }
0x11c4   :  { %v2473_v24 = vsub.f32 %v2444_v19, %v2460_v58 }
0x11c6   :  { %v2478_v53 = vmul.f32 1.442695, %v2473_v24  ;;  %2780 = vmax.xlane.f32.xlu0 %v2779_v49 }
0x11c8   :  { %4582 = vpow2.f32 %v2478_v53 }
0x11cb   :  { %v2463_v10 = vpop.xlane.xlu2 %2462 }
0x11cc   :  { %v6183_v9 = vpop.f32.mrf.mxu2  ;;  %v2474_v21 = vsub.f32 %v2447_v5, %v2463_v10 }
0x11ce   :  { %v6185_v41 = vpop.eup %4582  ;;  %v2480_v13 = vmul.f32 1.442695, %v2474_v21 }
0x11cf   :  { %v2488_v57 = vsel %vm599_vm7, %v6185_v41, 0.0 }
0x11d0   :  { %2489 = vadd.xlane.f32.xlu1 %v2488_v57  ;;  %4584 = vpow2.f32 %v2480_v13 }
0x11d3   :  { %v2466_v22 = vpop.xlane.xlu1 %2465 }
0x11d4   :  { %v2475_v36 = vsub.f32 %v2450_v60, %v2466_v22  ;;  %v6192_v62 = vpop.f32.mrf.mxu2 }
0x11d6   :  { %v2482_v59 = vmul.f32 1.442695, %v2475_v36  ;;  %v6196_v0 = vpop.eup %4584 }
0x11d7   :  { %v2491_v19 = vsel %vm599_vm7, %v6196_v0, 0.0 }
0x11d8   :  { %2777 = vmax.xlane.f32.xlu1 %v2776_v45  ;;  %4586 = vpow2.f32 %v2482_v59 }
0x11db   :  { %v2469_v8 = vpop.xlane.xlu0 %2468 }
0x11dc   :  { %v3013_v11 = vpop.f32.mrf.mxu2  ;;  %v2476_v51 = vsub.f32 %v6150_v1, %v2469_v8  ;;  %v2782_v1 = vsel %vm612_vm8, %v6206_v29, -inf }
0x11dd   :  { %v6223_v58 = vadd.f32 %v5946_v54, %v3013_v11 }
0x11de   :  { %v6200_v5 = vpop.eup %4586  ;;  %v2484_v44 = vmul.f32 1.442695, %v2476_v51 }
0x11df   :  { %v2494_v18 = vsel %vm599_vm7, %v6200_v5, 0.0  ;;  %v3028_v21 = vsel %vm599_vm7, %v6223_v58, -inf }
0x11e0   :  { %2492 = vadd.xlane.f32.xlu1 %v2491_v19 }
0x11e3   :  { %v2472_v12 = vpop.xlane.xlu2 %2471 }
0x11e4   :  { %v2477_v56 = vsub.f32 %v2456_v63, %v2472_v12  ;;  %v3016_v20 = vpop.f32.mrf.mxu2 }
0x11e5   :  { %v6226_v24 = vadd.f32 %v5953_v48, %v3016_v20 }
0x11e6   :  { %v2486_v60 = vmul.f32 1.442695, %v2477_v56 }
0x11e7   :  { %v3031_v10 = vsel %vm599_vm7, %v6226_v24, -inf }
0x11e8   :  { %4588 = vpow2.f32 %v2486_v60  ;;  %2495 = vadd.xlane.f32.xlu1 %v2494_v18 }
0x11e9   :  { %4590 = vpow2.f32 %v2484_v44 }
0x11eb   :  { %v2772_v25 = vpop.xlane.xlu1 %2771  ;;  %v4371_v54 = vpop.permute.xlu2 %4370 }
0x11ec   :  { %v2785_v14 = vsub.f32 %v2756_v17, %v2772_v25  ;;  %v3019_v31 = vpop.f32.mrf.mxu2  ;;  %v4372_v22 = vunpack.i.l.bf16 %v4371_v54 }
0x11ed   :  { %v6233_v57 = vadd.f32 %v5960_v46, %v3019_v31  ;;  %v4373_v46 = vunpack.i.h.bf16 %v4371_v54 }
0x11ee   :  { %v6208_v30 = vpop.eup %4588  ;;  %v2790_v63 = vmul.f32 1.442695, %v2785_v14 }
0x11ef   :  { %v2500_v43 = vsel %vm612_vm8, %v6208_v30, 0.0  ;;  %v6214_v34 = vpop.eup %4590  ;;  %v3034_v45 = vsel %vm599_vm7, %v6233_v57, -inf }
0x11f0   :  { %4592 = vpow2.f32 %v2790_v63  ;;  %2783 = vmax.xlane.f32.xlu1 %v2782_v1  ;;  %2501 = vadd.xlane.f32.xlu0 %v2500_v43  ;;  %v2497_v42 = vsel %vm599_vm7, %v6214_v34, 0.0 }
0x11f3   :  { %v2775_v49 = vpop.xlane.xlu0 %2774 }
0x11f4   :  { %v3022_v53 = vpop.f32.mrf.mxu2 }
0x11f5   :  { %v6236_v13 = vadd.f32 %v5967_v55, %v3022_v53 }
0x11f6   :  { %v6216_v16 = vpop.eup %4592 }
0x11f7   :  { %v2800_v17 = vsel %vm599_vm7, %v6216_v16, 0.0  ;;  %v3037_v36 = vsel %vm599_vm7, %v6236_v13, -inf }
0x11f8   :  { %2801 = vadd.xlane.f32.xlu2 %v2800_v17  ;;  %2498 = vadd.xlane.f32.xlu1 %v2497_v42 }
0x11fc   :  { %v3025_v59 = vpop.f32.mrf.mxu2 }
0x11fd   :  { %v6246_v55 = vadd.f32 %v5974_v2, %v3025_v59  ;;  %v2786_v2 = vsub.f32 %v6162_v3, %v2775_v49 }
0x11ff   :  { %v3040_v8 = vsel %vm612_vm8, %v6246_v55, -inf  ;;  %v2792_v51 = vmul.f32 1.442695, %v2786_v2 }
0x1200   :  { %3032 = vmax.xlane.f32.xlu1 %v3031_v10  ;;  %3029 = vmax.xlane.f32.xlu2 %v3028_v21 }
0x1204   :  { %4380 = vrot.lane.b32.xlu0 %v5982_v38, %s6834_s30 }
0x1206   :  { %v2522_v48 = vpop.permute.xlu0 %2521 }
0x1207   :  { %4146 = vmatpush.msk.msrb.mxu0 %vm685_vm9, %v2522_v48 }
0x1208   :  { %3038 = vmax.xlane.f32.xlu1 %v3037_v36  ;;  %3035 = vmax.xlane.f32.xlu2 %v3034_v45 }
0x1209   :  { %2556 = vmatpush.msrb.mxu0 %v4372_v22 }
0x120b   :  { %2557 = vmatpush.msrb.mxu0 %v4373_v46 }
0x120e   :  { %v4376_v19 = vpop.permute.xlu0 %4375 }
0x120f   :  { %v4377_v11 = vunpack.i.l.bf16 %v4376_v19  ;;  %v4378_v12 = vunpack.i.h.bf16 %v4376_v19 }
0x1210   :  { %3041 = vmax.xlane.f32.xlu1 %v3040_v8 }
0x1211   :  { %2558 = vmatpush.msrb.mxu0 %v4377_v11 }
0x1213   :  { %2559 = vmatpush.msrb.mxu0 %v4378_v12 }
0x1220   :  { %4385 = vrot.lane.b32.xlu2 %v6000_v26, %s6834_s30 }
0x1228   :  { %3091 = vrot.lane.b32.xlu2 %v5905_v50, %s6835_s2 }
0x1229   :  { %2833 = vrot.lane.b32.xlu1 %v5905_v50, %s6834_s30 }
0x1230   :  { %4390 = vrot.lane.b32.xlu2 %v5982_v38, %s6835_s2 }
0x1238   :  { %4395 = vrot.lane.b32.xlu2 %v6000_v26, %s6835_s2 }
0x1239   :  { %v2781_v31 = vpop.xlane.xlu0 %2780 }
0x123a   :  { %v2788_v36 = vsub.f32 %v6177_v47, %v2781_v31 }
0x123c   :  { %v2796_v59 = vmul.f32 1.442695, %v2788_v36 }
0x1243   :  { %v2490_v56 = vpop.xlane.xlu1 %2489 }
0x1244   :  { %4594 = vrcp.f32 %v2490_v56 }
0x1245   :  { %4596 = vpow2.f32 %v2792_v51 }
0x124a   :  { %v4595_v60 = vpop.eup %4594 }
0x124b   :  { %v2508_v18 = vmul.f32 %v4595_v60, %v6185_v41  ;;  %v2778_v7 = vpop.xlane.xlu1 %2777  ;;  %v6263_v44 = vpop.eup %4596 }
0x124c   :  { %v2787_v50 = vsub.f32 %v6190_v28, %v2778_v7  ;;  %v2803_v38 = vsel %vm599_vm7, %v6263_v44, 0.0 }
0x124d   :  { %4147 = vmatmul.msk.f32.vlgmr.msrb.gmra.mxu0 %vm599_vm7, %v2508_v18 }
0x124e   :  { %v2794_v26 = vmul.f32 1.442695, %v2787_v50 }
0x1253   :  { %v2493_v20 = vpop.xlane.xlu1 %2492  ;;  %2804 = vadd.xlane.f32.xlu1 %v2803_v38 }
0x1254   :  { %4598 = vrcp.f32 %v2493_v20 }
0x1255   :  { %4600 = vpow2.f32 %v2794_v26 }
0x125a   :  { %v4599_v3 = vpop.eup %4598 }
0x125b   :  { %v2496_v25 = vpop.xlane.xlu1 %2495  ;;  %v2509_v14 = vmul.f32 %v4599_v3, %v6196_v0  ;;  %v6269_v41 = vpop.eup %4600 }
0x125c   :  { %4602 = vrcp.f32 %v2496_v25  ;;  %v2806_v28 = vsel %vm599_vm7, %v6269_v41, 0.0 }
0x125d   :  { %4148 = vmatmul.msk.f32.gmra.mxu0 %vm599_vm7, %v2509_v14 }
0x1261   :  { %2807 = vadd.xlane.f32.xlu2 %v2806_v28 }
0x1262   :  { %v4603_v63 = vpop.eup %4602 }
0x1263   :  { %v2784_v1 = vpop.xlane.xlu1 %2783  ;;  %v2510_v43 = vmul.f32 %v4603_v63, %v6200_v5  ;;  %v2502_v0 = vpop.xlane.xlu0 %2501 }
0x1264   :  { %v2789_v11 = vsub.f32 %v6206_v29, %v2784_v1 }
0x1265   :  { %4149 = vmatmul.msk.f32.gmra.mxu0 %vm599_vm7, %v2510_v43 }
0x126b   :  { %v2499_v17 = vpop.xlane.xlu1 %2498  ;;  %v6276_v42 = vpop.xlane.xlu2 %2801 }
0x126c   :  { %4604 = vrcp.f32 %v2499_v17 }
0x126d   :  { %4606 = vrcp.f32 %v2502_v0 }
0x1272   :  { %v4605_v49 = vpop.eup %4604 }
0x1273   :  { %v3033_v53 = vpop.xlane.xlu1 %3032  ;;  %v3030_v10 = vpop.xlane.xlu2 %3029  ;;  %v2511_v21 = vmul.f32 %v4605_v49, %v6214_v34 }
0x1274   :  { %v3044_v54 = vsub.f32 %v6226_v24, %v3033_v53  ;;  %v3043_v48 = vsub.f32 %v6223_v58, %v3030_v10  ;;  %v4607_v45 = vpop.eup %4606 }
0x1275   :  { %4150 = vmatmul.msk.f32.gmra.mxu0 %vm599_vm7, %v2511_v21  ;;  %v2512_v34 = vmul.f32 %v4607_v45, %v6208_v30 }
0x1276   :  { %v3050_v5 = vmul.f32 1.442695, %v3044_v54  ;;  %v3048_v22 = vmul.f32 1.442695, %v3043_v48  ;;  %v4381_v31 = vpop.permute.xlu0 %4380 }
0x1277   :  { %v4382_v49 = vunpack.i.l.bf16 %v4381_v31  ;;  %v4383_v10 = vunpack.i.h.bf16 %v4381_v31 }
0x1278   :  { %4608 = vpow2.f32 %v3050_v5 }
0x1279   :  { %4610 = vpow2.f32 %v3048_v22  ;;  %2582 = vrot.lane.b32.xlu2 %v6092_v52, %s6828_s1 }
0x127a   :  { %4612 = vpow2.f32 %v2796_v59 }
0x127b   :  { %v3039_v46 = vpop.xlane.xlu1 %3038  ;;  %v3036_v19 = vpop.xlane.xlu2 %3035 }
0x127c   :  { %v3045_v24 = vsub.f32 %v6233_v57, %v3036_v19  ;;  %v3046_v12 = vsub.f32 %v6236_v13, %v3039_v46  ;;  %v2798_v57 = vmul.f32 1.442695, %v2789_v11 }
0x127d   :  { %4151 = vmatmul.msk.f32.gmra.mxu0 %vm599_vm7, %v2512_v34 }
0x127e   :  { %v6288_v58 = vpop.eup %4608  ;;  %v3052_v47 = vmul.f32 1.442695, %v3045_v24  ;;  %v3054_v29 = vmul.f32 1.442695, %v3046_v12 }
0x127f   :  { %v6291_v8 = vpop.eup %4610  ;;  %v3061_v2 = vsel %vm599_vm7, %v6288_v58, 0.0 }
0x1280   :  { %3062 = vadd.xlane.f32.xlu1 %v3061_v2  ;;  %v3058_v30 = vsel %vm599_vm7, %v6291_v8, 0.0  ;;  %4614 = vpow2.f32 %v3052_v47  ;;  %v6300_v60 = vpop.eup %4612 }
0x1281   :  { %3059 = vadd.xlane.f32.xlu0 %v3058_v30  ;;  %2892 = vrot.lane.b32.xlu2 %v6085_v27, %s6831_s7  ;;  %4616 = vpow2.f32 %v2798_v57  ;;  %v2809_v7 = vsel %vm599_vm7, %v6300_v60, 0.0 }
0x1282   :  { %4618 = vpow2.f32 %v3054_v29 }
0x1283   :  { %v4386_v56 = vpop.permute.xlu2 %4385  ;;  %v3042_v51 = vpop.xlane.xlu1 %3041 }
0x1284   :  { %v3047_v18 = vsub.f32 %v6246_v55, %v3042_v51  ;;  %v4387_v48 = vunpack.i.l.bf16 %v4386_v56  ;;  %v4388_v5 = vunpack.i.h.bf16 %v4386_v56 }
0x1286   :  { %v6302_v13 = vpop.eup %4614  ;;  %v3056_v38 = vmul.f32 1.442695, %v3047_v18 }
0x1287   :  { %v3064_v50 = vsel %vm599_vm7, %v6302_v13, 0.0  ;;  %v6311_v20 = vpop.eup %4616 }
0x1288   :  { %3065 = vadd.xlane.f32.xlu1 %v3064_v50  ;;  %v6314_v3 = vpop.eup %4618  ;;  %4620 = vpow2.f32 %v3056_v38  ;;  %v2812_v55 = vsel %vm612_vm8, %v6311_v20, 0.0 }
0x1289   :  { %2810 = vadd.xlane.f32.xlu0 %v2809_v7  ;;  %2888 = vrot.lane.b32.xlu2 %v6101_v6, %s6831_s7  ;;  %v3067_v25 = vsel %vm599_vm7, %v6314_v3, 0.0  ;;  %4622 = vrcp.f32 %v6276_v42 }
0x128b   :  { %v3092_v26 = vpop.permute.xlu2 %3091 }
0x128c   :  { %4205 = vmatpush.msk.msra.mxu1 %vm685_vm9, %v3092_v26 }
0x128e   :  { %v6322_v63 = vpop.eup %4620 }
0x128f   :  { %v3070_v43 = vsel %vm612_vm8, %v6322_v63, 0.0  ;;  %v4623_v54 = vpop.eup %4622 }
0x1290   :  { %3068 = vadd.xlane.f32.xlu1 %v3067_v25  ;;  %v2820_v22 = vmul.f32 %v4623_v54, %v6216_v16 }
0x1291   :  { %2813 = vadd.xlane.f32.xlu0 %v2812_v55  ;;  %3146 = vrot.lane.b32.xlu2 %v6101_v6, %s6832_s0 }
0x1293   :  { %v4391_v14 = vpop.permute.xlu2 %4390 }
0x1294   :  { %v4392_v28 = vunpack.i.l.bf16 %v4391_v14  ;;  %v4393_v1 = vunpack.i.h.bf16 %v4391_v14 }
0x1296   :  { %3126 = vmatpush.msra.mxu1 %v4392_v28 }
0x1298   :  { %3127 = vmatpush.msra.mxu1 %v4393_v1 }
0x1299   :  { %3071 = vadd.xlane.f32.xlu0 %v3070_v43 }
0x129b   :  { %v2834_v17 = vpop.permute.xlu1 %2833  ;;  %v4396_v0 = vpop.permute.xlu2 %4395 }
0x129c   :  { %v4397_v53 = vunpack.i.l.bf16 %v4396_v0  ;;  %4180 = vmatpush.msk.msra.mxu0 %vm685_vm9, %v2834_v17  ;;  %v4398_v21 = vunpack.i.h.bf16 %v4396_v0 }
0x129e   :  { %2868 = vmatpush.msra.mxu0 %v4382_v49  ;;  %3128 = vmatpush.msra.mxu1 %v4397_v53 }
0x12a0   :  { %2869 = vmatpush.msra.mxu0 %v4383_v10  ;;  %3129 = vmatpush.msra.mxu1 %v4398_v21 }
0x12a2   :  { %2870 = vmatpush.msra.mxu0 %v4387_v48 }
0x12a4   :  { %2871 = vmatpush.msra.mxu0 %v4388_v5 }
0x12a5   :  { %4181 = vmatmul.msk.f32.vlgmr.msra.gmra.mxu0 %vm599_vm7, %v2820_v22 }
0x12a9   :  { %2586 = vrot.lane.b32.xlu1 %v6074_v23, %s6828_s1 }
0x12ad   :  { %2584 = vrot.lane.b32.xlu0 %v6085_v27, %s6828_s1 }
0x12b1   :  { %2894 = vrot.lane.b32.xlu1 %v6074_v23, %s6831_s7 }
0x12b5   :  { %2580 = vrot.lane.b32.xlu0 %v6101_v6, %s6828_s1 }
0x12b9   :  { %3152 = vrot.lane.b32.xlu1 %v6074_v23, %s6832_s0 }
0x12bd   :  { %2890 = vrot.lane.b32.xlu0 %v6092_v52, %s6831_s7 }
0x12c1   :  { %3148 = vrot.lane.b32.xlu1 %v6092_v52, %s6832_s0 }
0x12c5   :  { %3150 = vrot.lane.b32.xlu0 %v6085_v27, %s6832_s0 }
0x12c6   :  { %v2805_v16 = vpop.xlane.xlu1 %2804 }
0x12c7   :  { %4624 = vrcp.f32 %v2805_v16 }
0x12ca   :  { %v2561_v50 = vpop.f32.mrf.mxu0 }
0x12cd   :  { %v4625_v42 = vpop.eup %4624 }
0x12ce   :  { %v2821_v36 = vmul.f32 %v4625_v42, %v6263_v44 }
0x12d0   :  { %4182 = vmatmul.msk.f32.gmra.mxu0 %vm599_vm7, %v2821_v36 }
0x12d4   :  { %v2808_v6 = vpop.xlane.xlu2 %2807 }
0x12d5   :  { %4626 = vrcp.f32 %v2808_v6 }
0x12db   :  { %v4627_v45 = vpop.eup %4626 }
0x12dc   :  { %v2822_v23 = vmul.f32 %v4627_v45, %v6269_v41  ;;  %v2583_v7 = vpop.permute.xlu2 %2582 }
0x12de   :  { %4183 = vmatmul.msk.f32.gmra.mxu0 %vm599_vm7, %v2822_v23 }
0x12f3   :  { %v3063_v59 = vpop.xlane.xlu1 %3062 }
0x12f4   :  { %v3060_v46 = vpop.xlane.xlu0 %3059 }
0x12f5   :  { %4628 = vrcp.f32 %v3060_v46 }
0x12f6   :  { %4630 = vrcp.f32 %v3063_v59 }
0x12fb   :  { %v4629_v52 = vpop.eup %4628  ;;  %v3066_v34 = vpop.xlane.xlu1 %3065 }
0x12fc   :  { %v3078_v27 = vmul.f32 %v4629_v52, %v6291_v8  ;;  %v2811_v19 = vpop.xlane.xlu0 %2810  ;;  %v4631_v44 = vpop.eup %4630 }
0x12fd   :  { %4632 = vrcp.f32 %v2811_v19  ;;  %v3079_v47 = vmul.f32 %v4631_v44, %v6288_v58  ;;  %v4412_v44 = vld [vmem:[%s6777_s11 + $0x1] ss:$0 sm:$0xff] }
0x12fe   :  { %4206 = vmatmul.msk.f32.vlgmr.msra.gmra.mxu1 %vm599_vm7, %v3078_v27  ;;  %4634 = vrcp.f32 %v3066_v34 }
0x1303   :  { %v4633_v24 = vpop.eup %4632  ;;  %v3069_v12 = vpop.xlane.xlu1 %3068 }
0x1304   :  { %v2814_v11 = vpop.xlane.xlu0 %2813  ;;  %v2823_v41 = vmul.f32 %v4633_v24, %v6300_v60  ;;  %v4635_v8 = vpop.eup %4634 }
0x1305   :  { %4636 = vrcp.f32 %v2814_v11  ;;  %v3080_v57 = vmul.f32 %v4635_v8, %v6302_v13 }
0x1306   :  { %4184 = vmatmul.msk.f32.gmra.mxu0 %vm599_vm7, %v2823_v41  ;;  %4207 = vmatmul.msk.f32.gmra.mxu1 %vm599_vm7, %v3079_v47  ;;  %4638 = vrcp.f32 %v3069_v12 }
0x130b   :  { %v4637_v2 = vpop.eup %4636 }
0x130c   :  { %v2824_v30 = vmul.f32 %v4637_v2, %v6311_v20  ;;  %v3072_v29 = vpop.xlane.xlu0 %3071  ;;  %v4639_v56 = vpop.eup %4638 }
0x130d   :  { %4640 = vrcp.f32 %v3072_v29  ;;  %v3081_v58 = vmul.f32 %v4639_v56, %v6314_v3  ;;  %v2893_v20 = vpop.permute.xlu2 %2892  ;;  %v2564_v3 = vpop.f32.mrf.mxu0 }
0x130e   :  { %4185 = vmatmul.msk.f32.gmra.mxu0 %vm599_vm7, %v2824_v30  ;;  %4208 = vmatmul.msk.f32.gmra.mxu1 %vm599_vm7, %v3080_v57 }
0x1313   :  { %v4641_v51 = vpop.eup %4640 }
0x1314   :  { %v3082_v18 = vmul.f32 %v4641_v51, %v6322_v63 }
0x1315   :  { %v2889_v25 = vpop.permute.xlu2 %2888  ;;  %v2567_v14 = vpop.f32.mrf.mxu0 }
0x1316   :  { %4209 = vmatmul.msk.f32.gmra.mxu1 %vm599_vm7, %v3081_v58 }
0x131b   :  { %v2587_v60 = vpop.permute.xlu1 %2586 }
0x131c   :  { %4152 = vmatpush.xpose.msk.msra.mxu3 %vm541_vm6, %v2587_v60 }
0x131d   :  { %v2570_v28 = vpop.f32.mrf.mxu0  ;;  %v3147_v17 = vpop.permute.xlu2 %3146 }
0x131e   :  { %4210 = vmatmul.msk.f32.gmra.mxu1 %vm599_vm7, %v3082_v18 }
0x131f   :  { %v2585_v13 = vpop.permute.xlu0 %2584 }
0x1320   :  { %4153 = vmatpush.xpose.msk.msra.mxu3 %vm541_vm6, %v2585_v13 }
0x1323   :  { %v2895_v26 = vpop.permute.xlu1 %2894 }
0x1324   :  { %4154 = vmatpush.xpose.msk.msra.mxu3 %vm541_vm6, %v2583_v7 }
0x1325   :  { %v2573_v43 = vpop.f32.mrf.mxu0 }
0x1327   :  { %v2581_v38 = vpop.permute.xlu0 %2580 }
0x1328   :  { %4155 = vmatpush.xpose.msk.msra.mxu3 %vm541_vm6, %v2581_v38 }
0x132b   :  { %4156 = vmatmul.msk.f32.vlgmr.msra.gmra.mxu3 %vm541_vm6, %v2561_v50  ;;  %v3153_v63 = vpop.permute.xlu1 %3152 }
0x132c   :  { %4186 = vmatpush.xpose.msk.msrb.mxu3 %vm541_vm6, %v2895_v26  ;;  %4211 = vmatpush.xpose.msk.msrb.mxu0 %vm541_vm6, %v3153_v63 }
0x132d   :  { %v2873_v0 = vpop.f32.mrf.mxu0 }
0x132f   :  { %v2891_v55 = vpop.permute.xlu0 %2890 }
0x1330   :  { %4187 = vmatpush.xpose.msk.msrb.mxu3 %vm541_vm6, %v2893_v20 }
0x1333   :  { %4157 = vmatmul.msk.f32.gmra.mxu3 %vm541_vm6, %v2564_v3  ;;  %v3149_v31 = vpop.permute.xlu1 %3148 }
0x1334   :  { %4188 = vmatpush.xpose.msk.msrb.mxu3 %vm541_vm6, %v2891_v55 }
0x1337   :  { %v3151_v1 = vpop.permute.xlu0 %3150 }
0x1338   :  { %4189 = vmatpush.xpose.msk.msrb.mxu3 %vm541_vm6, %v2889_v25  ;;  %4212 = vmatpush.xpose.msk.msrb.mxu0 %vm541_vm6, %v3151_v1 }
0x133b   :  { %4158 = vmatmul.msk.f32.gmra.mxu3 %vm541_vm6, %v2567_v14 }
0x133c   :  { %4213 = vmatpush.xpose.msk.msrb.mxu0 %vm541_vm6, %v3149_v31 }
0x1340   :  { %4214 = vmatpush.xpose.msk.msrb.mxu0 %vm541_vm6, %v3147_v17 }
0x1343   :  { %4159 = vmatmul.msk.f32.gmra.mxu3 %vm541_vm6, %v2570_v28 }
0x134b   :  { %4160 = vmatmul.msk.f32.gmra.mxu3 %vm541_vm6, %v2573_v43 }
0x134d   :  { %v2876_v49 = vpop.f32.mrf.mxu0 }
0x1353   :  { %4190 = vmatmul.msk.f32.vlgmr.msrb.gmra.mxu3 %vm541_vm6, %v2873_v0 }
0x135b   :  { %4191 = vmatmul.msk.f32.gmra.mxu3 %vm541_vm6, %v2876_v49  ;;  %v2879_v53 = vpop.f32.mrf.mxu0  ;;  %v4237_v49 = vld [vmem:[%s6780_s14 + $0xf0] sm:$0xff] }
0x1363   :  { %4192 = vmatmul.msk.f32.gmra.mxu3 %vm541_vm6, %v2879_v53 }
0x137b   :  { %v3131_v10 = vpop.f32.mrf.mxu1 }
0x137c   :  { %4215 = vmatmul.msk.f32.vlgmr.msrb.gmra.mxu0 %vm541_vm6, %v3131_v10 }
0x1383   :  { %v2882_v21 = vpop.f32.mrf.mxu0  ;;  %v3134_v54 = vpop.f32.mrf.mxu1 }
0x1384   :  { %4193 = vmatmul.msk.f32.gmra.mxu3 %vm541_vm6, %v2882_v21  ;;  %4216 = vmatmul.msk.f32.gmra.mxu0 %vm541_vm6, %v3134_v54  ;;  %v4236_v21 = vld [vmem:[%s6780_s14 + $0xe8] sm:$0xff] }
0x138b   :  { %v2885_v48 = vpop.f32.mrf.mxu0  ;;  %v3137_v5 = vpop.f32.mrf.mxu1 }
0x138c   :  { %4194 = vmatmul.msk.f32.gmra.mxu3 %vm541_vm6, %v2885_v48  ;;  %4217 = vmatmul.msk.f32.gmra.mxu0 %vm541_vm6, %v3137_v5 }
0x1393   :  { %v3140_v22 = vpop.f32.mrf.mxu1 }
0x1394   :  { %4218 = vmatmul.msk.f32.gmra.mxu0 %vm541_vm6, %v3140_v22  ;;  %v4235_v22 = vld [vmem:[%s6780_s14 + $0xe0] sm:$0xff] }
0x139b   :  { %v3143_v16 = vpop.f32.mrf.mxu1 }
0x139c   :  { %4219 = vmatmul.msk.f32.gmra.mxu0 %vm541_vm6, %v3143_v16 }
0x13ae   :  { %v2628_v42 = vpop.f32.mrf.mxu3 }
0x13af   :  { %v2684_v46 = vadd.f32 %v6172_v32, %v2628_v42 }
0x13b6   :  { %v2631_v36 = vpop.f32.mrf.mxu3 }
0x13b7   :  { %v2687_v11 = vadd.f32 %v6174_v39, %v2631_v36  ;;  %v4234_v36 = vld [vmem:[%s6780_s14 + $0xd8] sm:$0xff] }
0x13be   :  { %v2634_v6 = vpop.f32.mrf.mxu3 }
0x13bf   :  { %v2690_v57 = vadd.f32 %v6179_v4, %v2634_v6 }
0x13c6   :  { %v2637_v45 = vpop.f32.mrf.mxu3 }
0x13c7   :  { %v2693_v18 = vadd.f32 %v6183_v9, %v2637_v45 }
0x13ce   :  { %v2640_v23 = vpop.f32.mrf.mxu3 }
0x13cf   :  { %v2696_v20 = vadd.f32 %v6192_v62, %v2640_v23 }
0x13d6   :  { %v2936_v59 = vpop.f32.mrf.mxu3 }
0x13d7   :  { %v2951_v52 = vadd.f32 %v2936_v59, %v2684_v46  ;;  %v4233_v59 = vld [vmem:[%s6780_s14 + $0xd0] sm:$0xff] }
0x13de   :  { %v2939_v27 = vpop.f32.mrf.mxu3 }
0x13df   :  { %v2952_v47 = vadd.f32 %v2939_v27, %v2687_v11  ;;  %v4232_v27 = vld [vmem:[%s6780_s14 + $0xc8] sm:$0xff] }
0x13e6   :  { %v2942_v2 = vpop.f32.mrf.mxu3 }
0x13e7   :  { %v2953_v56 = vadd.f32 %v2942_v2, %v2690_v57  ;;  %v4228_v2 = vld [vmem:[%s6780_s14 + $0xa8] sm:$0xff]  ;;  %v4226_v57 = vld [vmem:[%s6780_s14 + $0x98] sm:$0xff] }
0x13f9   :  { %v3194_v19 = vpop.f32.mrf.mxu0 }
0x13fa   :  { %v3209_v34 = vadd.f32 %v3194_v19, %v2951_v52 }
0x13fc   :  { %v3214_v24 = vadd.f32 %v3209_v34, %v5748_v15 }
0x13fe   :  { %v6397_v41 = vadd.f32 %v4412_v44, %v3214_v24  ;;  %v4231_v24 = vld [vmem:[%s6780_s14 + $0xc0] sm:$0xff] }
0x1400   :  { %v3233_v12 = vsel %vm155_vm1, %v6397_v41, 0.0 }
0x1401   :  { %3234 = vadd.xlane.f32.xlu0 %v3233_v12  ;;  %v3197_v32 = vpop.f32.mrf.mxu0  ;;  %v4230_v12 = vld [vmem:[%s6780_s14 + $0xb8] sm:$0xff] }
0x1402   :  { %v3210_v8 = vadd.f32 %v3197_v32, %v2952_v47 }
0x1404   :  { %v3215_v30 = vadd.f32 %v3210_v8, %v5753_v37  ;;  %v4229_v8 = vld [vmem:[%s6780_s14 + $0xb0] sm:$0xff] }
0x1406   :  { %v6403_v29 = vadd.f32 %v4412_v44, %v3215_v30  ;;  %v4227_v30 = vld [vmem:[%s6780_s14 + $0xa0] sm:$0xff] }
0x1407   :  { %v2945_v51 = vpop.f32.mrf.mxu3 }
0x1408   :  { %v3236_v15 = vsel %vm155_vm1, %v6403_v29, 0.0  ;;  %v2954_v7 = vadd.f32 %v2945_v51, %v2693_v18 }
0x1409   :  { %3237 = vadd.xlane.f32.xlu1 %v3236_v15  ;;  %v3200_v39 = vpop.f32.mrf.mxu0  ;;  %v4224_v15 = vld [vmem:[%s6780_s14 + $0x88] sm:$0xff] }
0x140a   :  { %v3211_v58 = vadd.f32 %v3200_v39, %v2953_v56  ;;  %v4225_v56 = vld [vmem:[%s6780_s14 + $0x90] sm:$0xff]  ;;  %v4223_v39 = vld [vmem:[%s6780_s14 + $0x80] sm:$0xff] }
0x140c   :  { %v3216_v60 = vadd.f32 %v3211_v58, %v5758_v40 }
0x140e   :  { %v6409_v13 = vadd.f32 %v4412_v44, %v3216_v60 }
0x140f   :  { %v2948_v26 = vpop.f32.mrf.mxu3 }
0x1410   :  { %v3239_v37 = vsel %vm155_vm1, %v6409_v13, 0.0  ;;  %v2955_v55 = vadd.f32 %v2948_v26, %v2696_v20 }
0x1411   :  { %3240 = vadd.xlane.f32.xlu2 %v3239_v37  ;;  %v3203_v4 = vpop.f32.mrf.mxu0 }
0x1412   :  { %v3212_v50 = vadd.f32 %v3203_v4, %v2954_v7 }
0x1414   :  { %v3217_v38 = vadd.f32 %v3212_v50, %v5763_v33 }
0x1416   :  { %v6415_v3 = vadd.f32 %v4412_v44, %v3217_v38 }
0x1418   :  { %v3242_v40 = vsel %vm155_vm1, %v6415_v3, 0.0 }
0x1419   :  { %3243 = vadd.xlane.f32.xlu0 %v3242_v40  ;;  %v3206_v9 = vpop.f32.mrf.mxu0 }
0x141a   :  { %v3213_v25 = vadd.f32 %v3206_v9, %v2955_v55 }
0x141c   :  { %v3218_v14 = vadd.f32 %v3213_v25, %v5768_v61  ;;  %v4238_v61 = vld [vmem:[%s6780_s14 + $0xf8] sm:$0xff] }
0x141d   :  { %4240 = vmatpush.xpose.msk.msra.mxu3 %vm155_vm1, %v4238_v61 }
0x141e   :  { %v6420_v28 = vadd.f32 %v4412_v44, %v3218_v14 }
0x1420   :  { %v3245_v63 = vsel %vm168_vm2, %v6420_v28, 0.0 }
0x1421   :  { %3246 = vadd.xlane.f32.xlu1 %v3245_v63  ;;  %4241 = vmatpush.xpose.msk.msra.mxu3 %vm155_vm1, %v4237_v49 }
0x1425   :  { %4242 = vmatpush.xpose.msk.msra.mxu3 %vm155_vm1, %v4236_v21 }
0x1429   :  { %4243 = vmatpush.xpose.msk.msra.mxu3 %vm155_vm1, %v4235_v22 }
0x142d   :  { %4244 = vmatpush.xpose.msk.msra.mxu3 %vm155_vm1, %v4234_v36 }
0x1431   :  { %4245 = vmatpush.xpose.msk.msra.mxu3 %vm155_vm1, %v4233_v59 }
0x1435   :  { %4246 = vmatpush.xpose.msk.msra.mxu3 %vm155_vm1, %v4232_v27 }
0x1439   :  { %4247 = vmatpush.xpose.msk.msra.mxu3 %vm155_vm1, %v4231_v24 }
0x143d   :  { %4248 = vmatpush.xpose.msk.msra.mxu3 %vm155_vm1, %v4230_v12 }
0x1441   :  { %4249 = vmatpush.xpose.msk.msra.mxu3 %vm155_vm1, %v4229_v8 }
0x1445   :  { %4250 = vmatpush.xpose.msk.msra.mxu3 %vm155_vm1, %v4228_v2 }
0x1449   :  { %4251 = vmatpush.xpose.msk.msra.mxu3 %vm155_vm1, %v4227_v30 }
0x144d   :  { %4252 = vmatpush.xpose.msk.msra.mxu3 %vm155_vm1, %v4226_v57 }
0x1451   :  { %4253 = vmatpush.xpose.msk.msra.mxu3 %vm155_vm1, %v4225_v56 }
0x1455   :  { %4254 = vmatpush.xpose.msk.msra.mxu3 %vm155_vm1, %v4224_v15 }
0x1459   :  { %4255 = vmatpush.xpose.msk.msra.mxu3 %vm155_vm1, %v4223_v39 }
0x1474   :  { %v3235_v33 = vpop.xlane.xlu0 %3234 }
0x1475   :  { %v3248_v62 = vmul.f32 %v3235_v33, %v4875_v35  ;;  %v6529_v33 = vld [vmem:[%s6778_s12 + $0x1] ss:$0 sm:$0xff] }
0x1477   :  { %v6426_v1 = vsub.f32 %v6397_v41, %v3248_v62 }
0x1479   :  { %v3258_v43 = vmul.f32 %v6426_v1, %v6426_v1 }
0x147b   :  { %v3263_v31 = vsel %vm155_vm1, %v3258_v43, 0.0 }
0x147c   :  { %v3238_v17 = vpop.xlane.xlu1 %3237  ;;  %3264 = vadd.xlane.f32.xlu2 %v3263_v31  ;;  %v6534_v31 = vld [vmem:[%s6779_s13 + $0x1] ss:$0 sm:$0xff] }
0x147d   :  { %v3249_v0 = vmul.f32 %v3238_v17, %v4875_v35 }
0x147f   :  { %v6440_v53 = vsub.f32 %v6403_v29, %v3249_v0 }
0x1481   :  { %v3259_v10 = vmul.f32 %v6440_v53, %v6440_v53 }
0x1483   :  { %v3266_v54 = vsel %vm155_vm1, %v3259_v10, 0.0 }
0x1484   :  { %v3241_v48 = vpop.xlane.xlu2 %3240  ;;  %3267 = vadd.xlane.f32.xlu0 %v3266_v54 }
0x1485   :  { %v3250_v5 = vmul.f32 %v3241_v48, %v4875_v35 }
0x1487   :  { %v6455_v16 = vsub.f32 %v6409_v13, %v3250_v5 }
0x1489   :  { %v3260_v42 = vmul.f32 %v6455_v16, %v6455_v16 }
0x148b   :  { %v3269_v6 = vsel %vm155_vm1, %v3260_v42, 0.0 }
0x148c   :  { %v3244_v45 = vpop.xlane.xlu0 %3243  ;;  %3270 = vadd.xlane.f32.xlu1 %v3269_v6 }
0x148d   :  { %v3251_v23 = vmul.f32 %v3244_v45, %v4875_v35 }
0x148f   :  { %v6470_v46 = vsub.f32 %v6415_v3, %v3251_v23 }
0x1491   :  { %v3261_v52 = vmul.f32 %v6470_v46, %v6470_v46 }
0x1493   :  { %v3272_v19 = vsel %vm155_vm1, %v3261_v52, 0.0 }
0x1494   :  { %3273 = vadd.xlane.f32.xlu2 %v3272_v19  ;;  %v3247_v34 = vpop.xlane.xlu1 %3246 }
0x1495   :  { %v3252_v44 = vmul.f32 %v3247_v34, %v4875_v35 }
0x1497   :  { %v6485_v11 = vsub.f32 %v6420_v28, %v3252_v44 }
0x1499   :  { %v3262_v47 = vmul.f32 %v6485_v11, %v6485_v11 }
0x149b   :  { %v3275_v32 = vsel %vm168_vm2, %v3262_v47, 0.0 }
0x149c   :  { %3276 = vadd.xlane.f32.xlu0 %v3275_v32 }
0x14ef   :  { %v3265_v58 = vpop.xlane.xlu2 %3264 }
0x14f0   :  { %v3278_v51 = vmul.f32 %v3265_v58, %v4875_v35 }
0x14f2   :  { %v3283_v60 = vadd.f32 1e-05, %v3278_v51 }
0x14f4   :  { %4642 = vrsqrt.f32 %v3283_v60  ;;  %vm3294_vm7 = vweird.f32 %v3283_v60 }
0x14f7   :  { %v3268_v18 = vpop.xlane.xlu0 %3267 }
0x14f8   :  { %v3279_v7 = vmul.f32 %v3268_v18, %v4875_v35 }
0x14fa   :  { %v4643_v37 = vpop.eup %4642  ;;  %v3284_v4 = vadd.f32 1e-05, %v3279_v7 }
0x14fb   :  { %v3289_v50 = vmul.f32 %v4643_v37, %v3283_v60  ;;  %vm3295_vm6 = vweird.f32 %v4643_v37 }
0x14fc   :  { %4644 = vrsqrt.f32 %v3284_v4  ;;  %vm3296_vm8 = vmor %vm3294_vm7, %vm3295_vm6  ;;  %vm3304_vm10 = vweird.f32 %v3284_v4 }
0x14fd   :  { %v3290_v38 = vmul.f32 %v4643_v37, %v3289_v50 }
0x14ff   :  { %v3291_v26 = vmul.f32 0.5, %v3290_v38  ;;  %v3271_v20 = vpop.xlane.xlu1 %3270 }
0x1500   :  { %v3280_v55 = vmul.f32 %v3271_v20, %v4875_v35 }
0x1501   :  { %v3292_v40 = vsub.f32 1.5, %v3291_v26 }
0x1502   :  { %v4645_v9 = vpop.eup %4644  ;;  %v3285_v25 = vadd.f32 1e-05, %v3280_v55  ;;  %v4268_v55 = vld [vmem:[%s6783_s16 + $0x30] sm:$0xff] }
0x1503   :  { %v3293_v14 = vmul.f32 %v4643_v37, %v3292_v40  ;;  %v3299_v63 = vmul.f32 %v4645_v9, %v3284_v4  ;;  %vm3305_vm9 = vweird.f32 %v4645_v9  ;;  %v4415_v40 = vld [vmem:[%s6781_s15 + $0x1] ss:$0 sm:$0xff] }
0x1504   :  { %4646 = vrsqrt.f32 %v3285_v25  ;;  %vm3306_vm11 = vmor %vm3304_vm10, %vm3305_vm9  ;;  %vm3314_vm13 = vweird.f32 %v3285_v25 }
0x1505   :  { %v3297_v62 = vsel %vm3296_vm8, %v4643_v37, %v3293_v14  ;;  %v3300_v43 = vmul.f32 %v4645_v9, %v3299_v63 }
0x1506   :  { %v3338_v17 = vmul.f32 %v3297_v62, %v6426_v1 }
0x1507   :  { %v3301_v61 = vmul.f32 0.5, %v3300_v43  ;;  %v3274_v0 = vpop.xlane.xlu2 %3273 }
0x1508   :  { %v3346_v49 = vmul.f32 %v6529_v33, %v3338_v17  ;;  %v3281_v10 = vmul.f32 %v3274_v0, %v4875_v35 }
0x1509   :  { %v3302_v21 = vsub.f32 1.5, %v3301_v61 }
0x150a   :  { %v4647_v54 = vpop.eup %4646  ;;  %v3354_v48 = vadd.f32 %v6534_v31, %v3346_v49  ;;  %v3286_v5 = vadd.f32 1e-05, %v3281_v10 }
0x150b   :  { %v3303_v22 = vmul.f32 %v4645_v9, %v3302_v21  ;;  %v3309_v42 = vmul.f32 %v4647_v54, %v3285_v25  ;;  %vm3315_vm12 = vweird.f32 %v4647_v54  ;;  %v4266_v25 = vld [vmem:[%s6783_s16 + $0x20] sm:$0xff] }
0x150c   :  { %4648 = vrsqrt.f32 %v3286_v5  ;;  %4256 = vmatmul.msk.f32.vlgmr.msra.gmra.mxu3 %vm155_vm1, %v3354_v48  ;;  %vm3316_vm14 = vmor %vm3314_vm13, %vm3315_vm12  ;;  %vm3324_vm0 = vweird.f32 %v3286_v5 }
0x150d   :  { %v3307_v1 = vsel %vm3306_vm11, %v4645_v9, %v3303_v22  ;;  %v3310_v36 = vmul.f32 %v4647_v54, %v3309_v42 }
0x150e   :  { %v3339_v6 = vmul.f32 %v3307_v1, %v6440_v53 }
0x150f   :  { %v3311_v45 = vmul.f32 0.5, %v3310_v36  ;;  %v3277_v23 = vpop.xlane.xlu0 %3276 }
0x1510   :  { %v3282_v59 = vmul.f32 %v3277_v23, %v4875_v35  ;;  %v3347_v52 = vmul.f32 %v6529_v33, %v3339_v6 }
0x1511   :  { %v3312_v27 = vsub.f32 1.5, %v3311_v45 }
0x1512   :  { %v4649_v19 = vpop.eup %4648  ;;  %v3287_v34 = vadd.f32 1e-05, %v3282_v59  ;;  %v3355_v44 = vadd.f32 %v6534_v31, %v3347_v52 }
0x1513   :  { %v3313_v24 = vmul.f32 %v4647_v54, %v3312_v27  ;;  %v3319_v47 = vmul.f32 %v4649_v19, %v3286_v5  ;;  %vm3325_vm15 = vweird.f32 %v4649_v19 }
0x1514   :  { %4650 = vrsqrt.f32 %v3287_v34  ;;  %4257 = vmatmul.msk.f32.gmra.mxu3 %vm155_vm1, %v3355_v44  ;;  %vm3326_vm3 = vmor %vm3324_vm0, %vm3325_vm15  ;;  %vm3334_vm5 = vweird.f32 %v3287_v34 }
0x1515   :  { %v3317_v53 = vsel %vm3316_vm14, %v4647_v54, %v3313_v24  ;;  %v3320_v12 = vmul.f32 %v4649_v19, %v3319_v47 }
0x1516   :  { %v3340_v32 = vmul.f32 %v3317_v53, %v6455_v16 }
0x1517   :  { %v3321_v8 = vmul.f32 0.5, %v3320_v12 }
0x1518   :  { %v3348_v2 = vmul.f32 %v6529_v33, %v3340_v32 }
0x1519   :  { %v3322_v30 = vsub.f32 1.5, %v3321_v8 }
0x151a   :  { %v4651_v57 = vpop.eup %4650  ;;  %v3356_v56 = vadd.f32 %v6534_v31, %v3348_v2 }
0x151b   :  { %v3323_v15 = vmul.f32 %v4649_v19, %v3322_v30  ;;  %v3329_v39 = vmul.f32 %v4651_v57, %v3287_v34  ;;  %vm3335_vm4 = vweird.f32 %v4651_v57 }
0x151c   :  { %4258 = vmatmul.msk.f32.gmra.mxu3 %vm155_vm1, %v3356_v56  ;;  %vm3336_vm6 = vmor %vm3334_vm5, %vm3335_vm4 }
0x151d   :  { %v3327_v58 = vsel %vm3326_vm3, %v4649_v19, %v3323_v15  ;;  %v3330_v51 = vmul.f32 %v4651_v57, %v3329_v39 }
0x151e   :  { %v3341_v60 = vmul.f32 %v3327_v58, %v6470_v46  ;;  %v4269_v46 = vld [vmem:[%s6783_s16 + $0x38] sm:$0xff] }
0x151f   :  { %v3331_v18 = vmul.f32 0.5, %v3330_v51  ;;  %3603 = vmatpush.xpose.msra.mxu2 %v4269_v46 }
0x1520   :  { %v3349_v16 = vmul.f32 %v6529_v33, %v3341_v60 }
0x1521   :  { %v3332_v7 = vsub.f32 1.5, %v3331_v18 }
0x1522   :  { %v3357_v37 = vadd.f32 %v6534_v31, %v3349_v16 }
0x1523   :  { %v3333_v4 = vmul.f32 %v4651_v57, %v3332_v7  ;;  %3604 = vmatpush.xpose.msra.mxu2 %v4268_v55 }
0x1524   :  { %4259 = vmatmul.msk.f32.gmra.mxu3 %vm155_vm1, %v3357_v37 }
0x1525   :  { %v3337_v50 = vsel %vm3336_vm6, %v4651_v57, %v3333_v4 }
0x1526   :  { %v3342_v38 = vmul.f32 %v3337_v50, %v6485_v11  ;;  %v4267_v11 = vld [vmem:[%s6783_s16 + $0x28] sm:$0xff] }
0x1527   :  { %3605 = vmatpush.xpose.msra.mxu2 %v4267_v11 }
0x1528   :  { %v3350_v26 = vmul.f32 %v6529_v33, %v3342_v38 }
0x152a   :  { %v3358_v20 = vadd.f32 %v6534_v31, %v3350_v26 }
0x152b   :  { %3606 = vmatpush.xpose.msra.mxu2 %v4266_v25 }
0x152c   :  { %4260 = vmatmul.msk.f32.gmra.mxu3 %vm155_vm1, %v3358_v20 }
0x158f   :  { %v3461_v9 = vpop.f32.mrf.mxu3 }
0x1590   :  { %v3462_v14 = vadd.f32 %v4415_v40, %v3461_v9 }
0x1592   :  { %v4261_v63 = vmul.f32 -1.702, %v3462_v14 }
0x1594   :  { %v3486_v33 = vmul.f32 1.442695, %v4261_v63 }
0x1596   :  { %4652 = vpow2.f32 %v3486_v33 }
0x1597   :  { %v3464_v62 = vpop.f32.mrf.mxu3 }
0x1598   :  { %v6573_v43 = vadd.f32 %v4415_v40, %v3464_v62 }
0x159a   :  { %v4262_v31 = vmul.f32 -1.702, %v6573_v43 }
0x159c   :  { %v4653_v17 = vpop.eup %4652  ;;  %v3488_v61 = vmul.f32 1.442695, %v4262_v31 }
0x159d   :  { %v3496_v0 = vadd.f32 1.0, %v4653_v17 }
0x159e   :  { %4654 = vpow2.f32 %v3488_v61 }
0x159f   :  { %4656 = vrcp.f32 %v3496_v0  ;;  %v3467_v49 = vpop.f32.mrf.mxu3  ;;  %v3512_v45 = vand.u32 2147483648, %v3496_v0  ;;  %v3510_v59 = vand.u32 2147483647, %v3496_v0  ;;  %vm3506_vm8 = vweird.f32 %v3496_v0 }
0x15a0   :  { %v6576_v10 = vadd.f32 %v4415_v40, %v3467_v49 }
0x15a1   :  { %v3513_v24 = vor.u32 1.1754944e-38, %v3512_v45  ;;  %vm3511_vm10 = vcmp.eq.f32.partialorder %v3510_v59, 8.507059e+37 }
0x15a2   :  { %v4263_v21 = vmul.f32 -1.702, %v6576_v10 }
0x15a4   :  { %v4655_v54 = vpop.eup %4654  ;;  %v3490_v48 = vmul.f32 1.442695, %v4263_v21 }
0x15a5   :  { %v4657_v5 = vpop.eup %4656  ;;  %v3497_v22 = vadd.f32 1.0, %v4655_v54 }
0x15a6   :  { %v3502_v42 = vmul.f32 %v4657_v5, %v3496_v0  ;;  %4658 = vpow2.f32 %v3490_v48  ;;  %vm3507_vm7 = vweird.f32 %v4657_v5 }
0x15a7   :  { %4660 = vrcp.f32 %v3497_v22  ;;  %v3470_v1 = vpop.f32.mrf.mxu3  ;;  %vm3508_vm9 = vmor %vm3506_vm8, %vm3507_vm7  ;;  %v3527_v56 = vand.u32 2147483648, %v3497_v22  ;;  %v3525_v39 = vand.u32 2147483647, %v3497_v22  ;;  %vm3521_vm12 = vweird.f32 %v3497_v22 }
0x15a8   :  { %v3503_v36 = vsub.f32 1.0, %v3502_v42  ;;  %v6579_v6 = vadd.f32 %v4415_v40, %v3470_v1 }
0x15a9   :  { %v3528_v7 = vor.u32 1.1754944e-38, %v3527_v56  ;;  %vm3526_vm14 = vcmp.eq.f32.partialorder %v3525_v39, 8.507059e+37 }
0x15aa   :  { %v3504_v23 = vmul.f32 %v4657_v5, %v3503_v36  ;;  %v4264_v52 = vmul.f32 -1.702, %v6579_v6 }
0x15ac   :  { %v4659_v27 = vpop.eup %4658  ;;  %v3505_v19 = vadd.f32 %v4657_v5, %v3504_v23  ;;  %v3492_v34 = vmul.f32 1.442695, %v4264_v52 }
0x15ad   :  { %v4661_v44 = vpop.eup %4660  ;;  %v3498_v47 = vadd.f32 1.0, %v4659_v27 }
0x15ae   :  { %v3509_v53 = vsel %vm3508_vm9, %v4657_v5, %v3505_v19  ;;  %v3517_v12 = vmul.f32 %v4661_v44, %v3497_v22  ;;  %4662 = vpow2.f32 %v3492_v34  ;;  %vm3522_vm11 = vweird.f32 %v4661_v44 }
0x15af   :  { %v3514_v32 = vsel %vm3511_vm10, %v3513_v24, %v3509_v53  ;;  %4664 = vrcp.f32 %v3498_v47  ;;  %v3473_v8 = vpop.f32.mrf.mxu3  ;;  %vm3523_vm13 = vmor %vm3521_vm12, %vm3522_vm11  ;;  %v3542_v46 = vand.u32 2147483648, %v3498_v47  ;;  %v3540_v11 = vand.u32 2147483647, %v3498_v47 }
0x15b0   :  { %v3576_v2 = vmul.f32 %v3514_v32, %v3462_v14  ;;  %v3518_v30 = vsub.f32 1.0, %v3517_v12  ;;  %v6582_v57 = vadd.f32 %v4415_v40, %v3473_v8  ;;  %vm3536_vm0 = vweird.f32 %v3498_v47 }
0x15b1   :  { %v3543_v14 = vor.u32 1.1754944e-38, %v3542_v46  ;;  %vm3541_vm4 = vcmp.eq.f32.partialorder %v3540_v11, 8.507059e+37 }
0x15b2   :  { %v3519_v15 = vmul.f32 %v4661_v44, %v3518_v30  ;;  %v4265_v58 = vmul.f32 -1.702, %v6582_v57  ;;  %3607 = vmatmul.f32.vlgmr.msra.gmra.mxu2 %v3576_v2 }
0x15b4   :  { %v4663_v51 = vpop.eup %4662  ;;  %v3520_v60 = vadd.f32 %v4661_v44, %v3519_v15  ;;  %v3494_v18 = vmul.f32 1.442695, %v4265_v58 }
0x15b5   :  { %v4665_v16 = vpop.eup %4664  ;;  %v3499_v37 = vadd.f32 1.0, %v4663_v51 }
0x15b6   :  { %v3524_v4 = vsel %vm3523_vm13, %v4661_v44, %v3520_v60  ;;  %v3532_v50 = vmul.f32 %v4665_v16, %v3498_v47  ;;  %4666 = vpow2.f32 %v3494_v18  ;;  %vm3537_vm15 = vweird.f32 %v4665_v16 }
0x15b7   :  { %v3529_v38 = vsel %vm3526_vm14, %v3528_v7, %v3524_v4  ;;  %4668 = vrcp.f32 %v3499_v37  ;;  %vm3538_vm3 = vmor %vm3536_vm0, %vm3537_vm15  ;;  %v3557_v61 = vand.u32 2147483648, %v3499_v37  ;;  %v3555_v49 = vand.u32 2147483647, %v3499_v37 }
0x15b8   :  { %v3577_v26 = vmul.f32 %v3529_v38, %v6573_v43  ;;  %v3533_v20 = vsub.f32 1.0, %v3532_v50  ;;  %vm3551_vm6 = vweird.f32 %v3499_v37 }
0x15b9   :  { %v3558_v48 = vor.u32 1.1754944e-38, %v3557_v61  ;;  %vm3556_vm8 = vcmp.eq.f32.partialorder %v3555_v49, 8.507059e+37  ;;  %v3759_v49 = vld [vmem:[%s6786_s20 + $0x18] sm:$0xff] }
0x15ba   :  { %v3534_v55 = vmul.f32 %v4665_v16, %v3533_v20  ;;  %3610 = vmatmul.f32.gmra.mxu2 %v3577_v26  ;;  %3787 = vmatpush.msrb.mxu1 %v3759_v49  ;;  %v3818_v49 = vld [vmem:[%s6787_s21 + $0x58] sm:$0xff] }
0x15bc   :  { %v4667_v40 = vpop.eup %4666  ;;  %v3535_v9 = vadd.f32 %v4665_v16, %v3534_v55 }
0x15bd   :  { %v4669_v25 = vpop.eup %4668  ;;  %v3500_v63 = vadd.f32 1.0, %v4667_v40 }
0x15be   :  { %v3539_v33 = vsel %vm3538_vm3, %v4665_v16, %v3535_v9  ;;  %v3547_v62 = vmul.f32 %v4669_v25, %v3499_v37  ;;  %vm3552_vm5 = vweird.f32 %v4669_v25 }
0x15bf   :  { %v3544_v31 = vsel %vm3541_vm4, %v3543_v14, %v3539_v33  ;;  %4670 = vrcp.f32 %v3500_v63  ;;  %vm3553_vm7 = vmor %vm3551_vm6, %vm3552_vm5  ;;  %v3572_v45 = vand.u32 2147483648, %v3500_v63  ;;  %v3570_v23 = vand.u32 2147483647, %v3500_v63 }
0x15c0   :  { %v3578_v43 = vmul.f32 %v3544_v31, %v6576_v10  ;;  %v3548_v17 = vsub.f32 1.0, %v3547_v62  ;;  %vm3566_vm10 = vweird.f32 %v3500_v63  ;;  %vm3827_vm4 = vcmask 130048  }
0x15c1   :  { %v3573_v52 = vor.u32 1.1754944e-38, %v3572_v45  ;;  %vm3571_vm12 = vcmp.eq.f32.partialorder %v3570_v23, 8.507059e+37 }
0x15c2   :  { %v3549_v0 = vmul.f32 %v4669_v25, %v3548_v17  ;;  %3613 = vmatmul.f32.gmra.mxu2 %v3578_v43 }
0x15c4   :  { %v3550_v21 = vadd.f32 %v4669_v25, %v3549_v0 }
0x15c5   :  { %v4671_v54 = vpop.eup %4670 }
0x15c6   :  { %v3554_v5 = vsel %vm3553_vm7, %v4669_v25, %v3550_v21  ;;  %v3562_v22 = vmul.f32 %v4671_v54, %v3500_v63  ;;  %vm3567_vm9 = vweird.f32 %v4671_v54  ;;  %v3758_v21 = vld [vmem:[%s6786_s20 + $0x10] sm:$0xff] }
0x15c7   :  { %v3559_v42 = vsel %vm3556_vm8, %v3558_v48, %v3554_v5  ;;  %vm3568_vm11 = vmor %vm3566_vm10, %vm3567_vm9  ;;  %3788 = vmatpush.msrb.mxu1 %v3758_v21  ;;  %v3756_v48 = vld [vmem:[%s6786_s20] sm:$0xff] }
0x15c8   :  { %v3579_v1 = vmul.f32 %v3559_v42, %v6579_v6  ;;  %v3563_v36 = vsub.f32 1.0, %v3562_v22  ;;  %v4416_v6 = vld [vmem:[%s6782_s17 + $0x1] ss:$0 sm:$0xff] }
0x15ca   :  { %v3564_v10 = vmul.f32 %v4671_v54, %v3563_v36  ;;  %3616 = vmatmul.f32.gmra.mxu2 %v3579_v1 }
0x15cc   :  { %v3565_v59 = vadd.f32 %v4671_v54, %v3564_v10 }
0x15ce   :  { %v3569_v27 = vsel %vm3568_vm11, %v4671_v54, %v3565_v59  ;;  %v3757_v54 = vld [vmem:[%s6786_s20 + $0x8] sm:$0xff] }
0x15cf   :  { %v3574_v19 = vsel %vm3571_vm12, %v3573_v52, %v3569_v27  ;;  %3789 = vmatpush.msrb.mxu1 %v3757_v54 }
0x15d0   :  { %v3580_v34 = vmul.f32 %v3574_v19, %v6582_v57 }
0x15d1   :  { %3790 = vmatpush.msrb.mxu1 %v3756_v48 }
0x15d2   :  { %3619 = vmatmul.f32.gmra.mxu2 %v3580_v34 }
0x1635   :  { %v3608_v44 = vpop.f32.mrf.mxu2 }
0x1636   :  { %v3609_v24 = vadd.f32 %v4416_v6, %v3608_v44 }
0x1638   :  { %v3623_v47 = vadd.f32 %v3609_v24, %v6397_v41 }
0x163a   :  { %v3630_v53 = vsel %vm155_vm1, %v3623_v47, 0.0 }
0x163b   :  { %3631 = vadd.xlane.f32.xlu1 %v3630_v53  ;;  %v6650_v53 = vld [vmem:[%s6784_s18] ss:$0 sm:$0xff] }
0x163d   :  { %v3611_v12 = vpop.f32.mrf.mxu2 }
0x163e   :  { %v3612_v32 = vadd.f32 %v4416_v6, %v3611_v12 }
0x1640   :  { %v3624_v8 = vadd.f32 %v3612_v32, %v6403_v29 }
0x1642   :  { %v3633_v2 = vsel %vm155_vm1, %v3624_v8, 0.0 }
0x1643   :  { %3634 = vadd.xlane.f32.xlu2 %v3633_v2 }
0x1645   :  { %v3614_v30 = vpop.f32.mrf.mxu2 }
0x1646   :  { %v3615_v57 = vadd.f32 %v4416_v6, %v3614_v30 }
0x1648   :  { %v3625_v56 = vadd.f32 %v3615_v57, %v6409_v13 }
0x164a   :  { %v3636_v15 = vsel %vm155_vm1, %v3625_v56, 0.0 }
0x164b   :  { %3637 = vadd.xlane.f32.xlu0 %v3636_v15 }
0x164d   :  { %v3617_v39 = vpop.f32.mrf.mxu2 }
0x164e   :  { %v3618_v58 = vadd.f32 %v4416_v6, %v3617_v39 }
0x1650   :  { %v3626_v41 = vadd.f32 %v3618_v58, %v6415_v3 }
0x1652   :  { %v3639_v51 = vsel %vm155_vm1, %v3626_v41, 0.0 }
0x1653   :  { %3640 = vadd.xlane.f32.xlu1 %v3639_v51 }
0x1655   :  { %v3620_v60 = vpop.f32.mrf.mxu2 }
0x1656   :  { %v3621_v18 = vadd.f32 %v4416_v6, %v3620_v60 }
0x1658   :  { %v3627_v29 = vadd.f32 %v3621_v18, %v6420_v28 }
0x165a   :  { %v3642_v16 = vsel %vm168_vm2, %v3627_v29, 0.0 }
0x165b   :  { %3643 = vadd.xlane.f32.xlu2 %v3642_v16 }
0x16ae   :  { %v3632_v7 = vpop.xlane.xlu1 %3631 }
0x16af   :  { %v3645_v13 = vmul.f32 %v3632_v7, %v4875_v35 }
0x16b1   :  { %v6603_v37 = vsub.f32 %v3623_v47, %v3645_v13 }
0x16b3   :  { %v3655_v4 = vmul.f32 %v6603_v37, %v6603_v37 }
0x16b5   :  { %v3660_v3 = vsel %vm155_vm1, %v3655_v4, 0.0 }
0x16b6   :  { %v3635_v50 = vpop.xlane.xlu2 %3634  ;;  %3661 = vadd.xlane.f32.xlu0 %v3660_v3 }
0x16b7   :  { %v3646_v38 = vmul.f32 %v3635_v50, %v4875_v35 }
0x16b9   :  { %v6609_v26 = vsub.f32 %v3624_v8, %v3646_v38  ;;  %v6655_v8 = vld [vmem:[%s6785_s19] ss:$0 sm:$0xff] }
0x16bb   :  { %v3656_v28 = vmul.f32 %v6609_v26, %v6609_v26 }
0x16bd   :  { %v3663_v20 = vsel %vm155_vm1, %v3656_v28, 0.0 }
0x16be   :  { %3664 = vadd.xlane.f32.xlu1 %v3663_v20  ;;  %v3638_v46 = vpop.xlane.xlu0 %3637 }
0x16bf   :  { %v3647_v55 = vmul.f32 %v3638_v46, %v4875_v35 }
0x16c1   :  { %v6615_v11 = vsub.f32 %v3625_v56, %v3647_v55 }
0x16c3   :  { %v3657_v40 = vmul.f32 %v6615_v11, %v6615_v11 }
0x16c5   :  { %v3666_v9 = vsel %vm155_vm1, %v3657_v40, 0.0 }
0x16c6   :  { %3667 = vadd.xlane.f32.xlu2 %v3666_v9  ;;  %v3641_v25 = vpop.xlane.xlu1 %3640 }
0x16c7   :  { %v3648_v14 = vmul.f32 %v3641_v25, %v4875_v35 }
0x16c9   :  { %v6621_v63 = vsub.f32 %v3626_v41, %v3648_v14 }
0x16cb   :  { %v3658_v33 = vmul.f32 %v6621_v63, %v6621_v63 }
0x16cd   :  { %v3669_v62 = vsel %vm155_vm1, %v3658_v33, 0.0  ;;  %v3819_v33 = vld [vmem:[%s6787_s21 + $0x60] sm:$0xff] }
0x16ce   :  { %v3644_v31 = vpop.xlane.xlu2 %3643  ;;  %3670 = vadd.xlane.f32.xlu0 %v3669_v62 }
0x16cf   :  { %v3649_v43 = vmul.f32 %v3644_v31, %v4875_v35 }
0x16d1   :  { %v6627_v17 = vsub.f32 %v3627_v29, %v3649_v43  ;;  %v3822_v29 = vld [vmem:[%s6787_s21 + $0x78] sm:$0xff] }
0x16d2   :  { %4276 = vmatpush.xpose.msk.msra.mxu0 %vm3827_vm4, %v3822_v29 }
0x16d3   :  { %v3659_v61 = vmul.f32 %v6627_v17, %v6627_v17 }
0x16d5   :  { %v3672_v0 = vsel %vm168_vm2, %v3659_v61, 0.0 }
0x16d6   :  { %3673 = vadd.xlane.f32.xlu1 %v3672_v0 }
0x1729   :  { %v3662_v5 = vpop.xlane.xlu0 %3661 }
0x172a   :  { %v3675_v22 = vmul.f32 %v3662_v5, %v4875_v35 }
0x172c   :  { %v3680_v42 = vadd.f32 1e-05, %v3675_v22  ;;  %v3817_v22 = vld [vmem:[%s6787_s21 + $0x50] sm:$0xff] }
0x172e   :  { %4672 = vrsqrt.f32 %v3680_v42  ;;  %vm3691_vm13 = vweird.f32 %v3680_v42 }
0x1731   :  { %v3665_v1 = vpop.xlane.xlu1 %3664 }
0x1732   :  { %v3676_v36 = vmul.f32 %v3665_v1, %v4875_v35 }
0x1734   :  { %v4673_v45 = vpop.eup %4672  ;;  %v3681_v10 = vadd.f32 1e-05, %v3676_v36 }
0x1735   :  { %v3686_v23 = vmul.f32 %v4673_v45, %v3680_v42  ;;  %vm3692_vm2 = vweird.f32 %v4673_v45 }
0x1736   :  { %4674 = vrsqrt.f32 %v3681_v10  ;;  %vm3693_vm14 = vmor %vm3691_vm13, %vm3692_vm2  ;;  %vm3701_vm0 = vweird.f32 %v3681_v10 }
0x1737   :  { %v3687_v59 = vmul.f32 %v4673_v45, %v3686_v23 }
0x1739   :  { %v3688_v52 = vmul.f32 0.5, %v3687_v59  ;;  %v3668_v27 = vpop.xlane.xlu2 %3667 }
0x173a   :  { %v3677_v19 = vmul.f32 %v3668_v27, %v4875_v35 }
0x173b   :  { %v3689_v34 = vsub.f32 1.5, %v3688_v52  ;;  %v3815_v52 = vld [vmem:[%s6787_s21 + $0x40] sm:$0xff] }
0x173c   :  { %v4675_v6 = vpop.eup %4674  ;;  %v3682_v44 = vadd.f32 1e-05, %v3677_v19 }
0x173d   :  { %v3690_v24 = vmul.f32 %v4673_v45, %v3689_v34  ;;  %v3696_v47 = vmul.f32 %v4675_v6, %v3681_v10  ;;  %vm3702_vm15 = vweird.f32 %v4675_v6  ;;  %v3816_v10 = vld [vmem:[%s6787_s21 + $0x48] sm:$0xff]  ;;  %v3814_v34 = vld [vmem:[%s6787_s21 + $0x38] sm:$0xff] }
0x173e   :  { %4676 = vrsqrt.f32 %v3682_v44  ;;  %vm3703_vm3 = vmor %vm3701_vm0, %vm3702_vm15  ;;  %vm3711_vm6 = vweird.f32 %v3682_v44 }
0x173f   :  { %v3694_v12 = vsel %vm3693_vm14, %v4673_v45, %v3690_v24  ;;  %v3697_v32 = vmul.f32 %v4675_v6, %v3696_v47  ;;  %v3810_v24 = vld [vmem:[%s6787_s21 + $0x18] sm:$0xff]  ;;  %v3809_v47 = vld [vmem:[%s6787_s21 + $0x10] sm:$0xff] }
0x1740   :  { %v3735_v2 = vmul.f32 %v3694_v12, %v6603_v37  ;;  %v3821_v37 = vld [vmem:[%s6787_s21 + $0x70] sm:$0xff]  ;;  %v3807_v12 = vld [vmem:[%s6787_s21] sm:$0xff] }
0x1741   :  { %v3698_v30 = vmul.f32 0.5, %v3697_v32  ;;  %v3671_v57 = vpop.xlane.xlu0 %3670  ;;  %4277 = vmatpush.xpose.msk.msra.mxu0 %vm3827_vm4, %v3821_v37 }
0x1742   :  { %v3743_v56 = vmul.f32 %v6650_v53, %v3735_v2  ;;  %v3678_v15 = vmul.f32 %v3671_v57, %v4875_v35 }
0x1743   :  { %v3699_v39 = vsub.f32 1.5, %v3698_v30 }
0x1744   :  { %v4677_v58 = vpop.eup %4676  ;;  %v3751_v41 = vadd.f32 %v6655_v8, %v3743_v56  ;;  %v3683_v51 = vadd.f32 1e-05, %v3678_v15  ;;  %v4419_v56 = vld [vmem:[%s6788_s22] ss:$0 sm:$0xff] }
0x1745   :  { %v3700_v60 = vmul.f32 %v4675_v6, %v3699_v39  ;;  %v3706_v18 = vmul.f32 %v4677_v58, %v3682_v44  ;;  %vm3712_vm5 = vweird.f32 %v4677_v58  ;;  %v3811_v44 = vld [vmem:[%s6787_s21 + $0x20] sm:$0xff] }
0x1746   :  { %4678 = vrsqrt.f32 %v3683_v51  ;;  %4271 = vmatmul.msk.f32.vlgmr.msrb.gmra.mxu1 %vm155_vm1, %v3751_v41  ;;  %vm3713_vm7 = vmor %vm3711_vm6, %vm3712_vm5  ;;  %vm3721_vm9 = vweird.f32 %v3683_v51 }
0x1747   :  { %v3704_v16 = vsel %vm3703_vm3, %v4675_v6, %v3700_v60  ;;  %v3707_v7 = vmul.f32 %v4677_v58, %v3706_v18  ;;  %v3812_v6 = vld [vmem:[%s6787_s21 + $0x28] sm:$0xff] }
0x1748   :  { %v3736_v13 = vmul.f32 %v3704_v16, %v6609_v26  ;;  %v3820_v26 = vld [vmem:[%s6787_s21 + $0x68] sm:$0xff] }
0x1749   :  { %v3708_v4 = vmul.f32 0.5, %v3707_v7  ;;  %v3674_v3 = vpop.xlane.xlu1 %3673  ;;  %4278 = vmatpush.xpose.msk.msra.mxu0 %vm3827_vm4, %v3820_v26 }
0x174a   :  { %v3679_v50 = vmul.f32 %v3674_v3, %v4875_v35  ;;  %v3744_v38 = vmul.f32 %v6650_v53, %v3736_v13 }
0x174b   :  { %v3709_v28 = vsub.f32 1.5, %v3708_v4 }
0x174c   :  { %v4679_v20 = vpop.eup %4678  ;;  %v3684_v46 = vadd.f32 1e-05, %v3679_v50  ;;  %v3752_v55 = vadd.f32 %v6655_v8, %v3744_v38 }
0x174d   :  { %v3710_v40 = vmul.f32 %v4677_v58, %v3709_v28  ;;  %v3716_v9 = vmul.f32 %v4679_v20, %v3683_v51  ;;  %vm3722_vm8 = vweird.f32 %v4679_v20  ;;  %4279 = vmatpush.xpose.msk.msra.mxu0 %vm3827_vm4, %v3819_v33 }
0x174e   :  { %4680 = vrsqrt.f32 %v3684_v46  ;;  %4272 = vmatmul.msk.f32.gmra.mxu1 %vm155_vm1, %v3752_v55  ;;  %vm3723_vm10 = vmor %vm3721_vm9, %vm3722_vm8  ;;  %vm3731_vm12 = vweird.f32 %v3684_v46 }
0x174f   :  { %v3714_v35 = vsel %vm3713_vm7, %v4677_v58, %v3710_v40  ;;  %v3717_v25 = vmul.f32 %v4679_v20, %v3716_v9 }
0x1750   :  { %v3737_v14 = vmul.f32 %v3714_v35, %v6615_v11 }
0x1751   :  { %v3718_v62 = vmul.f32 0.5, %v3717_v25  ;;  %4280 = vmatpush.xpose.msk.msra.mxu0 %vm3827_vm4, %v3818_v49 }
0x1752   :  { %v3745_v31 = vmul.f32 %v6650_v53, %v3737_v14 }
0x1753   :  { %v3719_v43 = vsub.f32 1.5, %v3718_v62 }
0x1754   :  { %v4681_v61 = vpop.eup %4680  ;;  %v3753_v0 = vadd.f32 %v6655_v8, %v3745_v31 }
0x1755   :  { %v3720_v21 = vmul.f32 %v4679_v20, %v3719_v43  ;;  %v3726_v11 = vmul.f32 %v4681_v61, %v3684_v46  ;;  %vm3732_vm11 = vweird.f32 %v4681_v61  ;;  %4281 = vmatpush.xpose.msk.msra.mxu0 %vm3827_vm4, %v3817_v22 }
0x1756   :  { %4273 = vmatmul.msk.f32.gmra.mxu1 %vm155_vm1, %v3753_v0  ;;  %vm3733_vm2 = vmor %vm3731_vm12, %vm3732_vm11 }
0x1757   :  { %v3724_v54 = vsel %vm3723_vm10, %v4679_v20, %v3720_v21  ;;  %v3727_v48 = vmul.f32 %v4681_v61, %v3726_v11 }
0x1758   :  { %v3738_v5 = vmul.f32 %v3724_v54, %v6621_v63 }
0x1759   :  { %v3728_v42 = vmul.f32 0.5, %v3727_v48  ;;  %4282 = vmatpush.xpose.msk.msra.mxu0 %vm3827_vm4, %v3816_v10 }
0x175a   :  { %v3746_v1 = vmul.f32 %v6650_v53, %v3738_v5 }
0x175b   :  { %v3729_v36 = vsub.f32 1.5, %v3728_v42 }
0x175c   :  { %v3754_v45 = vadd.f32 %v6655_v8, %v3746_v1 }
0x175d   :  { %v3730_v23 = vmul.f32 %v4681_v61, %v3729_v36  ;;  %4283 = vmatpush.xpose.msk.msra.mxu0 %vm3827_vm4, %v3815_v52 }
0x175e   :  { %4274 = vmatmul.msk.f32.gmra.mxu1 %vm155_vm1, %v3754_v45 }
0x175f   :  { %v3734_v63 = vsel %vm3733_vm2, %v4681_v61, %v3730_v23 }
0x1760   :  { %v3739_v59 = vmul.f32 %v3734_v63, %v6627_v17  ;;  %v3813_v17 = vld [vmem:[%s6787_s21 + $0x30] sm:$0xff] }
0x1761   :  { %4284 = vmatpush.xpose.msk.msra.mxu0 %vm3827_vm4, %v3814_v34 }
0x1762   :  { %v3747_v27 = vmul.f32 %v6650_v53, %v3739_v59  ;;  %v3808_v53 = vld [vmem:[%s6787_s21 + $0x8] sm:$0xff] }
0x1764   :  { %v3755_v19 = vadd.f32 %v6655_v8, %v3747_v27 }
0x1765   :  { %4285 = vmatpush.xpose.msk.msra.mxu0 %vm3827_vm4, %v3813_v17 }
0x1766   :  { %4275 = vmatmul.msk.f32.gmra.mxu1 %vm155_vm1, %v3755_v19 }
0x1769   :  { %4286 = vmatpush.xpose.msk.msra.mxu0 %vm3827_vm4, %v3812_v6 }
0x176d   :  { %4287 = vmatpush.xpose.msk.msra.mxu0 %vm3827_vm4, %v3811_v44 }
0x1771   :  { %4288 = vmatpush.xpose.msk.msra.mxu0 %vm3827_vm4, %v3810_v24 }
0x1775   :  { %4289 = vmatpush.xpose.msk.msra.mxu0 %vm3827_vm4, %v3809_v47 }
0x1779   :  { %4290 = vmatpush.xpose.msk.msra.mxu0 %vm3827_vm4, %v3808_v53 }
0x177d   :  { %4291 = vmatpush.xpose.msk.msra.mxu0 %vm3827_vm4, %v3807_v12 }
0x17c3   :  { %v3792_v32 = vpop.f32.mrf.mxu1 }
0x17c4   :  { %4292 = vmatmul.msk.f32.vlgmr.msra.gmra.mxu0 %vm3827_vm4, %v3792_v32 }
0x17cb   :  { %v3795_v8 = vpop.f32.mrf.mxu1 }
0x17cc   :  { %4293 = vmatmul.msk.f32.gmra.mxu0 %vm3827_vm4, %v3795_v8 }
0x17d3   :  { %v3798_v2 = vpop.f32.mrf.mxu1 }
0x17d4   :  { %4294 = vmatmul.msk.f32.gmra.mxu0 %vm3827_vm4, %v3798_v2 }
0x17db   :  { %v3801_v30 = vpop.f32.mrf.mxu1 }
0x17dc   :  { %4295 = vmatmul.msk.f32.gmra.mxu0 %vm3827_vm4, %v3801_v30 }
0x17e3   :  { %v3804_v57 = vpop.f32.mrf.mxu1 }
0x17e4   :  { %4296 = vmatmul.msk.f32.gmra.mxu0 %vm3827_vm4, %v3804_v57 }
0x1841   :  { %v3908_v15 = vpop.f32.mrf.mxu0 }
0x1842   :  { %v3909_v39 = vadd.f32 %v4419_v56, %v3908_v15 }
0x1844   :  { %3923 = vst [vmem:[%s6789_s23] sm:$0xff] %v3909_v39 }
0x1849   :  { %v3911_v58 = vpop.f32.mrf.mxu0 }
0x184a   :  { %v3912_v41 = vadd.f32 %v4419_v56, %v3911_v58 }
0x184c   :  { %3924 = vst [vmem:[%s6789_s23 + $0x8] sm:$0xff] %v3912_v41 }
0x1851   :  { %v3914_v51 = vpop.f32.mrf.mxu0 }
0x1852   :  { %v3915_v60 = vadd.f32 %v4419_v56, %v3914_v51 }
0x1854   :  { %3925 = vst [vmem:[%s6789_s23 + $0x10] sm:$0xff] %v3915_v60 }
0x1859   :  { %v3917_v18 = vpop.f32.mrf.mxu0 }
0x185a   :  { %v3918_v29 = vadd.f32 %v4419_v56, %v3917_v18 }
0x185c   :  { %3926 = vst [vmem:[%s6789_s23 + $0x18] sm:$0xff] %v3918_v29 }
0x1861   :  { %v3920_v16 = vpop.f32.mrf.mxu0 }
0x1862   :  { %v3921_v7 = vadd.f32 %v4419_v56, %v3920_v16 }
0x1864   :  { %3927 = vst [vmem:[%s6789_s23 + $0x20] sm:$0x3] %v3921_v7 }

</bundles_post_ra>
